<compile_context>
chip_gen: v6e
topology: v6e:2x2x1
jax: 0.10.0
libtpu: 0.0.40
codegen_flags: <defaults>
</compile_context>

<pallas_src>
import functools

import jax
import jax.numpy as jnp
from jax.experimental import pallas as pl
from jax.experimental.pallas import tpu as pltpu

IN_DIM = 28 * 28      # 784
H1, H2, H3 = 512, 256, 128


def _leaky_relu(x, slope=0.2):
    return jnp.where(x > 0, x, slope * x)


def _round_up(n, m):
    return ((n + m - 1) // m) * m


def _choose_tiling(B, block_b):
    """Pick an MXU-aligned batch tile TB (multiple of 128) and padded batch.

    Guarantees at least 2 grid steps (megacore sharding on v7x + DMA/compute
    overlap everywhere) while making TB as large as block_b allows.
    """
    n128 = max(pl.cdiv(B, 128), 2)                      # 128-row tiles, >= 2
    tiles_per_block = max(1, min(block_b // 128, n128 // 2))
    TB = tiles_per_block * 128
    n_steps = pl.cdiv(n128, tiles_per_block)
    B_pad = n_steps * TB
    return TB, B_pad, n_steps


def discriminator_kernel(x_ref,
                         w1_ref, b1_ref,
                         w2_ref, b2_ref,
                         w3_ref, b3_ref,
                         w4_ref, b4_ref,
                         o_ref):
    # In-kernel f32 -> bf16 cast (cheap VPU pack); saves an extra HBM pass.
    x = x_ref[...].astype(jnp.bfloat16)                                  # (TB, 784)

    h = jnp.dot(x, w1_ref[...], preferred_element_type=jnp.float32)     # (TB, 512) f32
    h = _leaky_relu(h + b1_ref[...])

    h = jnp.dot(h.astype(jnp.bfloat16), w2_ref[...],
                preferred_element_type=jnp.float32)                     # (TB, 256) f32
    h = _leaky_relu(h + b2_ref[...])

    h = jnp.dot(h.astype(jnp.bfloat16), w3_ref[...],
                preferred_element_type=jnp.float32)                     # (TB, 128) f32
    h = _leaky_relu(h + b3_ref[...])

    # fc4 (N=1) + output compaction.  For each 128-row sub-block of the batch
    # tile, w4 @ h_blk.T lays the 128 per-row logits across lanes, so the
    # store is a dense (TB//128, 128) f32 block instead of a 128x broadcast.
    nsub = o_ref.shape[0]                              # TB // 128, static
    rows = []
    for s in range(nsub):
        h_blk = h[s * 128:(s + 1) * 128, :]            # (128, 128) f32
        rows.append(jnp.dot(w4_ref[...], h_blk.T,
                            preferred_element_type=jnp.float32))   # (1, 128)
    z = jnp.concatenate(rows, axis=0)                  # (nsub, 128) f32
    o_ref[...] = jax.nn.sigmoid(z + b4_ref[...])       # b4 broadcasts (1,1)


def init_params(key):
    """f32 master params matching nn.Linear shapes, stored as (in, out)."""
    dims = [(IN_DIM, H1), (H1, H2), (H2, H3), (H3, 1)]
    params = []
    for i, (fan_in, fan_out) in enumerate(dims):
        kw, kb = jax.random.split(jax.random.fold_in(key, i))
        bound = 1.0 / jnp.sqrt(fan_in)
        w = jax.random.uniform(kw, (fan_in, fan_out), jnp.float32, -bound, bound)
        b = jax.random.uniform(kb, (1, fan_out), jnp.float32, -bound, bound)
        params += [w, b]
    return tuple(params)


def pack_params_for_kernel(params):
    """bf16 weights for the MXU layers, f32 biases, (1, 128) f32 row for fc4."""
    w1, b1, w2, b2, w3, b3, w4, b4 = params
    return (w1.astype(jnp.bfloat16), b1,
            w2.astype(jnp.bfloat16), b2,
            w3.astype(jnp.bfloat16), b3,
            w4.reshape(1, H3).astype(jnp.float32),    # (1, 128) row for fc4
            b4.reshape(1, 1).astype(jnp.float32))


@functools.partial(jax.jit, static_argnames=("block_b",))
def discriminator_forward(x_img, params, *, block_b=1024):
    """x_img: (B, 1, 28, 28) float32 NCHW. Returns (B, 1) float32."""
    B = x_img.shape[0]
    x = x_img.reshape(B, -1)                           # (B, 784) f32 — no cast here

    TB, B_pad, n_steps = _choose_tiling(B, block_b)
    nsub = TB // 128
    if B_pad != B:
        x = jnp.pad(x, ((0, B_pad - B), (0, 0)))

    kparams = pack_params_for_kernel(params)
    args = (x,) + kparams

    in_specs = [pl.BlockSpec((TB, IN_DIM), lambda i: (i, 0))]
    # Weights/biases: whole array, constant block index -> DMA'd once, resident.
    in_specs += [pl.BlockSpec(a.shape, lambda i: (0, 0)) for a in kparams]

    # Compact, lane-dense output: (n_steps, TB//128, 128) f32; each grid step
    # writes one (TB//128, 128) block (4 bytes of HBM per batch row).
    out_spec = pl.BlockSpec((None, nsub, 128), lambda i: (i, 0, 0))

    flops = 2 * B_pad * (IN_DIM * H1 + H1 * H2 + H2 * H3 + H3)
    bytes_accessed = (
        B_pad * IN_DIM * 4                                    # x (f32)
        + (IN_DIM * H1 + H1 * H2 + H2 * H3) * 2               # bf16 weights
        + (H1 + H2 + H3 + 1 + H3 + 1) * 4                     # biases + w4 row (f32)
        + B_pad * 4                                           # compact output (f32)
    )
    cost = pl.CostEstimate(flops=flops, transcendentals=B_pad,
                           bytes_accessed=bytes_accessed)

    out = pl.pallas_call(
        discriminator_kernel,
        out_shape=jax.ShapeDtypeStruct((n_steps, nsub, 128), jnp.float32),
        grid=(n_steps,),
        in_specs=in_specs,
        out_specs=out_spec,
        compiler_params=pltpu.CompilerParams(
            dimension_semantics=("parallel",),
            vmem_limit_bytes=32 << 20,
        ),
        cost_estimate=cost,
    )(*args)

    return out.reshape(B_pad, 1)[:B]


def reference_forward(x_img, params):
    """Pure-JAX f32 reference of the PyTorch module."""
    w1, b1, w2, b2, w3, b3, w4, b4 = params
    x = x_img.reshape(x_img.shape[0], -1)
    h = _leaky_relu(x @ w1 + b1)
    h = _leaky_relu(h @ w2 + b2)
    h = _leaky_relu(h @ w3 + b3)
    return jax.nn.sigmoid(h @ w4 + b4)


if __name__ == "__main__":
    key = jax.random.PRNGKey(0)
    k_x, k_p = jax.random.split(key)

    B = 2
    x = jax.random.normal(k_x, (B, 1, 28, 28), jnp.float32)   # NCHW, MNIST-sized
    params = init_params(k_p)

    out = discriminator_forward(x, params)
    out = jax.block_until_ready(out)

    ref = reference_forward(x, params)
    assert out.shape == (B, 1), out.shape
    # bf16 matmuls vs f32 reference: loosened tolerance.
    assert jnp.allclose(out, ref, atol=3e-2, rtol=3e-2), (out, ref)

    print("KERNEL_OK")
</pallas_src>

<mosaic_0001>
module attributes {stable_mosaic.version = 11 : i64} {
  func.func @discriminator_kernel(%arg0: i32, %arg1: memref<128x784xf32, #tpu.memory_space<vmem>>, %arg2: memref<784x512xbf16, #tpu.memory_space<vmem>>, %arg3: memref<1x512xf32, #tpu.memory_space<vmem>>, %arg4: memref<512x256xbf16, #tpu.memory_space<vmem>>, %arg5: memref<1x256xf32, #tpu.memory_space<vmem>>, %arg6: memref<256x128xbf16, #tpu.memory_space<vmem>>, %arg7: memref<1x128xf32, #tpu.memory_space<vmem>>, %arg8: memref<1x128xf32, #tpu.memory_space<vmem>>, %arg9: memref<1x1xf32, #tpu.memory_space<vmem>>, %arg10: memref<1x1x128xf32, #tpu.memory_space<vmem>>) attributes {dimension_semantics = [#tpu.dimension_semantics<parallel>], iteration_bounds = array<i64: 2>, scalar_prefetch = 0 : i64, scratch_operands = 0 : i64, tpu.core_type = #tpu.core_type<tc>, window_params = [{transform_indices = @transform_0, window_bounds = array<i64: 128, 784>}, {pipeline_mode = #tpu.pipeline_mode<synchronous>, transform_indices = @transform_1, window_bounds = array<i64: 784, 512>}, {pipeline_mode = #tpu.pipeline_mode<synchronous>, transform_indices = @transform_2, window_bounds = array<i64: 1, 512>}, {pipeline_mode = #tpu.pipeline_mode<synchronous>, transform_indices = @transform_3, window_bounds = array<i64: 512, 256>}, {pipeline_mode = #tpu.pipeline_mode<synchronous>, transform_indices = @transform_4, window_bounds = array<i64: 1, 256>}, {pipeline_mode = #tpu.pipeline_mode<synchronous>, transform_indices = @transform_5, window_bounds = array<i64: 256, 128>}, {pipeline_mode = #tpu.pipeline_mode<synchronous>, transform_indices = @transform_6, window_bounds = array<i64: 1, 128>}, {pipeline_mode = #tpu.pipeline_mode<synchronous>, transform_indices = @transform_7, window_bounds = array<i64: 1, 128>}, {pipeline_mode = #tpu.pipeline_mode<synchronous>, transform_indices = @transform_8, window_bounds = array<i64: 1, 1>}, {transform_indices = @transform_9, window_bounds = array<i64: 1, 1, 128>}]} {
    %c0 = arith.constant 0 : index
    %c0_0 = arith.constant 0 : index
    %0 = vector.load %arg1[%c0, %c0_0] : memref<128x784xf32, #tpu.memory_space<vmem>>, vector<128x784xf32>
    %1 = arith.truncf %0 : vector<128x784xf32> to vector<128x784xbf16>
    %c0_1 = arith.constant 0 : index
    %c0_2 = arith.constant 0 : index
    %2 = vector.load %arg2[%c0_1, %c0_2] : memref<784x512xbf16, #tpu.memory_space<vmem>>, vector<784x512xbf16>
    %cst = arith.constant dense<0.000000e+00> : vector<128x512xf32>
    %3 = tpu.matmul %1, %2, %cst {dimension_numbers = #tpu.dot_dimension_numbers<[1], [0], [0], [1], [0, 0, 1, 1], [], []>} : vector<128x784xbf16>, vector<784x512xbf16>, vector<128x512xf32> -> vector<128x512xf32>
    %c0_3 = arith.constant 0 : index
    %c0_4 = arith.constant 0 : index
    %4 = vector.load %arg3[%c0_3, %c0_4] : memref<1x512xf32, #tpu.memory_space<vmem>>, vector<1x512xf32>
    %5 = vector.broadcast %4 : vector<1x512xf32> to vector<128x512xf32>
    %6 = arith.addf %3, %5 : vector<128x512xf32>
    %cst_5 = arith.constant 0.000000e+00 : f32
    %7 = vector.broadcast %cst_5 : f32 to vector<128x512xf32>
    %8 = arith.cmpf ogt, %6, %7 : vector<128x512xf32>
    %cst_6 = arith.constant 2.000000e-01 : f32
    %9 = vector.broadcast %cst_6 : f32 to vector<128x512xf32>
    %10 = arith.mulf %9, %6 : vector<128x512xf32>
    %11 = arith.select %8, %6, %10 : vector<128x512xi1>, vector<128x512xf32>
    %12 = arith.truncf %11 : vector<128x512xf32> to vector<128x512xbf16>
    %c0_7 = arith.constant 0 : index
    %c0_8 = arith.constant 0 : index
    %13 = vector.load %arg4[%c0_7, %c0_8] : memref<512x256xbf16, #tpu.memory_space<vmem>>, vector<512x256xbf16>
    %cst_9 = arith.constant dense<0.000000e+00> : vector<128x256xf32>
    %14 = tpu.matmul %12, %13, %cst_9 {dimension_numbers = #tpu.dot_dimension_numbers<[1], [0], [0], [1], [0, 0, 1, 1], [], []>} : vector<128x512xbf16>, vector<512x256xbf16>, vector<128x256xf32> -> vector<128x256xf32>
    %c0_10 = arith.constant 0 : index
    %c0_11 = arith.constant 0 : index
    %15 = vector.load %arg5[%c0_10, %c0_11] : memref<1x256xf32, #tpu.memory_space<vmem>>, vector<1x256xf32>
    %16 = vector.broadcast %15 : vector<1x256xf32> to vector<128x256xf32>
    %17 = arith.addf %14, %16 : vector<128x256xf32>
    %cst_12 = arith.constant 0.000000e+00 : f32
    %18 = vector.broadcast %cst_12 : f32 to vector<128x256xf32>
    %19 = arith.cmpf ogt, %17, %18 : vector<128x256xf32>
    %cst_13 = arith.constant 2.000000e-01 : f32
    %20 = vector.broadcast %cst_13 : f32 to vector<128x256xf32>
    %21 = arith.mulf %20, %17 : vector<128x256xf32>
    %22 = arith.select %19, %17, %21 : vector<128x256xi1>, vector<128x256xf32>
    %23 = arith.truncf %22 : vector<128x256xf32> to vector<128x256xbf16>
    %c0_14 = arith.constant 0 : index
    %c0_15 = arith.constant 0 : index
    %24 = vector.load %arg6[%c0_14, %c0_15] : memref<256x128xbf16, #tpu.memory_space<vmem>>, vector<256x128xbf16>
    %cst_16 = arith.constant dense<0.000000e+00> : vector<128x128xf32>
    %25 = tpu.matmul %23, %24, %cst_16 {dimension_numbers = #tpu.dot_dimension_numbers<[1], [0], [0], [1], [0, 0, 1, 1], [], []>} : vector<128x256xbf16>, vector<256x128xbf16>, vector<128x128xf32> -> vector<128x128xf32>
    %c0_17 = arith.constant 0 : index
    %c0_18 = arith.constant 0 : index
    %26 = vector.load %arg7[%c0_17, %c0_18] : memref<1x128xf32, #tpu.memory_space<vmem>>, vector<1x128xf32>
    %27 = vector.broadcast %26 : vector<1x128xf32> to vector<128x128xf32>
    %28 = arith.addf %25, %27 : vector<128x128xf32>
    %cst_19 = arith.constant 0.000000e+00 : f32
    %29 = vector.broadcast %cst_19 : f32 to vector<128x128xf32>
    %30 = arith.cmpf ogt, %28, %29 : vector<128x128xf32>
    %cst_20 = arith.constant 2.000000e-01 : f32
    %31 = vector.broadcast %cst_20 : f32 to vector<128x128xf32>
    %32 = arith.mulf %31, %28 : vector<128x128xf32>
    %33 = arith.select %30, %28, %32 : vector<128x128xi1>, vector<128x128xf32>
    %c0_21 = arith.constant 0 : index
    %c0_22 = arith.constant 0 : index
    %34 = vector.load %arg8[%c0_21, %c0_22] : memref<1x128xf32, #tpu.memory_space<vmem>>, vector<1x128xf32>
    %35 = tpu.transpose %33, [1, 0] : vector<128x128xf32> -> vector<128x128xf32>
    %cst_23 = arith.constant dense<0.000000e+00> : vector<1x128xf32>
    %36 = tpu.matmul %34, %35, %cst_23 {dimension_numbers = #tpu.dot_dimension_numbers<[1], [0], [0], [1], [0, 0, 1, 1], [], []>} : vector<1x128xf32>, vector<128x128xf32>, vector<1x128xf32> -> vector<1x128xf32>
    %c0_24 = arith.constant 0 : index
    %c0_25 = arith.constant 0 : index
    %37 = vector.load %arg9[%c0_24, %c0_25] : memref<1x1xf32, #tpu.memory_space<vmem>>, vector<1x1xf32>
    %38 = vector.broadcast %37 : vector<1x1xf32> to vector<1x128xf32>
    %39 = arith.addf %36, %38 : vector<1x128xf32>
    %40 = arith.negf %39 : vector<1x128xf32>
    %41 = math.exp %40 : vector<1x128xf32>
    %cst_26 = arith.constant 1.000000e+00 : f32
    %42 = vector.broadcast %cst_26 : f32 to vector<1x128xf32>
    %43 = arith.addf %42, %41 : vector<1x128xf32>
    %44 = arith.divf %42, %43 : vector<1x128xf32>
    %c0_27 = arith.constant 0 : index
    %c0_28 = arith.constant 0 : index
    %c0_29 = arith.constant 0 : index
    %45 = vector.load %arg10[%c0_27, %c0_28, %c0_29] : memref<1x1x128xf32, #tpu.memory_space<vmem>>, vector<1x1x128xf32>
    %46 = vector.shape_cast %45 : vector<1x1x128xf32> to vector<1x128xf32>
    %47 = vector.shape_cast %44 : vector<1x128xf32> to vector<1x1x128xf32>
    tpu.vector_store %arg10[%c0_27, %c0_28, %c0_29], %47 {strides = array<i32>} : memref<1x1x128xf32, #tpu.memory_space<vmem>>, vector<1x1x128xf32>,
    return
  }
  func.func @transform_0(%arg0: i32) -> (i32, i32) {
    %c0_i32 = arith.constant 0 : i32
    %c0_i32_0 = arith.constant 0 : i32
    return %arg0, %c0_i32 : i32, i32
  }
  func.func @transform_1(%arg0: i32) -> (i32, i32) {
    %c0_i32 = arith.constant 0 : i32
    %c0_i32_0 = arith.constant 0 : i32
    %c0_i32_1 = arith.constant 0 : i32
    return %c0_i32, %c0_i32_0 : i32, i32
  }
  func.func @transform_2(%arg0: i32) -> (i32, i32) {
    %c0_i32 = arith.constant 0 : i32
    %c0_i32_0 = arith.constant 0 : i32
    %c0_i32_1 = arith.constant 0 : i32
    return %c0_i32, %c0_i32_0 : i32, i32
  }
  func.func @transform_3(%arg0: i32) -> (i32, i32) {
    %c0_i32 = arith.constant 0 : i32
    %c0_i32_0 = arith.constant 0 : i32
    %c0_i32_1 = arith.constant 0 : i32
    return %c0_i32, %c0_i32_0 : i32, i32
  }
  func.func @transform_4(%arg0: i32) -> (i32, i32) {
    %c0_i32 = arith.constant 0 : i32
    %c0_i32_0 = arith.constant 0 : i32
    %c0_i32_1 = arith.constant 0 : i32
    return %c0_i32, %c0_i32_0 : i32, i32
  }
  func.func @transform_5(%arg0: i32) -> (i32, i32) {
    %c0_i32 = arith.constant 0 : i32
    %c0_i32_0 = arith.constant 0 : i32
    %c0_i32_1 = arith.constant 0 : i32
    return %c0_i32, %c0_i32_0 : i32, i32
  }
  func.func @transform_6(%arg0: i32) -> (i32, i32) {
    %c0_i32 = arith.constant 0 : i32
    %c0_i32_0 = arith.constant 0 : i32
    %c0_i32_1 = arith.constant 0 : i32
    return %c0_i32, %c0_i32_0 : i32, i32
  }
  func.func @transform_7(%arg0: i32) -> (i32, i32) {
    %c0_i32 = arith.constant 0 : i32
    %c0_i32_0 = arith.constant 0 : i32
    %c0_i32_1 = arith.constant 0 : i32
    return %c0_i32, %c0_i32_0 : i32, i32
  }
  func.func @transform_8(%arg0: i32) -> (i32, i32) {
    %c0_i32 = arith.constant 0 : i32
    %c0_i32_0 = arith.constant 0 : i32
    %c0_i32_1 = arith.constant 0 : i32
    return %c0_i32, %c0_i32_0 : i32, i32
  }
  func.func @transform_9(%arg0: i32) -> (i32, i32, i32) {
    %c0_i32 = arith.constant 0 : i32
    %c0_i32_0 = arith.constant 0 : i32
    %c0_i32_1 = arith.constant 0 : i32
    return %arg0, %c0_i32, %c0_i32_0 : i32, i32, i32
  }
}

</mosaic_0001>

<bundles_post_ra>
// kernel: discriminator_forward.1
= control target key start
LH: loop header
LB: loop body
LE: loop exit
PB: predicated region body
PF: predicated region fallthrough
CT: control target
= control target key end

     0   :  { %s4912_s11 = smov 0   ;;  %s6623_s0 = inlined_call_operand.vmem [shape: f32[256,784], index: 0, kind: input, shape index: {}]   ;;  %s6624_s1 = inlined_call_operand.vmem [shape: bf16[784,512], index: 1, kind: input, shape index: {}]   ;;  %s6625_s2 = inlined_call_operand.vmem [shape: f32[1,512], index: 2, kind: input, shape index: {}]   ;;  %s6626_s3 = inlined_call_operand.vmem [shape: bf16[512,256], index: 3, kind: input, shape index: {}]   ;;  %s6627_s4 = inlined_call_operand.vmem [shape: f32[1,256], index: 4, kind: input, shape index: {}]   ;;  %s6628_s5 = inlined_call_operand.vmem [shape: bf16[256,128], index: 5, kind: input, shape index: {}]   ;;  %s6629_s6 = inlined_call_operand.vmem [shape: f32[1,128], index: 6, kind: input, shape index: {}]   ;;  %s6630_s7 = inlined_call_operand.vmem [shape: f32[1,128], index: 7, kind: input, shape index: {}]   ;;  %s6631_s8 = inlined_call_operand.<no memory space> [shape: f32[1,1], index: 8, kind: input, shape index: {}]   ;;  %s6632_s9 = inlined_call_operand.vmem [shape: f32[2,1,128], index: 9, kind: output, shape index: {}]  }
   0x1   :  { %v14_v0 = vstv %s6631_s8 }
   0x2   :  { %15 = vst [vmem:[#allocation2] sm:$0x1] %v14_v0 }
   0x3 LB: > { %s4918_s12 = sadd.s32 4294967295, %s4854_s11   ;;  %p4009_p0 = scmp.ge.s32.totalorder %s4854_s11, 1  ;;  %s4854_s11 = sphi %s4912_s11, %s21_s11  }
   0x4   : > { %p291_p1 = scmp.lt.s32.totalorder %s4854_s11, 3 }
   0x6   : > { %p292_p2 = pnand %p4009_p0, %p291_p1 }
   0x8   : > { %295 = sbr.rel (%p292_p2) target bundleno = 1240 (0x4d8), region = 56 }
   0xd   : > { %v4437_v1 = vld [vmem:[%s6624_s1 + $0xe4] ss:$16 sps:$4 sm:$0xff]   ;;  %v6634_v3 = vmov 0   ;;  %v4441_v4 = vld [vmem:[%s6624_s1 + $0xe0] ss:$16 sps:$4 sm:$0xff]   ;;  %s4010_s30 = sshll.u32 %s4918_s12, 4 }
   0xe   : > { %v4439_v2 = vld [vmem:[%s6624_s1 + $0x2e4] ss:$16 sps:$4 sm:$0xff]   ;;  %4436 = vset.pattern.permute.xlu0 %v6634_v3  ;;  %1728 = vmatprep.subr.bf16.mxu0 %v4437_v1  ;;  %v4442_v5 = vld [vmem:[%s6624_s1 + $0x2e0] ss:$16 sps:$4 sm:$0xff]   ;;  %p327_p3 = scmp.lt.s32.totalorder %s4010_s30, 31  ;;  %vm1703_vm0 = vcmask 130048  }
   0xf   : > { %1841 = vmatprep.subr.bf16.mxu1 %v4439_v2  ;;  %v4443_v6 = vld [vmem:[%s6624_s1 + $0xc4] ss:$16 sps:$4 sm:$0xff]   ;;  %1729 = vmatpush1.bf16.msra.mxu0 %v4441_v4  ;;  %v4447_v8 = vld [vmem:[%s6624_s1 + $0xc0] ss:$16 sps:$4 sm:$0xff]   ;;  %p333_p4 = scmp.lt.s32.totalorder %s4918_s12, 1 }
  0x10   : > { %1842 = vmatpush1.bf16.msra.mxu1 %v4442_v5  ;;  %v4445_v7 = vld [vmem:[%s6624_s1 + $0x2c4] ss:$16 sps:$4 sm:$0xff]   ;;  %1730 = vmatprep.subr.bf16.mxu0 %v4443_v6  ;;  %v4448_v9 = vld [vmem:[%s6624_s1 + $0x2c0] ss:$16 sps:$4 sm:$0xff]   ;;  %s6655_s30 = smov (!%p327_p3, %s4010_s30), 31 }
  0x11   : > { %1843 = vmatprep.subr.bf16.mxu1 %v4445_v7  ;;  %v4449_v10 = vld [vmem:[%s6624_s1 + $0xa4] ss:$16 sps:$4 sm:$0xff]   ;;  %v4453_v12 = vld [vmem:[%s6624_s1 + $0xa0] ss:$16 sps:$4 sm:$0xff]   ;;  %s4424_s13 = smul.u32 56, %s6655_s30  ;;  %s6657_s12 = smov (!%p333_p4, %s4918_s12), 1 }
  0x12   : > { %v4451_v11 = vld [vmem:[%s6624_s1 + $0x2a4] ss:$16 sps:$4 sm:$0xff]   ;;  %v4454_v13 = vld [vmem:[%s6624_s1 + $0x2a0] ss:$16 sps:$4 sm:$0xff]   ;;  %s335_s14 = scalar_lea.vmem %s6632_s9, %s6657_s12 }
  0x13   : > { %1731 = vmatpush1.bf16.msra.mxu0 %v4447_v8  ;;  %v4455_v14 = vld [vmem:[%s6624_s1 + $0x84] ss:$16 sps:$4 sm:$0xff]   ;;  %v4459_v16 = vld [vmem:[%s6624_s1 + $0x80] ss:$16 sps:$4 sm:$0xff]   ;;  %s5059_s24 = scalar_lea.vmem %s6623_s0, %s4424_s13 }
  0x14   : > { %1844 = vmatpush1.bf16.msra.mxu1 %v4448_v9  ;;  %1732 = vmatprep.subr.bf16.mxu0 %v4449_v10  ;;  %v4457_v15 = vld [vmem:[%s6624_s1 + $0x284] ss:$16 sps:$4 sm:$0xff]   ;;  %v4460_v17 = vld [vmem:[%s6624_s1 + $0x280] ss:$16 sps:$4 sm:$0xff]   ;;  %v338_v48 = vld [vmem:[%s5059_s24 + $0x8] sm:$0xff] }
  0x15   : > { %1845 = vmatprep.subr.bf16.mxu1 %v4451_v11  ;;  %v4461_v18 = vld [vmem:[%s6624_s1 + $0x64] ss:$16 sps:$4 sm:$0xff]   ;;  %v4465_v20 = vld [vmem:[%s6624_s1 + $0x60] ss:$16 sps:$4 sm:$0xff]   ;;  %v340_v50 = vld [vmem:[%s5059_s24 + $0x18] sm:$0xff] }
  0x16   : > { %v4463_v19 = vld [vmem:[%s6624_s1 + $0x264] ss:$16 sps:$4 sm:$0xff]   ;;  %v4466_v21 = vld [vmem:[%s6624_s1 + $0x260] ss:$16 sps:$4 sm:$0xff]   ;;  %v344_v10 = vld [vmem:[%s5059_s24 + $0x38] sm:$0xff] }
  0x17   : > { %1733 = vmatpush1.bf16.msra.mxu0 %v4453_v12  ;;  %v4467_v22 = vld [vmem:[%s6624_s1 + $0x44] ss:$16 sps:$4 sm:$0xff]   ;;  %v4471_v24 = vld [vmem:[%s6624_s1 + $0x40] ss:$16 sps:$4 sm:$0xff]   ;;  %v346_v12 = vld [vmem:[%s5059_s24 + $0x48] sm:$0xff] }
  0x18   : > { %1846 = vmatpush1.bf16.msra.mxu1 %v4454_v13  ;;  %1734 = vmatprep.subr.bf16.mxu0 %v4455_v14  ;;  %v4469_v23 = vld [vmem:[%s6624_s1 + $0x244] ss:$16 sps:$4 sm:$0xff]   ;;  %v4472_v25 = vld [vmem:[%s6624_s1 + $0x240] ss:$16 sps:$4 sm:$0xff]  }
  0x19   : > { %1847 = vmatprep.subr.bf16.mxu1 %v4457_v15  ;;  %v4473_v26 = vld [vmem:[%s6624_s1 + $0x24] ss:$16 sps:$4 sm:$0xff]   ;;  %v4477_v28 = vld [vmem:[%s6624_s1 + $0x20] ss:$16 sps:$4 sm:$0xff]  }
  0x1a   : > { %v4475_v27 = vld [vmem:[%s6624_s1 + $0x224] ss:$16 sps:$4 sm:$0xff]   ;;  %v4478_v29 = vld [vmem:[%s6624_s1 + $0x220] ss:$16 sps:$4 sm:$0xff]  }
  0x1b   : > { %1735 = vmatpush1.bf16.msra.mxu0 %v4459_v16  ;;  %v4479_v30 = vld [vmem:[%s6624_s1 + $0x4] ss:$16 sps:$4 sm:$0xff]   ;;  %v4483_v32 = vld [vmem:[%s6624_s1] ss:$16 sps:$4 sm:$0xff]   ;;  %v352_v16 = vld [vmem:[%s5059_s24 + $0x78] sm:$0xff] }
  0x1c   : > { %1848 = vmatpush1.bf16.msra.mxu1 %v4460_v17  ;;  %1736 = vmatprep.subr.bf16.mxu0 %v4461_v18  ;;  %v4481_v31 = vld [vmem:[%s6624_s1 + $0x204] ss:$16 sps:$4 sm:$0xff]   ;;  %v4484_v33 = vld [vmem:[%s6624_s1 + $0x200] ss:$16 sps:$4 sm:$0xff]  }
  0x1d   : > { %1849 = vmatprep.subr.bf16.mxu1 %v4463_v19  ;;  %v4485_v34 = vld [vmem:[%s6624_s1 + $0x1e4] ss:$16 sps:$4 sm:$0xff]   ;;  %v4489_v36 = vld [vmem:[%s6624_s1 + $0x1e0] ss:$16 sps:$4 sm:$0xff]  }
  0x1e   : > { %v4487_v35 = vld [vmem:[%s6624_s1 + $0x3e4] ss:$16 sps:$4 sm:$0xff]   ;;  %v4490_v37 = vld [vmem:[%s6624_s1 + $0x3e0] ss:$16 sps:$4 sm:$0xff]  }
  0x1f   : > { %1737 = vmatpush1.bf16.msra.mxu0 %v4465_v20  ;;  %v4491_v38 = vld [vmem:[%s6624_s1 + $0x1c4] ss:$16 sps:$4 sm:$0xff]   ;;  %v4495_v40 = vld [vmem:[%s6624_s1 + $0x1c0] ss:$16 sps:$4 sm:$0xff]   ;;  %v354_v20 = vld [vmem:[%s5059_s24 + $0x88] sm:$0xff] }
  0x20   : > { %1850 = vmatpush1.bf16.msra.mxu1 %v4466_v21  ;;  %1738 = vmatprep.subr.bf16.mxu0 %v4467_v22  ;;  %v4493_v39 = vld [vmem:[%s6624_s1 + $0x3c4] ss:$16 sps:$4 sm:$0xff]   ;;  %v4496_v41 = vld [vmem:[%s6624_s1 + $0x3c0] ss:$16 sps:$4 sm:$0xff]  }
  0x21   : > { %1851 = vmatprep.subr.bf16.mxu1 %v4469_v23  ;;  %v4497_v42 = vld [vmem:[%s6624_s1 + $0x1a4] ss:$16 sps:$4 sm:$0xff]   ;;  %v4501_v44 = vld [vmem:[%s6624_s1 + $0x1a0] ss:$16 sps:$4 sm:$0xff]  }
  0x22   : > { %v4499_v43 = vld [vmem:[%s6624_s1 + $0x3a4] ss:$16 sps:$4 sm:$0xff]   ;;  %v4502_v45 = vld [vmem:[%s6624_s1 + $0x3a0] ss:$16 sps:$4 sm:$0xff]  }
  0x23   : > { %1739 = vmatpush1.bf16.msra.mxu0 %v4471_v24  ;;  %v4503_v46 = vld [vmem:[%s6624_s1 + $0x184] ss:$16 sps:$4 sm:$0xff]   ;;  %v4507_v52 = vld [vmem:[%s6624_s1 + $0x180] ss:$16 sps:$4 sm:$0xff]  }
  0x24   : > { %1852 = vmatpush1.bf16.msra.mxu1 %v4472_v25  ;;  %1740 = vmatprep.subr.bf16.mxu0 %v4473_v26  ;;  %v4505_v47 = vld [vmem:[%s6624_s1 + $0x384] ss:$16 sps:$4 sm:$0xff]   ;;  %v4508_v53 = vld [vmem:[%s6624_s1 + $0x380] ss:$16 sps:$4 sm:$0xff]  }
  0x25   : > { %1853 = vmatprep.subr.bf16.mxu1 %v4475_v27  ;;  %v345_v49 = vld [vmem:[%s5059_s24 + $0x40] sm:$0xff]  ;;  %v347_v51 = vld [vmem:[%s5059_s24 + $0x50] sm:$0xff] }
  0x26   : > { %v4509_v54 = vld [vmem:[%s6624_s1 + $0x164] ss:$16 sps:$4 sm:$0xff]   ;;  %v5080_v55 = vpack.c.bf16 %v345_v49, %v338_v48  ;;  %v5082_v56 = vpack.c.bf16 %v347_v51, %v340_v50  ;;  %v4513_v58 = vld [vmem:[%s6624_s1 + $0x160] ss:$16 sps:$4 sm:$0xff]   ;;  %v380_v48 = vld [vmem:[%s5059_s24 + $0x158] sm:$0xff] }
  0x27   : > { %1741 = vmatpush1.bf16.msra.mxu0 %v4477_v28  ;;  %v4511_v57 = vld [vmem:[%s6624_s1 + $0x364] ss:$16 sps:$4 sm:$0xff]   ;;  %v4514_v59 = vld [vmem:[%s6624_s1 + $0x360] ss:$16 sps:$4 sm:$0xff]   ;;  %v358_v28 = vld [vmem:[%s5059_s24 + $0xa8] sm:$0xff] }
  0x28   : > { %1854 = vmatpush1.bf16.msra.mxu1 %v4478_v29  ;;  %1742 = vmatprep.subr.bf16.mxu0 %v4479_v30  ;;  %v4515_v60 = vld [vmem:[%s6624_s1 + $0x144] ss:$16 sps:$4 sm:$0xff]   ;;  %v4519_v62 = vld [vmem:[%s6624_s1 + $0x140] ss:$16 sps:$4 sm:$0xff]   ;;  %v360_v30 = vld [vmem:[%s5059_s24 + $0xb8] sm:$0xff] }
  0x29   : > { %1855 = vmatprep.subr.bf16.mxu1 %v4481_v31  ;;  %1760 = vmatprep.mubr.bf16.mxu0 %v5080_v55  ;;  %v4517_v61 = vld [vmem:[%s6624_s1 + $0x344] ss:$16 sps:$4 sm:$0xff]   ;;  %v4520_v63 = vld [vmem:[%s6624_s1 + $0x340] ss:$16 sps:$4 sm:$0xff]   ;;  %v382_v50 = vld [vmem:[%s5059_s24 + $0x168] sm:$0xff] }
  0x2a   : > { %1873 = vmatprep.mubr.bf16.mxu1 %v5082_v56  ;;  %v4521_v0 = vld [vmem:[%s6624_s1 + $0x124] ss:$16 sps:$4 sm:$0xff]   ;;  %v4525_v2 = vld [vmem:[%s6624_s1 + $0x120] ss:$16 sps:$4 sm:$0xff]  }
  0x2b   : > { %1743 = vmatpush1.bf16.msra.mxu0 %v4483_v32  ;;  %v4523_v1 = vld [vmem:[%s6624_s1 + $0x324] ss:$16 sps:$4 sm:$0xff]   ;;  %v4526_v4 = vld [vmem:[%s6624_s1 + $0x320] ss:$16 sps:$4 sm:$0xff]   ;;  %v366_v32 = vld [vmem:[%s5059_s24 + $0xe8] sm:$0xff] }
  0x2c   : > { %1856 = vmatpush1.bf16.msra.mxu1 %v4484_v33  ;;  %1744 = vmatprep.subr.bf16.mxu0 %v4485_v34  ;;  %v4527_v5 = vld [vmem:[%s6624_s1 + $0x104] ss:$16 sps:$4 sm:$0xff]   ;;  %v4531_v7 = vld [vmem:[%s6624_s1 + $0x100] ss:$16 sps:$4 sm:$0xff]   ;;  %v368_v34 = vld [vmem:[%s5059_s24 + $0xf8] sm:$0xff] }
  0x2d   : > { %1857 = vmatprep.subr.bf16.mxu1 %v4487_v35  ;;  %v4529_v6 = vld [vmem:[%s6624_s1 + $0x304] ss:$16 sps:$4 sm:$0xff]   ;;  %v4532_v8 = vld [vmem:[%s6624_s1 + $0x300] ss:$16 sps:$4 sm:$0xff]  }
  0x2e   : > { %v337_v9 = vld [vmem:[%s5059_s24] sm:$0xff]  ;;  %v339_v11 = vld [vmem:[%s5059_s24 + $0x10] sm:$0xff] }
  0x2f   : > { %1745 = vmatpush2.bf16.msra.mxu0 %v4489_v36  ;;  %v4535_v13 = vld [vmem:[%s6624_s1 + $0x4e4] ss:$16 sps:$4 sm:$0xff]   ;;  %v4533_v15 = vld [vmem:[%s6624_s1 + $0x4e0] ss:$16 sps:$4 sm:$0xff]   ;;  %v5146_v18 = vpack.c.bf16 %v344_v10, %v337_v9  ;;  %v5148_v19 = vpack.c.bf16 %v346_v12, %v339_v11 }
  0x30   : > { %1858 = vmatpush2.bf16.msra.mxu1 %v4490_v37  ;;  %1746 = vmatprep.subr.bf16.mxu0 %v4491_v38  ;;  %v4538_v14 = vld [vmem:[%s6624_s1 + $0x604] ss:$16 sps:$4 sm:$0xff]   ;;  %v4536_v22 = vld [vmem:[%s6624_s1 + $0x600] ss:$16 sps:$4 sm:$0xff]  }
  0x31   : > { %1859 = vmatprep.subr.bf16.mxu1 %v4493_v39  ;;  %v359_v17 = vld [vmem:[%s5059_s24 + $0xb0] sm:$0xff]  ;;  %v361_v21 = vld [vmem:[%s5059_s24 + $0xc0] sm:$0xff] }
  0x32   : > { %v4541_v23 = vld [vmem:[%s6624_s1 + $0x4c4] ss:$16 sps:$4 sm:$0xff]   ;;  %v5158_v24 = vpack.c.bf16 %v359_v17, %v352_v16  ;;  %v4539_v25 = vld [vmem:[%s6624_s1 + $0x4c0] ss:$16 sps:$4 sm:$0xff]   ;;  %v5163_v26 = vpack.c.bf16 %v361_v21, %v354_v20  ;;  %v4589_v17 = vld [vmem:[%s6624_s1 + $0x2ec] ss:$16 sps:$4 sm:$0xff]  }
  0x33   : > { %1747 = vmatpush2.bf16.msra.mxu0 %v4495_v40  ;;  %v351_v27 = vld [vmem:[%s5059_s24 + $0x70] sm:$0xff]  ;;  %v353_v29 = vld [vmem:[%s5059_s24 + $0x80] sm:$0xff]  ;;  %v402_v20 = vld [vmem:[%s5059_s24 + $0x208] sm:$0xff] }
  0x34   : > { %1860 = vmatpush2.bf16.msra.mxu1 %v4496_v41  ;;  %1748 = vmatprep.subr.bf16.mxu0 %v4497_v42  ;;  %v4544_v31 = vld [vmem:[%s6624_s1 + $0x4a4] ss:$16 sps:$4 sm:$0xff]   ;;  %v5180_v36 = vpack.c.bf16 %v358_v28, %v351_v27  ;;  %v5182_v37 = vpack.c.bf16 %v360_v30, %v353_v29  ;;  %v4542_v38 = vld [vmem:[%s6624_s1 + $0x4a0] ss:$16 sps:$4 sm:$0xff]  }
  0x35   : > { %1861 = vmatprep.subr.bf16.mxu1 %v4499_v43  ;;  %v373_v33 = vld [vmem:[%s5059_s24 + $0x120] sm:$0xff]  ;;  %v375_v35 = vld [vmem:[%s5059_s24 + $0x130] sm:$0xff] }
  0x36   : > { %v5187_v39 = vpack.c.bf16 %v373_v33, %v366_v32  ;;  %v4547_v40 = vld [vmem:[%s6624_s1 + $0x484] ss:$16 sps:$4 sm:$0xff]   ;;  %v5192_v41 = vpack.c.bf16 %v375_v35, %v368_v34  ;;  %v4545_v42 = vld [vmem:[%s6624_s1 + $0x480] ss:$16 sps:$4 sm:$0xff]  }
  0x37   : > { %1749 = vmatpush2.bf16.msra.mxu0 %v4501_v44  ;;  %v365_v43 = vld [vmem:[%s5059_s24 + $0xe0] sm:$0xff]  ;;  %v372_v44 = vld [vmem:[%s5059_s24 + $0x118] sm:$0xff]  ;;  %v387_v49 = vld [vmem:[%s5059_s24 + $0x190] sm:$0xff] }
  0x38   : > { %1862 = vmatpush2.bf16.msra.mxu1 %v4502_v45  ;;  %1750 = vmatprep.subr.bf16.mxu0 %v4503_v46  ;;  %v367_v45 = vld [vmem:[%s5059_s24 + $0xf0] sm:$0xff]  ;;  %v374_v46 = vld [vmem:[%s5059_s24 + $0x128] sm:$0xff]  ;;  %v389_v51 = vld [vmem:[%s5059_s24 + $0x1a0] sm:$0xff] }
  0x39   : > { %1863 = vmatprep.subr.bf16.mxu1 %v4505_v47  ;;  %v4550_v47 = vld [vmem:[%s6624_s1 + $0x464] ss:$16 sps:$4 sm:$0xff]   ;;  %v4554_v9 = vld [vmem:[%s6624_s1 + $0x420] ss:$16 sps:$4 sm:$0xff]  }
  0x3a   : > { %v4559_v11 = vld [vmem:[%s6624_s1 + $0x404] ss:$16 sps:$4 sm:$0xff]   ;;  %v4560_v30 = vld [vmem:[%s6624_s1 + $0x5e0] ss:$16 sps:$4 sm:$0xff]  }
  0x3b   : > { %1751 = vmatpush2.bf16.msra.mxu0 %v4507_v52  ;;  %v5212_v52 = vpack.c.bf16 %v372_v44, %v365_v43  ;;  %v395_v16 = vld [vmem:[%s5059_s24 + $0x1d0] sm:$0xff]  ;;  %v417_v27 = vld [vmem:[%s5059_s24 + $0x280] sm:$0xff]  ;;  %v422_v44 = vld [vmem:[%s5059_s24 + $0x2a8] sm:$0xff] }
  0x3c   : > { %1864 = vmatpush2.bf16.msra.mxu1 %v4508_v53  ;;  %1752 = vmatprep.subr.bf16.mxu0 %v4509_v54  ;;  %v5214_v53 = vpack.c.bf16 %v374_v46, %v367_v45  ;;  %v4548_v54 = vld [vmem:[%s6624_s1 + $0x460] ss:$16 sps:$4 sm:$0xff]   ;;  %v4562_v21 = vld [vmem:[%s6624_s1 + $0x5e4] ss:$16 sps:$4 sm:$0xff]   ;;  %v5281_v29 = vpack.c.bf16 %v402_v20, %v395_v16  ;;  %v424_v46 = vld [vmem:[%s5059_s24 + $0x2b8] sm:$0xff] }
  0x3d   : > { %1865 = vmatprep.subr.bf16.mxu1 %v4511_v57  ;;  %v5219_v57 = vpack.c.bf16 %v387_v49, %v380_v48  ;;  %v4565_v32 = vld [vmem:[%s6624_s1 + $0x5c4] ss:$16 sps:$4 sm:$0xff]   ;;  %v4563_v34 = vld [vmem:[%s6624_s1 + $0x5c0] ss:$16 sps:$4 sm:$0xff]  }
  0x3e   : > { %v407_v35 = vld [vmem:[%s5059_s24 + $0x230] sm:$0xff]  ;;  %v429_v45 = vld [vmem:[%s5059_s24 + $0x2e0] sm:$0xff] }
  0x3f   : > { %1753 = vmatpush2.bf16.msra.mxu0 %v4513_v58  ;;  %v4553_v58 = vld [vmem:[%s6624_s1 + $0x444] ss:$16 sps:$4 sm:$0xff]  }
  0x40   : > { %1866 = vmatpush2.bf16.msra.mxu1 %v4514_v59  ;;  %1754 = vmatprep.subr.bf16.mxu0 %v4515_v60  ;;  %v5224_v59 = vpack.c.bf16 %v389_v51, %v382_v50  ;;  %v4551_v60 = vld [vmem:[%s6624_s1 + $0x440] ss:$16 sps:$4 sm:$0xff]   ;;  %v4568_v43 = vld [vmem:[%s6624_s1 + $0x5a4] ss:$16 sps:$4 sm:$0xff]   ;;  %v5318_v51 = vpack.c.bf16 %v429_v45, %v422_v44  ;;  %v348_v44 = vld [vmem:[%s5059_s24 + $0x58] sm:$0xff] }
  0x41   : > { %1867 = vmatprep.subr.bf16.mxu1 %v4517_v61  ;;  %v379_v61 = vld [vmem:[%s5059_s24 + $0x150] sm:$0xff] }
  0x42   : > { %v4566_v50 = vld [vmem:[%s6624_s1 + $0x5a0] ss:$16 sps:$4 sm:$0xff]  }
  0x43   : > { %1755 = vmatpush2.bf16.msra.mxu0 %v4519_v62  ;;  %v386_v62 = vld [vmem:[%s5059_s24 + $0x188] sm:$0xff]  ;;  %v435_v20 = vld [vmem:[%s5059_s24 + $0x310] sm:$0xff] }
  0x44   : > { %1868 = vmatpush2.bf16.msra.mxu1 %v4520_v63  ;;  %1756 = vmatprep.subr.bf16.mxu0 %v4521_v0  ;;  %v381_v63 = vld [vmem:[%s5059_s24 + $0x160] sm:$0xff]  ;;  %v388_v0 = vld [vmem:[%s5059_s24 + $0x198] sm:$0xff]  ;;  %v343_v45 = vld [vmem:[%s5059_s24 + $0x30] sm:$0xff] }
  0x45   : > { %1869 = vmatprep.subr.bf16.mxu1 %v4523_v1  ;;  %v4556_v1 = vld [vmem:[%s6624_s1 + $0x424] ss:$16 sps:$4 sm:$0xff]  }
  0x47   : > { %1757 = vmatpush2.bf16.msra.mxu0 %v4525_v2  ;;  %v394_v2 = vld [vmem:[%s5059_s24 + $0x1c8] sm:$0xff] }
  0x48   : > { %1870 = vmatpush2.bf16.msra.mxu1 %v4526_v4  ;;  %1758 = vmatprep.subr.bf16.mxu0 %v4527_v5  ;;  %v401_v4 = vld [vmem:[%s5059_s24 + $0x200] sm:$0xff]  ;;  %v396_v5 = vld [vmem:[%s5059_s24 + $0x1d8] sm:$0xff] }
  0x49   : > { %1871 = vmatprep.subr.bf16.mxu1 %v4529_v6  ;;  %v403_v6 = vld [vmem:[%s5059_s24 + $0x210] sm:$0xff]  ;;  %v5251_v10 = vpack.c.bf16 %v401_v4, %v394_v2  ;;  %v436_v2 = vld [vmem:[%s5059_s24 + $0x318] sm:$0xff] }
  0x4a   : > { %v5256_v12 = vpack.c.bf16 %v403_v6, %v396_v5  ;;  %v443_v4 = vld [vmem:[%s5059_s24 + $0x350] sm:$0xff]  ;;  %v438_v5 = vld [vmem:[%s5059_s24 + $0x328] sm:$0xff]  ;;  %v445_v6 = vld [vmem:[%s5059_s24 + $0x360] sm:$0xff] }
  0x4b   : > { %1759 = vmatpush2.bf16.msra.mxu0 %v4531_v7  ;;  %v5244_v7 = vpack.c.bf16 %v386_v62, %v379_v61  ;;  %v421_v61 = vld [vmem:[%s5059_s24 + $0x2a0] sm:$0xff]  ;;  %v428_v62 = vld [vmem:[%s5059_s24 + $0x2d8] sm:$0xff]  ;;  %v5355_v16 = vpack.c.bf16 %v445_v6, %v438_v5  ;;  %v355_v6 = vld [vmem:[%s5059_s24 + $0x90] sm:$0xff] }
  0x4c   : > { %1872 = vmatpush2.bf16.msra.mxu1 %v4532_v8  ;;  %1954 = vmatprep.subr.bf16.mxu0 %v4535_v13  ;;  %v5246_v8 = vpack.c.bf16 %v388_v0, %v381_v63  ;;  %v4557_v13 = vld [vmem:[%s6624_s1 + $0x400] ss:$16 sps:$4 sm:$0xff]   ;;  %v430_v0 = vld [vmem:[%s5059_s24 + $0x2e8] sm:$0xff] }
  0x4d   : > { %2081 = vmatprep.subr.bf16.mxu1 %v4538_v14  ;;  %v393_v14 = vld [vmem:[%s5059_s24 + $0x1c0] sm:$0xff]  ;;  %v423_v63 = vld [vmem:[%s5059_s24 + $0x2b0] sm:$0xff]  ;;  %v4593_v5 = vld [vmem:[%s6624_s1 + $0x2c8] ss:$16 sps:$4 sm:$0xff]  }
  0x4e   : > { %1761 = vmatmul.mubr.bf16.vlgmr.msra.gmra.mxu0 %v5146_v18 }
  0x4f   : > { %1874 = vmatmul.mubr.bf16.vlgmr.msra.gmra.mxu1 %v5148_v19  ;;  %1955 = vmatpush1.bf16.msra.mxu0 %v4533_v15  ;;  %v400_v15 = vld [vmem:[%s5059_s24 + $0x1f8] sm:$0xff] }
  0x50   : > { %2082 = vmatpush1.bf16.msra.mxu1 %v4536_v22  ;;  %1956 = vmatprep.subr.bf16.mxu0 %v4541_v23  ;;  %v408_v22 = vld [vmem:[%s5059_s24 + $0x238] sm:$0xff]  ;;  %v415_v23 = vld [vmem:[%s5059_s24 + $0x270] sm:$0xff]  ;;  %v5279_v28 = vpack.c.bf16 %v400_v15, %v393_v14  ;;  %v5350_v14 = vpack.c.bf16 %v443_v4, %v436_v2 }
  0x51   : > { %1770 = vmatprep.mubr.bf16.mxu0 %v5158_v24  ;;  %1883 = vmatprep.mubr.bf16.mxu1 %v5163_v26  ;;  %v4577_v15 = vld [vmem:[%s6624_s1 + $0x544] ss:$16 sps:$4 sm:$0xff]   ;;  %v4590_v2 = vld [vmem:[%s6624_s1 + $0xc8] ss:$16 sps:$4 sm:$0xff]  }
  0x52   : > { %2293 = vmatprep.subr.bf16.mxu1 %v4589_v17  ;;  %v4575_v17 = vld [vmem:[%s6624_s1 + $0x540] ss:$16 sps:$4 sm:$0xff]  }
  0x53   : > { %1957 = vmatpush1.bf16.msra.mxu0 %v4539_v25  ;;  %v410_v25 = vld [vmem:[%s5059_s24 + $0x248] sm:$0xff] }
  0x54   : > { %1958 = vmatprep.subr.bf16.mxu0 %v4544_v31  ;;  %v5286_v31 = vpack.c.bf16 %v415_v23, %v408_v22  ;;  %v5291_v33 = vpack.c.bf16 %v417_v27, %v410_v25  ;;  %v437_v22 = vld [vmem:[%s5059_s24 + $0x320] sm:$0xff]  ;;  %v444_v23 = vld [vmem:[%s5059_s24 + $0x358] sm:$0xff]  ;;  %v342_v27 = vld [vmem:[%s5059_s24 + $0x28] sm:$0xff] }
  0x55   : > { %v4580_v25 = vld [vmem:[%s6624_s1 + $0x524] ss:$16 sps:$4 sm:$0xff]  }
  0x56   : > { %1771 = vmatmul.mubr.bf16.gmra.mxu0 %v5180_v36 }
  0x57   : > { %1884 = vmatmul.mubr.bf16.gmra.mxu1 %v5182_v37  ;;  %1959 = vmatpush1.bf16.msra.mxu0 %v4542_v38  ;;  %v414_v38 = vld [vmem:[%s5059_s24 + $0x268] sm:$0xff] }
  0x58   : > { %1780 = vmatprep.mubr.bf16.mxu0 %v5187_v39  ;;  %1960 = vmatprep.subr.bf16.mxu0 %v4547_v40  ;;  %v409_v40 = vld [vmem:[%s5059_s24 + $0x240] sm:$0xff]  ;;  %v5311_v48 = vpack.c.bf16 %v414_v38, %v407_v35 }
  0x59   : > { %1893 = vmatprep.mubr.bf16.mxu1 %v5192_v41  ;;  %v4578_v35 = vld [vmem:[%s6624_s1 + $0x520] ss:$16 sps:$4 sm:$0xff]  }
  0x5b   : > { %1961 = vmatpush1.bf16.msra.mxu0 %v4545_v42  ;;  %v416_v42 = vld [vmem:[%s5059_s24 + $0x278] sm:$0xff] }
  0x5c   : > { %1962 = vmatprep.subr.bf16.mxu0 %v4550_v47  ;;  %v431_v47 = vld [vmem:[%s5059_s24 + $0x2f0] sm:$0xff]  ;;  %v5313_v49 = vpack.c.bf16 %v416_v42, %v409_v40 }
  0x5d   : > { %v4583_v40 = vld [vmem:[%s6624_s1 + $0x504] ss:$16 sps:$4 sm:$0xff]   ;;  %v4581_v42 = vld [vmem:[%s6624_s1 + $0x500] ss:$16 sps:$4 sm:$0xff]  }
  0x5e   : > { %1781 = vmatmul.mubr.bf16.gmra.mxu0 %v5212_v52 }
  0x5f   : > { %1894 = vmatmul.mubr.bf16.gmra.mxu1 %v5214_v53  ;;  %1963 = vmatpush1.bf16.msra.mxu0 %v4548_v54  ;;  %v4571_v54 = vld [vmem:[%s6624_s1 + $0x584] ss:$16 sps:$4 sm:$0xff]  }
  0x60   : > { %1790 = vmatprep.mubr.bf16.mxu0 %v5219_v57  ;;  %1964 = vmatprep.subr.bf16.mxu0 %v4553_v58  ;;  %v5323_v58 = vpack.c.bf16 %v431_v47, %v424_v46  ;;  %v350_v46 = vld [vmem:[%s5059_s24 + $0x68] sm:$0xff] }
  0x61   : > { %1903 = vmatprep.mubr.bf16.mxu1 %v5224_v59  ;;  %v4586_v47 = vld [vmem:[%s6624_s1 + $0xec] ss:$16 sps:$4 sm:$0xff]  }
  0x63   : > { %1965 = vmatpush1.bf16.msra.mxu0 %v4551_v60  ;;  %v4569_v60 = vld [vmem:[%s6624_s1 + $0x580] ss:$16 sps:$4 sm:$0xff]  }
  0x64   : > { %1966 = vmatprep.subr.bf16.mxu0 %v4556_v1  ;;  %v4574_v1 = vld [vmem:[%s6624_s1 + $0x564] ss:$16 sps:$4 sm:$0xff]  }
  0x66   : > { %1791 = vmatmul.mubr.bf16.gmra.mxu0 %v5244_v7 }
  0x67   : > { %1904 = vmatmul.mubr.bf16.gmra.mxu1 %v5246_v8  ;;  %1967 = vmatpush1.bf16.msra.mxu0 %v4554_v9  ;;  %v5343_v9 = vpack.c.bf16 %v428_v62, %v421_v61  ;;  %v5407_v61 = vpack.c.bf16 %v350_v46, %v343_v45  ;;  %v356_v62 = vld [vmem:[%s5059_s24 + $0x98] sm:$0xff]  ;;  %v369_v46 = vld [vmem:[%s5059_s24 + $0x100] sm:$0xff] }
  0x68   : > { %1800 = vmatprep.mubr.bf16.mxu0 %v5251_v10  ;;  %1968 = vmatprep.subr.bf16.mxu0 %v4559_v11  ;;  %v5345_v11 = vpack.c.bf16 %v430_v0, %v423_v63  ;;  %v363_v63 = vld [vmem:[%s5059_s24 + $0xd0] sm:$0xff]  ;;  %v4592_v0 = vld [vmem:[%s6624_s1 + $0xcc] ss:$16 sps:$4 sm:$0xff]  }
  0x69   : > { %1913 = vmatprep.mubr.bf16.mxu1 %v5256_v12  ;;  %v5420_v4 = vpack.c.bf16 %v363_v63, %v356_v62  ;;  %v4610_v62 = vld [vmem:[%s6624_s1 + $0x6c] ss:$16 sps:$4 sm:$0xff]  }
  0x6a   : > { %v4613_v63 = vld [vmem:[%s6624_s1 + $0x26c] ss:$16 sps:$4 sm:$0xff]  }
  0x6b   : > { %1969 = vmatpush1.bf16.msra.mxu0 %v4557_v13  ;;  %v4572_v13 = vld [vmem:[%s6624_s1 + $0x560] ss:$16 sps:$4 sm:$0xff]  }
  0x6c   : > { %1970 = vmatprep.subr.bf16.mxu0 %v4562_v21  ;;  %v442_v21 = vld [vmem:[%s5059_s24 + $0x348] sm:$0xff] }
  0x6e   : > { %1801 = vmatmul.mubr.bf16.gmra.mxu0 %v5279_v28 }
  0x6f   : > { %1914 = vmatmul.mubr.bf16.gmra.mxu1 %v5281_v29  ;;  %1971 = vmatpush2.bf16.msra.mxu0 %v4560_v30  ;;  %v349_v30 = vld [vmem:[%s5059_s24 + $0x60] sm:$0xff] }
  0x70   : > { %1810 = vmatprep.mubr.bf16.mxu0 %v5286_v31  ;;  %1972 = vmatprep.subr.bf16.mxu0 %v4565_v32  ;;  %v5373_v32 = vpack.c.bf16 %v442_v21, %v435_v20  ;;  %v5380_v38 = vpack.c.bf16 %v349_v30, %v342_v27  ;;  %v4598_v20 = vld [vmem:[%s6624_s1 + $0xac] ss:$16 sps:$4 sm:$0xff]   ;;  %v377_v27 = vld [vmem:[%s5059_s24 + $0x140] sm:$0xff]  ;;  %v4596_v30 = vld [vmem:[%s6624_s1 + $0xa8] ss:$16 sps:$4 sm:$0xff]  }
  0x71   : > { %1923 = vmatprep.mubr.bf16.mxu1 %v5291_v33  ;;  %v4601_v21 = vld [vmem:[%s6624_s1 + $0x2ac] ss:$16 sps:$4 sm:$0xff]  }
  0x73   : > { %1973 = vmatpush2.bf16.msra.mxu0 %v4563_v34  ;;  %v5375_v34 = vpack.c.bf16 %v444_v23, %v437_v22  ;;  %v370_v22 = vld [vmem:[%s5059_s24 + $0x108] sm:$0xff] }
  0x74   : > { %1974 = vmatprep.subr.bf16.mxu0 %v4568_v43  ;;  %v341_v43 = vld [vmem:[%s5059_s24 + $0x20] sm:$0xff]  ;;  %v5464_v45 = vpack.c.bf16 %v377_v27, %v370_v22  ;;  %v383_v27 = vld [vmem:[%s5059_s24 + $0x170] sm:$0xff] }
  0x76   : > { %1811 = vmatmul.mubr.bf16.gmra.mxu0 %v5311_v48 }
  0x77   : > { %1924 = vmatmul.mubr.bf16.gmra.mxu1 %v5313_v49  ;;  %1975 = vmatpush2.bf16.msra.mxu0 %v4566_v50  ;;  %v4584_v50 = vld [vmem:[%s6624_s1 + $0xe8] ss:$16 sps:$4 sm:$0xff]  }
  0x78   : > { %1820 = vmatprep.mubr.bf16.mxu0 %v5318_v51  ;;  %1976 = vmatprep.subr.bf16.mxu0 %v4571_v54  ;;  %v4587_v54 = vld [vmem:[%s6624_s1 + $0x2e8] ss:$16 sps:$4 sm:$0xff]  }
  0x79   : > { %1933 = vmatprep.mubr.bf16.mxu1 %v5323_v58 }
  0x7b   : > { %1977 = vmatpush2.bf16.msra.mxu0 %v4569_v60  ;;  %v5405_v60 = vpack.c.bf16 %v348_v44, %v341_v43  ;;  %v4602_v43 = vld [vmem:[%s6624_s1 + $0x88] ss:$16 sps:$4 sm:$0xff]  }
  0x7c   : > { %1978 = vmatprep.subr.bf16.mxu0 %v4574_v1  ;;  %v4595_v1 = vld [vmem:[%s6624_s1 + $0x2cc] ss:$16 sps:$4 sm:$0xff]   ;;  %v4605_v44 = vld [vmem:[%s6624_s1 + $0x288] ss:$16 sps:$4 sm:$0xff]  }
  0x7e   : > { %1821 = vmatmul.mubr.bf16.gmra.mxu0 %v5343_v9 }
  0x7f   : > { %1934 = vmatmul.mubr.bf16.gmra.mxu1 %v5345_v11  ;;  %1979 = vmatpush2.bf16.msra.mxu0 %v4572_v13  ;;  %v362_v13 = vld [vmem:[%s5059_s24 + $0xc8] sm:$0xff] }
  0x80   : > { %1830 = vmatprep.mubr.bf16.mxu0 %v5350_v14  ;;  %1980 = vmatprep.subr.bf16.mxu0 %v4577_v15  ;;  %v357_v15 = vld [vmem:[%s5059_s24 + $0xa0] sm:$0xff]  ;;  %v5441_v23 = vpack.c.bf16 %v362_v13, %v355_v6  ;;  %v384_v6 = vld [vmem:[%s5059_s24 + $0x178] sm:$0xff]  ;;  %v391_v13 = vld [vmem:[%s5059_s24 + $0x1b0] sm:$0xff] }
  0x81   : > { %1943 = vmatprep.mubr.bf16.mxu1 %v5355_v16  ;;  %v5505_v22 = vpack.c.bf16 %v391_v13, %v384_v6  ;;  %v4629_v6 = vld [vmem:[%s6624_s1 + $0x208] ss:$16 sps:$4 sm:$0xff]  }
  0x83   : > { %1981 = vmatpush2.bf16.msra.mxu0 %v4575_v17  ;;  %v364_v17 = vld [vmem:[%s5059_s24 + $0xd8] sm:$0xff] }
  0x84   : > { %1982 = vmatprep.subr.bf16.mxu0 %v4580_v25  ;;  %v5443_v25 = vpack.c.bf16 %v364_v17, %v357_v15  ;;  %v4616_v15 = vld [vmem:[%s6624_s1 + $0x4c] ss:$16 sps:$4 sm:$0xff]  }
  0x85   : > { %v4619_v17 = vld [vmem:[%s6624_s1 + $0x24c] ss:$16 sps:$4 sm:$0xff]  }
  0x86   : > { %1831 = vmatmul.mubr.bf16.gmra.mxu0 %v5373_v32 }
  0x87   : > { %1944 = vmatmul.mubr.bf16.gmra.mxu1 %v5375_v34  ;;  %1983 = vmatpush2.bf16.msra.mxu0 %v4578_v35  ;;  %v4599_v35 = vld [vmem:[%s6624_s1 + $0x2a8] ss:$16 sps:$4 sm:$0xff]  }
  0x88   : > { %1986 = vmatprep.mubr.bf16.mxu0 %v5380_v38  ;;  %1984 = vmatprep.subr.bf16.mxu0 %v4583_v40  ;;  %v4604_v40 = vld [vmem:[%s6624_s1 + $0x8c] ss:$16 sps:$4 sm:$0xff]  }
  0x89   : > { %2099 = vmatprep.mubr.bf16.mxu1 %v6634_v3 }
  0x8b   : > { %1985 = vmatpush2.bf16.msra.mxu0 %v4581_v42  ;;  %v4607_v42 = vld [vmem:[%s6624_s1 + $0x28c] ss:$16 sps:$4 sm:$0xff]  }
  0x8c   : > { %2180 = vmatprep.subr.bf16.mxu0 %v4586_v47  ;;  %v376_v47 = vld [vmem:[%s5059_s24 + $0x138] sm:$0xff] }
  0x8e   : > { %1987 = vmatmul.mubr.bf16.vlgmr.msra.gmra.mxu0 %v5405_v60 }
  0x8f   : > { %4208 = vmatmul.mubr.msk.bf16.vlgmr.msra.gmra.mxu1 %vm1703_vm0, %v5407_v61  ;;  %2181 = vmatpush1.bf16.msra.mxu0 %v4584_v50  ;;  %v371_v50 = vld [vmem:[%s5059_s24 + $0x110] sm:$0xff] }
  0x90   : > { %2294 = vmatpush1.bf16.msra.mxu1 %v4587_v54  ;;  %2182 = vmatprep.subr.bf16.mxu0 %v4592_v0  ;;  %v378_v54 = vld [vmem:[%s5059_s24 + $0x148] sm:$0xff] }
  0x91   : > { %2295 = vmatprep.subr.bf16.mxu1 %v4595_v1  ;;  %1996 = vmatprep.mubr.bf16.mxu0 %v5420_v4  ;;  %v4608_v0 = vld [vmem:[%s6624_s1 + $0x68] ss:$16 sps:$4 sm:$0xff]  }
  0x92   : > { %2109 = vmatprep.mubr.bf16.mxu1 %v6634_v3  ;;  %v4611_v1 = vld [vmem:[%s6624_s1 + $0x268] ss:$16 sps:$4 sm:$0xff]  }
  0x93   : > { %2183 = vmatpush1.bf16.msra.mxu0 %v4590_v2  ;;  %v5487_v2 = vpack.c.bf16 %v376_v47, %v369_v46  ;;  %v4623_v46 = vld [vmem:[%s6624_s1 + $0x228] ss:$16 sps:$4 sm:$0xff]  }
  0x94   : > { %2296 = vmatpush1.bf16.msra.mxu1 %v4593_v5  ;;  %2184 = vmatprep.subr.bf16.mxu0 %v4598_v20  ;;  %v5489_v5 = vpack.c.bf16 %v378_v54, %v371_v50  ;;  %v4614_v20 = vld [vmem:[%s6624_s1 + $0x48] ss:$16 sps:$4 sm:$0xff]  }
  0x95   : > { %2297 = vmatprep.subr.bf16.mxu1 %v4601_v21  ;;  %v4617_v21 = vld [vmem:[%s6624_s1 + $0x248] ss:$16 sps:$4 sm:$0xff]  }
  0x96   : > { %1997 = vmatmul.mubr.bf16.gmra.mxu0 %v5441_v23  ;;  %v398_v54 = vld [vmem:[%s5059_s24 + $0x1e8] sm:$0xff] }
  0x97   : > { %4209 = vmatmul.mubr.msk.bf16.gmra.mxu1 %vm1703_vm0, %v5443_v25  ;;  %2185 = vmatpush1.bf16.msra.mxu0 %v4596_v30  ;;  %v390_v30 = vld [vmem:[%s5059_s24 + $0x1a8] sm:$0xff] }
  0x98   : > { %2298 = vmatpush1.bf16.msra.mxu1 %v4599_v35  ;;  %2186 = vmatprep.subr.bf16.mxu0 %v4604_v40  ;;  %v385_v35 = vld [vmem:[%s5059_s24 + $0x180] sm:$0xff]  ;;  %v392_v40 = vld [vmem:[%s5059_s24 + $0x1b8] sm:$0xff]  ;;  %v5528_v47 = vpack.c.bf16 %v390_v30, %v383_v27 }
  0x99   : > { %2299 = vmatprep.subr.bf16.mxu1 %v4607_v42  ;;  %2006 = vmatprep.mubr.bf16.mxu0 %v5464_v45  ;;  %v4622_v42 = vld [vmem:[%s6624_s1 + $0x2c] ss:$16 sps:$4 sm:$0xff]   ;;  %v5530_v50 = vpack.c.bf16 %v392_v40, %v385_v35  ;;  %v4632_v35 = vld [vmem:[%s6624_s1 + $0x1e8] ss:$16 sps:$4 sm:$0xff]  }
  0x9a   : > { %2119 = vmatprep.mubr.bf16.mxu1 %v6634_v3  ;;  %v4634_v27 = vld [vmem:[%s6624_s1 + $0x1ec] ss:$16 sps:$4 sm:$0xff]   ;;  %v4635_v40 = vld [vmem:[%s6624_s1 + $0x3e8] ss:$16 sps:$4 sm:$0xff]  }
  0x9b   : > { %2187 = vmatpush1.bf16.msra.mxu0 %v4602_v43  ;;  %v4625_v43 = vld [vmem:[%s6624_s1 + $0x22c] ss:$16 sps:$4 sm:$0xff]  }
  0x9c   : > { %2300 = vmatpush1.bf16.msra.mxu1 %v4605_v44  ;;  %2188 = vmatprep.subr.bf16.mxu0 %v4610_v62  ;;  %v4620_v44 = vld [vmem:[%s6624_s1 + $0x28] ss:$16 sps:$4 sm:$0xff]   ;;  %v405_v62 = vld [vmem:[%s5059_s24 + $0x220] sm:$0xff]  ;;  %v4637_v30 = vld [vmem:[%s6624_s1 + $0x3ec] ss:$16 sps:$4 sm:$0xff]  }
  0x9d   : > { %2301 = vmatprep.subr.bf16.mxu1 %v4613_v63  ;;  %v4628_v63 = vld [vmem:[%s6624_s1 + $0xc] ss:$16 sps:$4 sm:$0xff]   ;;  %v5546_v13 = vpack.c.bf16 %v405_v62, %v398_v54 }
  0x9e   : > { %2007 = vmatmul.mubr.bf16.gmra.mxu0 %v5487_v2  ;;  %v4640_v54 = vld [vmem:[%s6624_s1 + $0x1cc] ss:$16 sps:$4 sm:$0xff]  }
  0x9f   : > { %4210 = vmatmul.mubr.msk.bf16.gmra.mxu1 %vm1703_vm0, %v5489_v5  ;;  %2189 = vmatpush1.bf16.msra.mxu0 %v4608_v0  ;;  %v4631_v0 = vld [vmem:[%s6624_s1 + $0x20c] ss:$16 sps:$4 sm:$0xff]  }
  0xa0   : > { %2302 = vmatpush1.bf16.msra.mxu1 %v4611_v1  ;;  %2190 = vmatprep.subr.bf16.mxu0 %v4616_v15  ;;  %v4626_v1 = vld [vmem:[%s6624_s1 + $0x8] ss:$16 sps:$4 sm:$0xff]   ;;  %v397_v15 = vld [vmem:[%s5059_s24 + $0x1e0] sm:$0xff]  ;;  %v4643_v62 = vld [vmem:[%s6624_s1 + $0x3cc] ss:$16 sps:$4 sm:$0xff]  }
  0xa1   : > { %2303 = vmatprep.subr.bf16.mxu1 %v4619_v17  ;;  %2016 = vmatprep.mubr.bf16.mxu0 %v5505_v22  ;;  %v404_v17 = vld [vmem:[%s5059_s24 + $0x218] sm:$0xff] }
  0xa2   : > { %2129 = vmatprep.mubr.bf16.mxu1 %v6634_v3 }
  0xa3   : > { %2191 = vmatpush1.bf16.msra.mxu0 %v4614_v20  ;;  %v399_v20 = vld [vmem:[%s5059_s24 + $0x1f0] sm:$0xff] }
  0xa4   : > { %2304 = vmatpush1.bf16.msra.mxu1 %v4617_v21  ;;  %2192 = vmatprep.subr.bf16.mxu0 %v4622_v42  ;;  %v406_v21 = vld [vmem:[%s5059_s24 + $0x228] sm:$0xff]  ;;  %v5569_v42 = vpack.c.bf16 %v404_v17, %v397_v15  ;;  %v413_v17 = vld [vmem:[%s5059_s24 + $0x260] sm:$0xff] }
  0xa5   : > { %2305 = vmatprep.subr.bf16.mxu1 %v4625_v43  ;;  %v5571_v43 = vpack.c.bf16 %v406_v21, %v399_v20  ;;  %v418_v15 = vld [vmem:[%s5059_s24 + $0x288] sm:$0xff]  ;;  %v420_v20 = vld [vmem:[%s5059_s24 + $0x298] sm:$0xff] }
  0xa6   : > { %2017 = vmatmul.mubr.bf16.gmra.mxu0 %v5528_v47  ;;  %v4646_v21 = vld [vmem:[%s6624_s1 + $0x1ac] ss:$16 sps:$4 sm:$0xff]  }
  0xa7   : > { %4211 = vmatmul.mubr.msk.bf16.gmra.mxu1 %vm1703_vm0, %v5530_v50  ;;  %2193 = vmatpush1.bf16.msra.mxu0 %v4620_v44  ;;  %v412_v44 = vld [vmem:[%s5059_s24 + $0x258] sm:$0xff] }
  0xa8   : > { %2306 = vmatpush1.bf16.msra.mxu1 %v4623_v46  ;;  %2194 = vmatprep.subr.bf16.mxu0 %v4628_v63  ;;  %v419_v46 = vld [vmem:[%s5059_s24 + $0x290] sm:$0xff]  ;;  %v4638_v63 = vld [vmem:[%s6624_s1 + $0x1c8] ss:$16 sps:$4 sm:$0xff]  }
  0xa9   : > { %2307 = vmatprep.subr.bf16.mxu1 %v4631_v0  ;;  %2026 = vmatprep.mubr.bf16.mxu0 %v5546_v13  ;;  %v4641_v0 = vld [vmem:[%s6624_s1 + $0x3c8] ss:$16 sps:$4 sm:$0xff]  }
  0xaa   : > { %2139 = vmatprep.mubr.bf16.mxu1 %v6634_v3 }
  0xab   : > { %2195 = vmatpush1.bf16.msra.mxu0 %v4626_v1  ;;  %v5587_v1 = vpack.c.bf16 %v419_v46, %v412_v44  ;;  %v426_v44 = vld [vmem:[%s5059_s24 + $0x2c8] sm:$0xff]  ;;  %v433_v46 = vld [vmem:[%s5059_s24 + $0x300] sm:$0xff] }
  0xac   : > { %2308 = vmatpush1.bf16.msra.mxu1 %v4629_v6  ;;  %2196 = vmatprep.subr.bf16.mxu0 %v4634_v27  ;;  %v411_v6 = vld [vmem:[%s5059_s24 + $0x250] sm:$0xff]  ;;  %v4649_v27 = vld [vmem:[%s6624_s1 + $0x3ac] ss:$16 sps:$4 sm:$0xff]  }
  0xad   : > { %2309 = vmatprep.subr.bf16.mxu1 %v4637_v30  ;;  %v4644_v30 = vld [vmem:[%s6624_s1 + $0x1a8] ss:$16 sps:$4 sm:$0xff]  }
  0xae   : > { %2027 = vmatmul.mubr.bf16.gmra.mxu0 %v5569_v42 }
  0xaf   : > { %4212 = vmatmul.mubr.msk.bf16.gmra.mxu1 %vm1703_vm0, %v5571_v43  ;;  %2197 = vmatpush2.bf16.msra.mxu0 %v4632_v35  ;;  %v5607_v35 = vpack.c.bf16 %v418_v15, %v411_v6  ;;  %v4655_v6 = vld [vmem:[%s6624_s1 + $0x38c] ss:$16 sps:$4 sm:$0xff]   ;;  %v5628_v15 = vpack.c.bf16 %v433_v46, %v426_v44 }
  0xb0   : > { %2310 = vmatpush2.bf16.msra.mxu1 %v4635_v40  ;;  %2198 = vmatprep.subr.bf16.mxu0 %v4640_v54  ;;  %v5609_v40 = vpack.c.bf16 %v420_v20, %v413_v17  ;;  %v4647_v54 = vld [vmem:[%s6624_s1 + $0x3a8] ss:$16 sps:$4 sm:$0xff]   ;;  %v425_v17 = vld [vmem:[%s5059_s24 + $0x2c0] sm:$0xff]  ;;  %v4658_v44 = vld [vmem:[%s6624_s1 + $0x16c] ss:$16 sps:$4 sm:$0xff]  }
  0xb1   : > { %2311 = vmatprep.subr.bf16.mxu1 %v4643_v62  ;;  %2036 = vmatprep.mubr.bf16.mxu0 %v5587_v1  ;;  %6641 = vst [vmem:[#allocation3_spill] sm:$0xff] %v5607_v35  ;;  %v4652_v62 = vld [vmem:[%s6624_s1 + $0x18c] ss:$16 sps:$4 sm:$0xff]   ;;  %6643 = vst [vmem:[#allocation5_spill] sm:$0xff] %v5628_v15 }
  0xb2   : > { %2149 = vmatprep.mubr.bf16.mxu1 %v6634_v3  ;;  %6642 = vst [vmem:[#allocation4_spill] sm:$0xff] %v5609_v40  ;;  %v432_v20 = vld [vmem:[%s5059_s24 + $0x2f8] sm:$0xff] }
  0xb3   : > { %2199 = vmatpush2.bf16.msra.mxu0 %v4638_v63  ;;  %v4650_v63 = vld [vmem:[%s6624_s1 + $0x188] ss:$16 sps:$4 sm:$0xff]   ;;  %v4661_v46 = vld [vmem:[%s6624_s1 + $0x36c] ss:$16 sps:$4 sm:$0xff]  }
  0xb4   : > { %2312 = vmatpush2.bf16.msra.mxu1 %v4641_v0  ;;  %2200 = vmatprep.subr.bf16.mxu0 %v4646_v21  ;;  %v4653_v0 = vld [vmem:[%s6624_s1 + $0x388] ss:$16 sps:$4 sm:$0xff]   ;;  %v427_v21 = vld [vmem:[%s5059_s24 + $0x2d0] sm:$0xff] }
  0xb5   : > { %2313 = vmatprep.subr.bf16.mxu1 %v4649_v27  ;;  %v434_v27 = vld [vmem:[%s5059_s24 + $0x308] sm:$0xff] }
  0xb6   : > { %2037 = vmatmul.mubr.bf16.gmra.mxu0 %v5607_v35  ;;  %v4670_v35 = vld [vmem:[%s6624_s1 + $0x12c] ss:$16 sps:$4 sm:$0xff]  }
  0xb7   : > { %4213 = vmatmul.mubr.msk.bf16.gmra.mxu1 %vm1703_vm0, %v5609_v40  ;;  %2201 = vmatpush2.bf16.msra.mxu0 %v4644_v30  ;;  %v4656_v30 = vld [vmem:[%s6624_s1 + $0x168] ss:$16 sps:$4 sm:$0xff]   ;;  %v447_v40 = vld [vmem:[%s5059_s24 + $0x370] sm:$0xff] }
  0xb8   : > { %2314 = vmatpush2.bf16.msra.mxu1 %v4647_v54  ;;  %2202 = vmatprep.subr.bf16.mxu0 %v4652_v62  ;;  %v440_v54 = vld [vmem:[%s5059_s24 + $0x338] sm:$0xff]  ;;  %v5649_v62 = vpack.c.bf16 %v432_v20, %v425_v17 }
  0xb9   : > { %2315 = vmatprep.subr.bf16.mxu1 %v4655_v6  ;;  %2046 = vmatprep.mubr.bf16.mxu0 %v5628_v15  ;;  %v5651_v6 = vpack.c.bf16 %v434_v27, %v427_v21  ;;  %v4664_v15 = vld [vmem:[%s6624_s1 + $0x14c] ss:$16 sps:$4 sm:$0xff]   ;;  %v4662_v20 = vld [vmem:[%s6624_s1 + $0x148] ss:$16 sps:$4 sm:$0xff]   ;;  %v439_v21 = vld [vmem:[%s5059_s24 + $0x330] sm:$0xff] }
  0xba   : > { %2159 = vmatprep.mubr.bf16.mxu1 %v6634_v3  ;;  %6644 = vst [vmem:[#allocation6_spill] sm:$0xff] %v5649_v62  ;;  %v4659_v3 = vld [vmem:[%s6624_s1 + $0x368] ss:$16 sps:$4 sm:$0xff]   ;;  %v4667_v17 = vld [vmem:[%s6624_s1 + $0x34c] ss:$16 sps:$4 sm:$0xff]  }
  0xbb   : > { %6645 = vst [vmem:[#allocation7_spill] sm:$0xff] %v5651_v6  ;;  %2203 = vmatpush2.bf16.msra.mxu0 %v4650_v63  ;;  %v4665_v63 = vld [vmem:[%s6624_s1 + $0x348] ss:$16 sps:$4 sm:$0xff]  }
  0xbc   : > { %2316 = vmatpush2.bf16.msra.mxu1 %v4653_v0  ;;  %2204 = vmatprep.subr.bf16.mxu0 %v4658_v44  ;;  %v5669_v0 = vpack.c.bf16 %v447_v40, %v440_v54  ;;  %v446_v27 = vld [vmem:[%s5059_s24 + $0x368] sm:$0xff]  ;;  %v441_v44 = vld [vmem:[%s5059_s24 + $0x340] sm:$0xff]  ;;  %v6647_v54 = vmov 0  }
  0xbd   : > { %2317 = vmatprep.subr.bf16.mxu1 %v4661_v46  ;;  %v448_v46 = vld [vmem:[%s5059_s24 + $0x378] sm:$0xff] }
  0xbe   : > { %6646 = vst [vmem:[#allocation8_spill] sm:$0xff] %v5669_v0  ;;  %2047 = vmatmul.mubr.bf16.gmra.mxu0 %v5649_v62  ;;  %v4673_v40 = vld [vmem:[%s6624_s1 + $0x32c] ss:$16 sps:$4 sm:$0xff]   ;;  %v4671_v62 = vld [vmem:[%s6624_s1 + $0x328] ss:$16 sps:$4 sm:$0xff]  }
  0xbf   : > { %4214 = vmatmul.mubr.msk.bf16.gmra.mxu1 %vm1703_vm0, %v5651_v6  ;;  %2205 = vmatpush2.bf16.msra.mxu0 %v4656_v30  ;;  %v4668_v6 = vld [vmem:[%s6624_s1 + $0x128] ss:$16 sps:$4 sm:$0xff]   ;;  %v5692_v30 = vpack.c.bf16 %v446_v27, %v439_v21 }
  0xc0   : > { %2318 = vmatpush2.bf16.msra.mxu1 %v4659_v3  ;;  %2206 = vmatprep.subr.bf16.mxu0 %v4664_v15  ;;  %v5694_v3 = vpack.c.bf16 %v448_v46, %v441_v44  ;;  %v4676_v15 = vld [vmem:[%s6624_s1 + $0x10c] ss:$16 sps:$4 sm:$0xff]   ;;  %v4677_v21 = vld [vmem:[%s6624_s1 + $0x308] ss:$16 sps:$4 sm:$0xff]  }
  0xc1   : > { %2319 = vmatprep.subr.bf16.mxu1 %v4667_v17  ;;  %2056 = vmatprep.mubr.bf16.mxu0 %v5669_v0  ;;  %v4679_v17 = vld [vmem:[%s6624_s1 + $0x30c] ss:$16 sps:$4 sm:$0xff]   ;;  %v4674_v0 = vld [vmem:[%s6624_s1 + $0x108] ss:$16 sps:$4 sm:$0xff]  }
  0xc2   : > { %2169 = vmatprep.mubr.bf16.mxu1 %v6647_v54  ;;  %v4683_v27 = vld [vmem:[%s6624_s1 + $0x608] ss:$16 sps:$4 sm:$0xff]   ;;  %v4688_v44 = vld [vmem:[%s6624_s1 + $0x4cc] ss:$16 sps:$4 sm:$0xff]  }
  0xc3   : > { %2207 = vmatpush2.bf16.msra.mxu0 %v4662_v20  ;;  %v4682_v20 = vld [vmem:[%s6624_s1 + $0x4ec] ss:$16 sps:$4 sm:$0xff]  }
  0xc4   : > { %2320 = vmatpush2.bf16.msra.mxu1 %v4665_v63  ;;  %2208 = vmatprep.subr.bf16.mxu0 %v4670_v35  ;;  %v4685_v35 = vld [vmem:[%s6624_s1 + $0x60c] ss:$16 sps:$4 sm:$0xff]   ;;  %v4680_v63 = vld [vmem:[%s6624_s1 + $0x4e8] ss:$16 sps:$4 sm:$0xff]  }
  0xc5   : > { %2321 = vmatprep.subr.bf16.mxu1 %v4673_v40 }
  0xc6   : > { %2057 = vmatmul.mubr.bf16.gmra.mxu0 %v5692_v30 }
  0xc7   : > { %4215 = vmatmul.mubr.msk.bf16.gmra.mxu1 %vm1703_vm0, %v5694_v3  ;;  %2209 = vmatpush2.bf16.msra.mxu0 %v4668_v6 }
  0xc8   : > { %2322 = vmatpush2.bf16.msra.mxu1 %v4671_v62  ;;  %2210 = vmatprep.subr.bf16.mxu0 %v4676_v15  ;;  %v4689_v62 = vld [vmem:[%s6624_s1 + $0x4a8] ss:$16 sps:$4 sm:$0xff]   ;;  %v4736_v15 = vld [vmem:[%s6626_s3 + $0x64] ss:$8 sps:$4 sm:$0xff]  }
  0xc9   : > { %2323 = vmatprep.subr.bf16.mxu1 %v4679_v17  ;;  %2212 = vmatprep.mubr.bf16.mxu0 %v5080_v55  ;;  %v4686_v55 = vld [vmem:[%s6624_s1 + $0x4c8] ss:$16 sps:$4 sm:$0xff]  }
  0xca   : > { %2325 = vmatprep.mubr.bf16.mxu1 %v5082_v56  ;;  %v4691_v56 = vld [vmem:[%s6624_s1 + $0x4ac] ss:$16 sps:$4 sm:$0xff]  }
  0xcb   : > { %2211 = vmatpush2.bf16.msra.mxu0 %v4674_v0  ;;  %v701_v0 = vld [vmem:[%s6625_s2] sm:$0xf] }
  0xcc   : > { %2324 = vmatpush2.bf16.msra.mxu1 %v4677_v21  ;;  %2406 = vmatprep.subr.bf16.mxu0 %v4682_v20 }
  0xcd   : > { %2533 = vmatprep.subr.bf16.mxu1 %v4685_v35 }
  0xce   : > { %2213 = vmatmul.mubr.bf16.vlgmr.msra.gmra.mxu0 %v5146_v18  ;;  %v4694_v18 = vld [vmem:[%s6624_s1 + $0x48c] ss:$16 sps:$4 sm:$0xff]  }
  0xcf   : > { %2326 = vmatmul.mubr.bf16.vlgmr.msra.gmra.mxu1 %v5148_v19  ;;  %2407 = vmatpush1.bf16.msra.mxu0 %v4680_v63  ;;  %v4692_v19 = vld [vmem:[%s6624_s1 + $0x488] ss:$16 sps:$4 sm:$0xff]  }
  0xd0   : > { %2534 = vmatpush1.bf16.msra.mxu1 %v4683_v27  ;;  %2408 = vmatprep.subr.bf16.mxu0 %v4688_v44  ;;  %v4734_v27 = vld [vmem:[%s6626_s3 + $0x60] ss:$8 sps:$4 sm:$0xff]  }
  0xd1   : > { %2222 = vmatprep.mubr.bf16.mxu0 %v5158_v24  ;;  %2335 = vmatprep.mubr.bf16.mxu1 %v5163_v26  ;;  %v4697_v24 = vld [vmem:[%s6624_s1 + $0x46c] ss:$16 sps:$4 sm:$0xff]   ;;  %v4695_v26 = vld [vmem:[%s6624_s1 + $0x468] ss:$16 sps:$4 sm:$0xff]  }
  0xd3   : > { %2409 = vmatpush1.bf16.msra.mxu0 %v4686_v55 }
  0xd4   : > { %2410 = vmatprep.subr.bf16.mxu0 %v4691_v56 }
  0xd6   : > { %2223 = vmatmul.mubr.bf16.gmra.mxu0 %v5180_v36  ;;  %v4700_v36 = vld [vmem:[%s6624_s1 + $0x44c] ss:$16 sps:$4 sm:$0xff]  }
  0xd7   : > { %2336 = vmatmul.mubr.bf16.gmra.mxu1 %v5182_v37  ;;  %2411 = vmatpush1.bf16.msra.mxu0 %v4689_v62  ;;  %v4698_v37 = vld [vmem:[%s6624_s1 + $0x448] ss:$16 sps:$4 sm:$0xff]  }
  0xd8   : > { %2232 = vmatprep.mubr.bf16.mxu0 %v5187_v39  ;;  %2412 = vmatprep.subr.bf16.mxu0 %v4694_v18  ;;  %v4703_v39 = vld [vmem:[%s6624_s1 + $0x42c] ss:$16 sps:$4 sm:$0xff]  }
  0xd9   : > { %2345 = vmatprep.mubr.bf16.mxu1 %v5192_v41  ;;  %v4701_v41 = vld [vmem:[%s6624_s1 + $0x428] ss:$16 sps:$4 sm:$0xff]  }
  0xdb   : > { %2413 = vmatpush1.bf16.msra.mxu0 %v4692_v19 }
  0xdc   : > { %2414 = vmatprep.subr.bf16.mxu0 %v4697_v24  ;;  %v4737_v24 = vld [vmem:[%s6626_s3 + $0x50] ss:$8 sps:$4 sm:$0xff]  }
  0xde   : > { %2233 = vmatmul.mubr.bf16.gmra.mxu0 %v5212_v52  ;;  %v4706_v52 = vld [vmem:[%s6624_s1 + $0x40c] ss:$16 sps:$4 sm:$0xff]  }
  0xdf   : > { %2346 = vmatmul.mubr.bf16.gmra.mxu1 %v5214_v53  ;;  %2415 = vmatpush1.bf16.msra.mxu0 %v4695_v26  ;;  %v4704_v53 = vld [vmem:[%s6624_s1 + $0x408] ss:$16 sps:$4 sm:$0xff]  }
  0xe0   : > { %2242 = vmatprep.mubr.bf16.mxu0 %v5219_v57  ;;  %2416 = vmatprep.subr.bf16.mxu0 %v4700_v36  ;;  %v4709_v57 = vld [vmem:[%s6624_s1 + $0x5ec] ss:$16 sps:$4 sm:$0xff]  }
  0xe1   : > { %2355 = vmatprep.mubr.bf16.mxu1 %v5224_v59  ;;  %v4707_v59 = vld [vmem:[%s6624_s1 + $0x5e8] ss:$16 sps:$4 sm:$0xff]   ;;  %v4742_v36 = vld [vmem:[%s6626_s3 + $0x44] ss:$8 sps:$4 sm:$0xff]  }
  0xe3   : > { %2417 = vmatpush1.bf16.msra.mxu0 %v4698_v37 }
  0xe4   : > { %2418 = vmatprep.subr.bf16.mxu0 %v4703_v39 }
  0xe6   : > { %2243 = vmatmul.mubr.bf16.gmra.mxu0 %v5244_v7  ;;  %v4712_v7 = vld [vmem:[%s6624_s1 + $0x5cc] ss:$16 sps:$4 sm:$0xff]  }
  0xe7   : > { %2356 = vmatmul.mubr.bf16.gmra.mxu1 %v5246_v8  ;;  %2419 = vmatpush1.bf16.msra.mxu0 %v4701_v41  ;;  %v4710_v8 = vld [vmem:[%s6624_s1 + $0x5c8] ss:$16 sps:$4 sm:$0xff]  }
  0xe8   : > { %2252 = vmatprep.mubr.bf16.mxu0 %v5251_v10  ;;  %2420 = vmatprep.subr.bf16.mxu0 %v4706_v52  ;;  %v4715_v10 = vld [vmem:[%s6624_s1 + $0x5ac] ss:$16 sps:$4 sm:$0xff]  }
  0xe9   : > { %2365 = vmatprep.mubr.bf16.mxu1 %v5256_v12  ;;  %v4713_v12 = vld [vmem:[%s6624_s1 + $0x5a8] ss:$16 sps:$4 sm:$0xff]  }
  0xeb   : > { %2421 = vmatpush1.bf16.msra.mxu0 %v4704_v53 }
  0xec   : > { %2422 = vmatprep.subr.bf16.mxu0 %v4709_v57  ;;  %v4740_v57 = vld [vmem:[%s6626_s3 + $0x40] ss:$8 sps:$4 sm:$0xff]  }
  0xee   : > { %2253 = vmatmul.mubr.bf16.gmra.mxu0 %v5279_v28  ;;  %v4718_v28 = vld [vmem:[%s6624_s1 + $0x58c] ss:$16 sps:$4 sm:$0xff]  }
  0xef   : > { %2366 = vmatmul.mubr.bf16.gmra.mxu1 %v5281_v29  ;;  %2423 = vmatpush2.bf16.msra.mxu0 %v4707_v59  ;;  %v4716_v29 = vld [vmem:[%s6624_s1 + $0x588] ss:$16 sps:$4 sm:$0xff]  }
  0xf0   : > { %2262 = vmatprep.mubr.bf16.mxu0 %v5286_v31  ;;  %2424 = vmatprep.subr.bf16.mxu0 %v4712_v7  ;;  %v4721_v31 = vld [vmem:[%s6624_s1 + $0x56c] ss:$16 sps:$4 sm:$0xff]  }
  0xf1   : > { %2375 = vmatprep.mubr.bf16.mxu1 %v5291_v33  ;;  %v4719_v33 = vld [vmem:[%s6624_s1 + $0x568] ss:$16 sps:$4 sm:$0xff]  }
  0xf3   : > { %2425 = vmatpush2.bf16.msra.mxu0 %v4710_v8 }
  0xf4   : > { %2426 = vmatprep.subr.bf16.mxu0 %v4715_v10 }
  0xf6   : > { %2263 = vmatmul.mubr.bf16.gmra.mxu0 %v5311_v48  ;;  %v4724_v48 = vld [vmem:[%s6624_s1 + $0x54c] ss:$16 sps:$4 sm:$0xff]  }
  0xf7   : > { %2376 = vmatmul.mubr.bf16.gmra.mxu1 %v5313_v49  ;;  %2427 = vmatpush2.bf16.msra.mxu0 %v4713_v12  ;;  %v4722_v49 = vld [vmem:[%s6624_s1 + $0x548] ss:$16 sps:$4 sm:$0xff]  }
  0xf8   : > { %2272 = vmatprep.mubr.bf16.mxu0 %v5318_v51  ;;  %2428 = vmatprep.subr.bf16.mxu0 %v4718_v28  ;;  %v703_v51 = vlaneseq }
  0xf9   : > { %2385 = vmatprep.mubr.bf16.mxu1 %v5323_v58  ;;  %v4727_v58 = vld [vmem:[%s6624_s1 + $0x52c] ss:$16 sps:$4 sm:$0xff]  }
  0xfb   : > { %2429 = vmatpush2.bf16.msra.mxu0 %v4716_v29  ;;  %v4743_v29 = vld [vmem:[%s6626_s3 + $0x30] ss:$8 sps:$4 sm:$0xff]  }
  0xfc   : > { %2430 = vmatprep.subr.bf16.mxu0 %v4721_v31 }
  0xfe   : > { %2273 = vmatmul.mubr.bf16.gmra.mxu0 %v5343_v9  ;;  %v4725_v9 = vld [vmem:[%s6624_s1 + $0x528] ss:$16 sps:$4 sm:$0xff]  }
  0xff   : > { %2386 = vmatmul.mubr.bf16.gmra.mxu1 %v5345_v11  ;;  %2431 = vmatpush2.bf16.msra.mxu0 %v4719_v33  ;;  %v5837_v11 = vshrl.u32 %v703_v51, 7  ;;  %v4748_v33 = vld [vmem:[%s6626_s3 + $0x24] ss:$8 sps:$4 sm:$0xff]  }
 0x100   : > { %2282 = vmatprep.mubr.bf16.mxu0 %v5350_v14  ;;  %2432 = vmatprep.subr.bf16.mxu0 %v4724_v48  ;;  %v4730_v14 = vld [vmem:[%s6624_s1 + $0x50c] ss:$16 sps:$4 sm:$0xff]  }
 0x101   : > { %2395 = vmatprep.mubr.bf16.mxu1 %v5355_v16  ;;  %v4728_v16 = vld [vmem:[%s6624_s1 + $0x508] ss:$16 sps:$4 sm:$0xff]   ;;  %v5849_v6 = vsub.s32 0, %v5837_v11 }
 0x103   : > { %2433 = vmatpush2.bf16.msra.mxu0 %v4722_v49  ;;  %v5860_v46 = vrot.slane %v701_v0, %v5849_v6 }
 0x104   : > { %2434 = vmatprep.subr.bf16.mxu0 %v4727_v58  ;;  %v4781_v58 = vld [vmem:[%s6626_s3 + $0x174] ss:$8 sps:$4 sm:$0xff]  }
 0x105   : > { %3365 = vmatprep.subr.bf16.mxu1 %v4781_v58 }
 0x106   : > { %2283 = vmatmul.mubr.bf16.gmra.mxu0 %v5373_v32  ;;  %v4733_v32 = vld [vmem:[%s6626_s3 + $0x74] ss:$8 sps:$4 sm:$0xff]  }
 0x107   : > { %2396 = vmatmul.mubr.bf16.gmra.mxu1 %v5375_v34  ;;  %2435 = vmatpush2.bf16.msra.mxu0 %v4725_v9  ;;  %v709_v34 = vsub.s32 1, %v5837_v11 }
 0x108   : > { %2438 = vmatprep.mubr.bf16.mxu0 %v5380_v38  ;;  %2436 = vmatprep.subr.bf16.mxu0 %v4730_v14  ;;  %v4731_v38 = vld [vmem:[%s6626_s3 + $0x70] ss:$8 sps:$4 sm:$0xff]  }
 0x109   : > { %2551 = vmatprep.mubr.bf16.mxu1 %v6647_v54  ;;  %v5867_v40 = vrot.slane %v701_v0, %v709_v34  ;;  %v4751_v0 = vld [vmem:[%s6626_s3 + $0x14] ss:$8 sps:$4 sm:$0xff]  }
 0x10b   : > { %2437 = vmatpush2.bf16.msra.mxu0 %v4728_v16 }
 0x10c   : > { %3252 = vmatprep.subr.bf16.mxu0 %v4733_v32 }
 0x10e   : > { %v1762_v17 = vpop.f32.mrf.mxu0  ;;  %2439 = vmatmul.mubr.bf16.vlgmr.msra.gmra.mxu0 %v5405_v60 }
 0x10f   : > { %v1875_v21 = vpop.f32.mrf.mxu1  ;;  %4216 = vmatmul.mubr.msk.bf16.vlgmr.msra.gmra.mxu1 %vm1703_vm0, %v5407_v61  ;;  %v1763_v20 = vadd.f32 %v1762_v17, %v5860_v46  ;;  %2448 = vmatprep.mubr.bf16.mxu0 %v5420_v4  ;;  %v4739_v61 = vld [vmem:[%s6626_s3 + $0x54] ss:$8 sps:$4 sm:$0xff]  }
 0x110   : > { %2561 = vmatprep.mubr.bf16.mxu1 %v6647_v54  ;;  %v1764_v35 = vpop.f32.mrf.mxu0  ;;  %3253 = vmatpush1.bf16.msra.mxu0 %v4731_v38 }
 0x111   : > { %v1877_v63 = vpop.f32.mrf.mxu1  ;;  %v5881_v44 = vadd.f32 %v1875_v21, %v1763_v20  ;;  %v1765_v60 = vadd.f32 %v1764_v35, %v5867_v40  ;;  %3254 = vmatprep.subr.bf16.mxu0 %v4736_v15  ;;  %v4784_v21 = vld [vmem:[%s6626_s3 + $0x164] ss:$8 sps:$4 sm:$0xff]  }
 0x112   : > { %v1766_v55 = vpop.f32.mrf.mxu0 }
 0x113   : > { %v1879_v4 = vpop.f32.mrf.mxu1  ;;  %v5887_v56 = vadd.f32 %v1877_v63, %v1765_v60  ;;  %v1767_v62 = vadd.f32 %v1766_v55, %v5860_v46  ;;  %v4749_v63 = vld [vmem:[%s6626_s3 + $0x10] ss:$8 sps:$4 sm:$0xff]  }
 0x114   : > { %v5890_v18 = vpop.f32.mrf.mxu0  ;;  %3255 = vmatpush1.bf16.msra.mxu0 %v4734_v27  ;;  %v4782_v27 = vld [vmem:[%s6626_s3 + $0x160] ss:$8 sps:$4 sm:$0xff]  }
 0x115   : > { %v5892_v19 = vpop.f32.mrf.mxu1  ;;  %v5897_v26 = vadd.f32 %v1879_v4, %v1767_v62  ;;  %3256 = vmatprep.subr.bf16.mxu0 %v4739_v61  ;;  %v4754_v61 = vld [vmem:[%s6626_s3 + $0x4] ss:$8 sps:$4 sm:$0xff]  }
 0x116   : > { %v1772_v37 = vpop.f32.mrf.mxu0  ;;  %2449 = vmatmul.mubr.bf16.gmra.mxu0 %v5441_v23 }
 0x117   : > { %v1885_v39 = vpop.f32.mrf.mxu1  ;;  %4217 = vmatmul.mubr.msk.bf16.gmra.mxu1 %vm1703_vm0, %v5443_v25  ;;  %v1773_v41 = vadd.f32 %v1772_v37, %v5860_v46  ;;  %2458 = vmatprep.mubr.bf16.mxu0 %v5464_v45  ;;  %v4745_v25 = vld [vmem:[%s6626_s3 + $0x34] ss:$8 sps:$4 sm:$0xff]  }
 0x118   : > { %2571 = vmatprep.mubr.bf16.mxu1 %v6647_v54  ;;  %v1774_v52 = vpop.f32.mrf.mxu0  ;;  %3257 = vmatpush1.bf16.msra.mxu0 %v4737_v24  ;;  %v4787_v24 = vld [vmem:[%s6626_s3 + $0x154] ss:$8 sps:$4 sm:$0xff]  }
 0x119   : > { %v1887_v53 = vpop.f32.mrf.mxu1  ;;  %v5911_v59 = vadd.f32 %v1885_v39, %v1773_v41  ;;  %v1775_v23 = vadd.f32 %v1774_v52, %v5867_v40  ;;  %3258 = vmatprep.subr.bf16.mxu0 %v4742_v36  ;;  %v4757_v41 = vld [vmem:[%s6626_s3 + $0xf4] ss:$8 sps:$4 sm:$0xff]  }
 0x11a   : > { %v1776_v7 = vpop.f32.mrf.mxu0 }
 0x11b   : > { %v1889_v45 = vpop.f32.mrf.mxu1  ;;  %v5917_v8 = vadd.f32 %v1887_v53, %v1775_v23  ;;  %v1777_v10 = vadd.f32 %v1776_v7, %v5860_v46 }
 0x11c   : > { %v5920_v12 = vpop.f32.mrf.mxu0  ;;  %3259 = vmatpush1.bf16.msra.mxu0 %v4740_v57 }
 0x11d   : > { %v5922_v28 = vpop.f32.mrf.mxu1  ;;  %v5927_v31 = vadd.f32 %v1889_v45, %v1777_v10  ;;  %3260 = vmatprep.subr.bf16.mxu0 %v4745_v25  ;;  %v4790_v25 = vld [vmem:[%s6626_s3 + $0x144] ss:$8 sps:$4 sm:$0xff]   ;;  %v4755_v10 = vld [vmem:[%s6626_s3 + $0xf0] ss:$8 sps:$4 sm:$0xff]  }
 0x11e   : > { %v1782_v48 = vpop.f32.mrf.mxu0  ;;  %2459 = vmatmul.mubr.bf16.gmra.mxu0 %v5487_v2  ;;  %v4746_v2 = vld [vmem:[%s6626_s3 + $0x20] ss:$8 sps:$4 sm:$0xff]  }
 0x11f   : > { %v1895_v49 = vpop.f32.mrf.mxu1  ;;  %4218 = vmatmul.mubr.msk.bf16.gmra.mxu1 %vm1703_vm0, %v5489_v5  ;;  %v1783_v51 = vadd.f32 %v1782_v48, %v5860_v46  ;;  %2468 = vmatprep.mubr.bf16.mxu0 %v5505_v22  ;;  %v4779_v5 = vld [vmem:[%s6626_s3 + $0x170] ss:$8 sps:$4 sm:$0xff]   ;;  %v4760_v48 = vld [vmem:[%s6626_s3 + $0xe4] ss:$8 sps:$4 sm:$0xff]  }
 0x120   : > { %2581 = vmatprep.mubr.bf16.mxu1 %v6647_v54  ;;  %v1784_v9 = vpop.f32.mrf.mxu0  ;;  %3261 = vmatpush1.bf16.msra.mxu0 %v4743_v29  ;;  %v4788_v29 = vld [vmem:[%s6626_s3 + $0x140] ss:$8 sps:$4 sm:$0xff]  }
 0x121   : > { %v1897_v14 = vpop.f32.mrf.mxu1  ;;  %v5947_v16 = vadd.f32 %v1895_v49, %v1783_v51  ;;  %v1785_v22 = vadd.f32 %v1784_v9, %v5867_v40  ;;  %3262 = vmatprep.subr.bf16.mxu0 %v4748_v33  ;;  %3366 = vmatpush1.bf16.msra.mxu1 %v4779_v5  ;;  %v4793_v9 = vld [vmem:[%s6626_s3 + $0x134] ss:$8 sps:$4 sm:$0xff]  }
 0x122   : > { %v1786_v32 = vpop.f32.mrf.mxu0  ;;  %3367 = vmatprep.subr.bf16.mxu1 %v4784_v21  ;;  %v4796_v21 = vld [vmem:[%s6626_s3 + $0x124] ss:$8 sps:$4 sm:$0xff]  }
 0x123   : > { %v1899_v38 = vpop.f32.mrf.mxu1  ;;  %v5953_v15 = vadd.f32 %v1897_v14, %v1785_v22  ;;  %v1787_v17 = vadd.f32 %v1786_v32, %v5860_v46  ;;  %v4763_v22 = vld [vmem:[%s6626_s3 + $0xd4] ss:$8 sps:$4 sm:$0xff]  }
 0x124   : > { %v5959_v20 = vpop.f32.mrf.mxu0  ;;  %3263 = vmatpush1.bf16.msra.mxu0 %v4746_v2 }
 0x125   : > { %v5961_v35 = vpop.f32.mrf.mxu1  ;;  %v5969_v60 = vadd.f32 %v1899_v38, %v1787_v17  ;;  %3264 = vmatprep.subr.bf16.mxu0 %v4751_v0  ;;  %3368 = vmatpush1.bf16.msra.mxu1 %v4782_v27 }
 0x126   : > { %v1792_v55 = vpop.f32.mrf.mxu0  ;;  %2469 = vmatmul.mubr.bf16.gmra.mxu0 %v5528_v47  ;;  %v4752_v47 = vld [vmem:[%s6626_s3] ss:$8 sps:$4 sm:$0xff]   ;;  %3369 = vmatprep.subr.bf16.mxu1 %v4787_v24 }
 0x127   : > { %v1905_v4 = vpop.f32.mrf.mxu1  ;;  %4219 = vmatmul.mubr.msk.bf16.gmra.mxu1 %vm1703_vm0, %v5530_v50  ;;  %v1793_v62 = vadd.f32 %v1792_v55, %v5860_v46  ;;  %2478 = vmatprep.mubr.bf16.mxu0 %v5546_v13  ;;  %v4785_v50 = vld [vmem:[%s6626_s3 + $0x150] ss:$8 sps:$4 sm:$0xff]   ;;  %v4794_v55 = vld [vmem:[%s6626_s3 + $0x120] ss:$8 sps:$4 sm:$0xff]  }
 0x128   : > { %2591 = vmatprep.mubr.bf16.mxu1 %v6647_v54  ;;  %v1794_v36 = vpop.f32.mrf.mxu0  ;;  %3265 = vmatpush1.bf16.msra.mxu0 %v4749_v63 }
 0x129   : > { %v1907_v37 = vpop.f32.mrf.mxu1  ;;  %v5989_v39 = vadd.f32 %v1905_v4, %v1793_v62  ;;  %v1795_v13 = vadd.f32 %v1794_v36, %v5867_v40  ;;  %3266 = vmatprep.subr.bf16.mxu0 %v4754_v61  ;;  %3370 = vmatpush1.bf16.msra.mxu1 %v4785_v50  ;;  %v4761_v61 = vld [vmem:[%s6626_s3 + $0xd0] ss:$8 sps:$4 sm:$0xff]   ;;  %v4766_v62 = vld [vmem:[%s6626_s3 + $0xc4] ss:$8 sps:$4 sm:$0xff]  }
 0x12a   : > { %v1796_v52 = vpop.f32.mrf.mxu0  ;;  %3371 = vmatprep.subr.bf16.mxu1 %v4790_v25  ;;  %v4797_v25 = vld [vmem:[%s6626_s3 + $0x110] ss:$8 sps:$4 sm:$0xff]  }
 0x12b   : > { %v1909_v53 = vpop.f32.mrf.mxu1  ;;  %v5995_v57 = vadd.f32 %v1907_v37, %v1795_v13  ;;  %v1797_v23 = vadd.f32 %v1796_v52, %v5860_v46  ;;  %v6648_v37 = vld [vmem:[#allocation3_spill] sm:$0xff]  ;;  %v6650_v13 = vld [vmem:[#allocation5_spill] sm:$0xff] }
 0x12c   : > { %v6001_v7 = vpop.f32.mrf.mxu0  ;;  %3267 = vmatpush1.bf16.msra.mxu0 %v4752_v47  ;;  %v6649_v47 = vld [vmem:[#allocation4_spill] sm:$0xff] }
 0x12d   : > { %v6003_v45 = vpop.f32.mrf.mxu1  ;;  %v6011_v33 = vadd.f32 %v1909_v53, %v1797_v23  ;;  %3268 = vmatprep.subr.bf16.mxu0 %v4757_v41  ;;  %3372 = vmatpush1.bf16.msra.mxu1 %v4788_v29  ;;  %v4799_v41 = vld [vmem:[%s6626_s3 + $0x114] ss:$8 sps:$4 sm:$0xff]   ;;  %v4764_v23 = vld [vmem:[%s6626_s3 + $0xc0] ss:$8 sps:$4 sm:$0xff]  }
 0x12e   : > { %v1802_v49 = vpop.f32.mrf.mxu0  ;;  %2479 = vmatmul.mubr.bf16.gmra.mxu0 %v5569_v42  ;;  %v4758_v42 = vld [vmem:[%s6626_s3 + $0xe0] ss:$8 sps:$4 sm:$0xff]   ;;  %3373 = vmatprep.subr.bf16.mxu1 %v4793_v9 }
 0x12f   : > { %v1915_v51 = vpop.f32.mrf.mxu1  ;;  %4220 = vmatmul.mubr.msk.bf16.gmra.mxu1 %vm1703_vm0, %v5571_v43  ;;  %v1803_v58 = vadd.f32 %v1802_v49, %v5860_v46  ;;  %2488 = vmatprep.mubr.bf16.mxu0 %v5587_v1  ;;  %v4791_v43 = vld [vmem:[%s6626_s3 + $0x130] ss:$8 sps:$4 sm:$0xff]  }
 0x130   : > { %2601 = vmatprep.mubr.bf16.mxu1 %v6647_v54  ;;  %v1804_v14 = vpop.f32.mrf.mxu0  ;;  %3269 = vmatpush2.bf16.msra.mxu0 %v4755_v10 }
 0x131   : > { %v1917_v2 = vpop.f32.mrf.mxu1  ;;  %v6031_v5 = vadd.f32 %v1915_v51, %v1803_v58  ;;  %v1805_v1 = vadd.f32 %v1804_v14, %v5867_v40  ;;  %3270 = vmatprep.subr.bf16.mxu0 %v4760_v48  ;;  %3374 = vmatpush1.bf16.msra.mxu1 %v4791_v43  ;;  %v4769_v48 = vld [vmem:[%s6626_s3 + $0xb4] ss:$8 sps:$4 sm:$0xff]   ;;  %v4802_v14 = vld [vmem:[%s6626_s3 + $0x104] ss:$8 sps:$4 sm:$0xff]   ;;  %v4767_v43 = vld [vmem:[%s6626_s3 + $0xb0] ss:$8 sps:$4 sm:$0xff]  }
 0x132   : > { %v1806_v0 = vpop.f32.mrf.mxu0  ;;  %3375 = vmatprep.subr.bf16.mxu1 %v4796_v21  ;;  %v6651_v21 = vld [vmem:[#allocation6_spill] sm:$0xff] }
 0x133   : > { %v1919_v32 = vpop.f32.mrf.mxu1  ;;  %v6037_v38 = vadd.f32 %v1917_v2, %v1805_v1  ;;  %v1807_v17 = vadd.f32 %v1806_v0, %v5860_v46  ;;  %v4800_v1 = vld [vmem:[%s6626_s3 + $0x100] ss:$8 sps:$4 sm:$0xff]   ;;  %v4772_v0 = vld [vmem:[%s6626_s3 + $0xa4] ss:$8 sps:$4 sm:$0xff]  }
 0x134   : > { %v6043_v63 = vpop.f32.mrf.mxu0  ;;  %3271 = vmatpush2.bf16.msra.mxu0 %v4758_v42 }
 0x135   : > { %v6045_v27 = vpop.f32.mrf.mxu1  ;;  %v6053_v4 = vadd.f32 %v1919_v32, %v1807_v17  ;;  %3272 = vmatprep.subr.bf16.mxu0 %v4763_v22  ;;  %3376 = vmatpush1.bf16.msra.mxu1 %v4794_v55 }
 0x136   : > { %v1812_v24 = vpop.f32.mrf.mxu0  ;;  %2489 = vmatmul.mubr.bf16.gmra.mxu0 %v6648_v37  ;;  %3377 = vmatprep.subr.bf16.mxu1 %v4799_v41  ;;  %v4775_v41 = vld [vmem:[%s6626_s3 + $0x94] ss:$8 sps:$4 sm:$0xff]  }
 0x137   : > { %v1925_v36 = vpop.f32.mrf.mxu1  ;;  %4221 = vmatmul.mubr.msk.bf16.gmra.mxu1 %vm1703_vm0, %v6649_v47  ;;  %v1813_v50 = vadd.f32 %v1812_v24, %v5860_v46  ;;  %2498 = vmatprep.mubr.bf16.mxu0 %v6650_v13  ;;  %v4805_v24 = vld [vmem:[%s6626_s3 + $0x1f4] ss:$8 sps:$4 sm:$0xff]   ;;  %v4770_v47 = vld [vmem:[%s6626_s3 + $0xa0] ss:$8 sps:$4 sm:$0xff]  }
 0x138   : > { %2611 = vmatprep.mubr.bf16.mxu1 %v6647_v54  ;;  %v1814_v52 = vpop.f32.mrf.mxu0  ;;  %3273 = vmatpush2.bf16.msra.mxu0 %v4761_v61  ;;  %v6652_v61 = vld [vmem:[#allocation7_spill] sm:$0xff] }
 0x139   : > { %v1927_v53 = vpop.f32.mrf.mxu1  ;;  %v6073_v10 = vadd.f32 %v1925_v36, %v1813_v50  ;;  %v1815_v29 = vadd.f32 %v1814_v52, %v5867_v40  ;;  %3274 = vmatprep.subr.bf16.mxu0 %v4766_v62  ;;  %3378 = vmatpush1.bf16.msra.mxu1 %v4797_v25  ;;  %v6653_v62 = vld [vmem:[#allocation8_spill] sm:$0xff] }
 0x13a   : > { %v1816_v49 = vpop.f32.mrf.mxu0  ;;  %3379 = vmatprep.subr.bf16.mxu1 %v4802_v14  ;;  %v4803_v50 = vld [vmem:[%s6626_s3 + $0x1f0] ss:$8 sps:$4 sm:$0xff]  }
 0x13b   : > { %v1929_v51 = vpop.f32.mrf.mxu1  ;;  %v6079_v58 = vadd.f32 %v1927_v53, %v1815_v29  ;;  %v1817_v9 = vadd.f32 %v1816_v49, %v5860_v46  ;;  %v4808_v29 = vld [vmem:[%s6626_s3 + $0x1e4] ss:$8 sps:$4 sm:$0xff]  }
 0x13c   : > { %v6085_v2 = vpop.f32.mrf.mxu0  ;;  %3275 = vmatpush2.bf16.msra.mxu0 %v4764_v23 }
 0x13d   : > { %v6087_v42 = vpop.f32.mrf.mxu1  ;;  %v6095_v22 = vadd.f32 %v1929_v51, %v1817_v9  ;;  %3276 = vmatprep.subr.bf16.mxu0 %v4769_v48  ;;  %3380 = vmatpush1.bf16.msra.mxu1 %v4800_v1  ;;  %v4773_v51 = vld [vmem:[%s6626_s3 + $0x90] ss:$8 sps:$4 sm:$0xff]   ;;  %v4806_v9 = vld [vmem:[%s6626_s3 + $0x1e0] ss:$8 sps:$4 sm:$0xff]  }
 0x13e   : > { %v1822_v32 = vpop.f32.mrf.mxu0  ;;  %2499 = vmatmul.mubr.bf16.gmra.mxu0 %v6651_v21  ;;  %3381 = vmatprep.subr.bf16.mxu1 %v4805_v24 }
 0x13f   : > { %v1935_v17 = vpop.f32.mrf.mxu1  ;;  %4222 = vmatmul.mubr.msk.bf16.gmra.mxu1 %vm1703_vm0, %v6652_v61  ;;  %v1823_v55 = vadd.f32 %v1822_v32, %v5860_v46  ;;  %2508 = vmatprep.mubr.bf16.mxu0 %v6653_v62 }
 0x140   : > { %2621 = vmatprep.mubr.bf16.mxu1 %v6647_v54  ;;  %v1824_v36 = vpop.f32.mrf.mxu0  ;;  %3277 = vmatpush2.bf16.msra.mxu0 %v4767_v43  ;;  %v4778_v43 = vld [vmem:[%s6626_s3 + $0x84] ss:$8 sps:$4 sm:$0xff]  }
 0x141   : > { %v1937_v37 = vpop.f32.mrf.mxu1  ;;  %v6115_v13 = vadd.f32 %v1935_v17, %v1823_v55  ;;  %v1825_v54 = vadd.f32 %v1824_v36, %v5867_v40  ;;  %3278 = vmatprep.subr.bf16.mxu0 %v4772_v0  ;;  %3382 = vmatpush2.bf16.msra.mxu1 %v4803_v50  ;;  %v4811_v17 = vld [vmem:[%s6626_s3 + $0x1d4] ss:$8 sps:$4 sm:$0xff]   ;;  %v4776_v55 = vld [vmem:[%s6626_s3 + $0x80] ss:$8 sps:$4 sm:$0xff]   ;;  %v4814_v50 = vld [vmem:[%s6626_s3 + $0x1c4] ss:$8 sps:$4 sm:$0xff]  }
 0x142   : > { %v1826_v52 = vpop.f32.mrf.mxu0  ;;  %3383 = vmatprep.subr.bf16.mxu1 %v4808_v29 }
 0x143   : > { %v1939_v53 = vpop.f32.mrf.mxu1  ;;  %v6121_v23 = vadd.f32 %v1937_v37, %v1825_v54  ;;  %v1827_v25 = vadd.f32 %v1826_v52, %v5860_v46  ;;  %v4812_v52 = vld [vmem:[%s6626_s3 + $0x1c0] ss:$8 sps:$4 sm:$0xff]  }
 0x144   : > { %v6127_v48 = vpop.f32.mrf.mxu0  ;;  %3279 = vmatpush2.bf16.msra.mxu0 %v4770_v47 }
 0x145   : > { %v6129_v49 = vpop.f32.mrf.mxu1  ;;  %v6137_v14 = vadd.f32 %v1939_v53, %v1827_v25  ;;  %3280 = vmatprep.subr.bf16.mxu0 %v4775_v41  ;;  %3384 = vmatpush2.bf16.msra.mxu1 %v4806_v9  ;;  %v1769_v9 = vadd.f32 %v5890_v18, %v5867_v40 }
 0x146   : > { %v1832_v1 = vpop.f32.mrf.mxu0  ;;  %2509 = vmatmul.mubr.bf16.gmra.mxu0 %v5692_v30  ;;  %v4809_v30 = vld [vmem:[%s6626_s3 + $0x1d0] ss:$8 sps:$4 sm:$0xff]   ;;  %3385 = vmatprep.subr.bf16.mxu1 %v4811_v17 }
 0x147   : > { %v1945_v0 = vpop.f32.mrf.mxu1  ;;  %4223 = vmatmul.mubr.msk.bf16.gmra.mxu1 %vm1703_vm0, %v5694_v3  ;;  %v1833_v32 = vadd.f32 %v1832_v1, %v5860_v46  ;;  %v1882_v18 = vadd.f32 %v5892_v19, %v1769_v9  ;;  %v4823_v19 = vld [vmem:[%s6626_s3 + $0x194] ss:$8 sps:$4 sm:$0xff]  }
 0x148   : > { %v1834_v21 = vpop.f32.mrf.mxu0  ;;  %3281 = vmatpush2.bf16.msra.mxu0 %v4773_v51  ;;  %v4817_v51 = vld [vmem:[%s6626_s3 + $0x1b4] ss:$8 sps:$4 sm:$0xff]  }
 0x149   : > { %v1947_v61 = vpop.f32.mrf.mxu1  ;;  %v6155_v62 = vadd.f32 %v1945_v0, %v1833_v32  ;;  %v1835_v3 = vadd.f32 %v1834_v21, %v5867_v40  ;;  %3282 = vmatprep.subr.bf16.mxu0 %v4778_v43  ;;  %3386 = vmatpush2.bf16.msra.mxu1 %v4809_v30  ;;  %v4815_v0 = vld [vmem:[%s6626_s3 + $0x1b0] ss:$8 sps:$4 sm:$0xff]  }
 0x14a   : > { %v1836_v24 = vpop.f32.mrf.mxu0  ;;  %3387 = vmatprep.subr.bf16.mxu1 %v4814_v50 }
 0x14b   : > { %v1949_v36 = vpop.f32.mrf.mxu1  ;;  %v6158_v37 = vadd.f32 %v1947_v61, %v1835_v3  ;;  %v1837_v47 = vadd.f32 %v1836_v24, %v5860_v46 }
 0x14c   : > { %v6164_v54 = vpop.f32.mrf.mxu0  ;;  %3283 = vmatpush2.bf16.msra.mxu0 %v4776_v55  ;;  %v4820_v55 = vld [vmem:[%s6626_s3 + $0x1a4] ss:$8 sps:$4 sm:$0xff]  }
 0x14d   : > { %v6166_v41 = vpop.f32.mrf.mxu1  ;;  %v6171_v53 = vadd.f32 %v1949_v36, %v1837_v47  ;;  %3388 = vmatpush2.bf16.msra.mxu1 %v4812_v52  ;;  %v4818_v36 = vld [vmem:[%s6626_s3 + $0x1a0] ss:$8 sps:$4 sm:$0xff]  }
 0x14e   : > { %v1988_v25 = vpop.f32.mrf.mxu0  ;;  %3389 = vmatprep.subr.bf16.mxu1 %v4817_v51 }
 0x14f   : > { %v2101_v29 = vpop.f32.mrf.mxu1  ;;  %v1989_v46 = vadd.f32 %v1988_v25, %v5881_v44 }
 0x150   : > { %v1990_v43 = vpop.f32.mrf.mxu0 }
 0x151   : > { %v2103_v1 = vpop.f32.mrf.mxu1  ;;  %v2102_v32 = vadd.f32 %v2101_v29, %v1989_v46  ;;  %v1991_v17 = vadd.f32 %v1990_v43, %v5887_v56  ;;  %3390 = vmatpush2.bf16.msra.mxu1 %v4815_v0  ;;  %v1779_v46 = vadd.f32 %v5920_v12, %v5867_v40  ;;  %v4821_v0 = vld [vmem:[%s6626_s3 + $0x190] ss:$8 sps:$4 sm:$0xff]  }
 0x152   : > { %v1992_v21 = vpop.f32.mrf.mxu0  ;;  %3391 = vmatprep.subr.bf16.mxu1 %v4820_v55 }
 0x153   : > { %v2105_v44 = vpop.f32.mrf.mxu1  ;;  %v1993_v61 = vadd.f32 %v1992_v21, %v5897_v26  ;;  %v2696_v30 = vmul.f32 0.2, %v2102_v32  ;;  %vm2632_vm1 = vcmp.gt.f32.partialorder %v2102_v32, 0.0  ;;  %v2104_v56 = vadd.f32 %v2103_v1, %v1991_v17 }
 0x154   : > { %v1994_v3 = vpop.f32.mrf.mxu0 }
 0x155   : > { %v2107_v24 = vpop.f32.mrf.mxu1  ;;  %v2106_v47 = vadd.f32 %v2105_v44, %v1993_v61  ;;  %v1995_v50 = vadd.f32 %v1994_v3, %v1882_v18  ;;  %v2760_v51 = vsel %vm2632_vm1, %v2102_v32, %v2696_v30  ;;  %3392 = vmatpush2.bf16.msra.mxu1 %v4818_v36  ;;  %v2697_v17 = vmul.f32 0.2, %v2104_v56  ;;  %v4826_v30 = vld [vmem:[%s6626_s3 + $0x184] ss:$8 sps:$4 sm:$0xff]  }
 0x156   : > { %v1998_v26 = vpop.f32.mrf.mxu0  ;;  %3393 = vmatprep.subr.bf16.mxu1 %v4823_v19  ;;  %vm2633_vm3 = vcmp.gt.f32.partialorder %v2104_v56, 0.0  ;;  %v1892_v3 = vadd.f32 %v5922_v28, %v1779_v46 }
 0x157   : > { %v2111_v52 = vpop.f32.mrf.mxu1  ;;  %vm2636_vm2 = vcmp.gt.f32.partialorder %v2106_v47, 0.0  ;;  %v2700_v25 = vmul.f32 0.2, %v2106_v47  ;;  %v1999_v29 = vadd.f32 %v1998_v26, %v5911_v59  ;;  %v2108_v9 = vadd.f32 %v2107_v24, %v1995_v50 }
 0x158   : > { %v2000_v43 = vpop.f32.mrf.mxu0 }
 0x159   : > { %v2113_v1 = vpop.f32.mrf.mxu1  ;;  %v2764_v21 = vsel %vm2636_vm2, %v2106_v47, %v2700_v25  ;;  %v2112_v44 = vadd.f32 %v2111_v52, %v1999_v29  ;;  %v2001_v59 = vadd.f32 %v2000_v43, %v5917_v8  ;;  %vm2637_vm4 = vcmp.gt.f32.partialorder %v2108_v9, 0.0  ;;  %3394 = vmatpush2.bf16.msra.mxu1 %v4821_v0  ;;  %v4824_v8 = vld [vmem:[%s6626_s3 + $0x180] ss:$8 sps:$4 sm:$0xff]  }
 0x15a   : > { %v2824_v61 = vpack.c.bf16 %v2764_v21, %v2760_v51  ;;  %v2701_v55 = vmul.f32 0.2, %v2108_v9  ;;  %v2002_v12 = vpop.f32.mrf.mxu0  ;;  %3395 = vmatprep.subr.bf16.mxu1 %v4826_v30 }
 0x15b   : > { %v2115_v32 = vpop.f32.mrf.mxu1  ;;  %v2003_v18 = vadd.f32 %v2002_v12, %v5927_v31  ;;  %v2704_v24 = vmul.f32 0.2, %v2112_v44  ;;  %vm2640_vm5 = vcmp.gt.f32.partialorder %v2112_v44, 0.0  ;;  %v2114_v26 = vadd.f32 %v2113_v1, %v2001_v59 }
 0x15c   : > { %v2004_v36 = vpop.f32.mrf.mxu0  ;;  %v2765_v50 = vsel %vm2637_vm4, %v2108_v9, %v2701_v55  ;;  %v2761_v31 = vsel %vm2633_vm3, %v2104_v56, %v2697_v17  ;;  %v1789_v9 = vadd.f32 %v5959_v20, %v5867_v40 }
 0x15d   : > { %v2117_v47 = vpop.f32.mrf.mxu1  ;;  %v2116_v52 = vadd.f32 %v2115_v32, %v2003_v18  ;;  %v2005_v25 = vadd.f32 %v2004_v36, %v1892_v3  ;;  %v2825_v51 = vpack.c.bf16 %v2765_v50, %v2761_v31  ;;  %v2768_v43 = vsel %vm2640_vm5, %v2112_v44, %v2704_v24  ;;  %3396 = vmatpush2.bf16.msra.mxu1 %v4824_v8 }
 0x15e   : > { %v2008_v29 = vpop.f32.mrf.mxu0  ;;  %v2705_v59 = vmul.f32 0.2, %v2114_v26  ;;  %vm2641_vm7 = vcmp.gt.f32.partialorder %v2114_v26, 0.0  ;;  %v1902_v44 = vadd.f32 %v5961_v35, %v1789_v9 }
 0x15f   : > { %v2121_v19 = vpop.f32.mrf.mxu1  ;;  %vm2644_vm6 = vcmp.gt.f32.partialorder %v2116_v52, 0.0  ;;  %v2708_v28 = vmul.f32 0.2, %v2116_v52  ;;  %v2009_v46 = vadd.f32 %v2008_v29, %v5947_v16  ;;  %v2118_v0 = vadd.f32 %v2117_v47, %v2005_v25  ;;  %3284 = vmatprep.mubr.bf16.mxu0 %v2825_v51 }
 0x160   : > { %v2010_v21 = vpop.f32.mrf.mxu0  ;;  %3285 = vmatmul.mubr.bf16.vlgmr.msra.gmra.mxu0 %v2824_v61  ;;  %v2769_v61 = vsel %vm2641_vm7, %v2114_v26, %v2705_v59 }
 0x161   : > { %v2123_v1 = vpop.f32.mrf.mxu1  ;;  %v2772_v56 = vsel %vm2644_vm6, %v2116_v52, %v2708_v28  ;;  %v2122_v17 = vadd.f32 %v2121_v19, %v2009_v46  ;;  %v2011_v55 = vadd.f32 %v2010_v21, %v5953_v15  ;;  %vm2645_vm8 = vcmp.gt.f32.partialorder %v2118_v0, 0.0 }
 0x162   : > { %v2828_v12 = vpack.c.bf16 %v2772_v56, %v2768_v43  ;;  %v2709_v32 = vmul.f32 0.2, %v2118_v0  ;;  %v2012_v16 = vpop.f32.mrf.mxu0 }
 0x163   : > { %v2125_v18 = vpop.f32.mrf.mxu1  ;;  %v2013_v20 = vadd.f32 %v2012_v16, %v5969_v60  ;;  %v2712_v30 = vmul.f32 0.2, %v2122_v17  ;;  %vm2648_vm9 = vcmp.gt.f32.partialorder %v2122_v17, 0.0  ;;  %v2124_v47 = vadd.f32 %v2123_v1, %v2011_v55 }
 0x164   : > { %v2014_v3 = vpop.f32.mrf.mxu0  ;;  %v2773_v36 = vsel %vm2645_vm8, %v2118_v0, %v2709_v32  ;;  %v1799_v60 = vadd.f32 %v6001_v7, %v5867_v40 }
 0x165   : > { %v2127_v24 = vpop.f32.mrf.mxu1  ;;  %v2126_v50 = vadd.f32 %v2125_v18, %v2013_v20  ;;  %v2015_v8 = vadd.f32 %v2014_v3, %v1902_v44  ;;  %v2829_v31 = vpack.c.bf16 %v2773_v36, %v2769_v61  ;;  %v2776_v35 = vsel %vm2648_vm9, %v2122_v17, %v2712_v30 }
 0x166   : > { %v2018_v15 = vpop.f32.mrf.mxu0  ;;  %v2713_v46 = vmul.f32 0.2, %v2124_v47  ;;  %vm2649_vm11 = vcmp.gt.f32.partialorder %v2124_v47, 0.0  ;;  %v1912_v7 = vadd.f32 %v6003_v45, %v1799_v60 }
 0x167   : > { %v2131_v52 = vpop.f32.mrf.mxu1  ;;  %vm2652_vm10 = vcmp.gt.f32.partialorder %v2126_v50, 0.0  ;;  %v2716_v25 = vmul.f32 0.2, %v2126_v50  ;;  %v2019_v29 = vadd.f32 %v2018_v15, %v5989_v39  ;;  %v2128_v19 = vadd.f32 %v2127_v24, %v2015_v8  ;;  %3294 = vmatprep.mubr.bf16.mxu0 %v2829_v31 }
 0x168   : > { %v2020_v51 = vpop.f32.mrf.mxu0  ;;  %3295 = vmatmul.mubr.bf16.gmra.mxu0 %v2828_v12  ;;  %v2777_v12 = vsel %vm2649_vm11, %v2124_v47, %v2713_v46 }
 0x169   : > { %v2133_v28 = vpop.f32.mrf.mxu1  ;;  %v2780_v9 = vsel %vm2652_vm10, %v2126_v50, %v2716_v25  ;;  %v2132_v43 = vadd.f32 %v2131_v52, %v2019_v29  ;;  %v2021_v26 = vadd.f32 %v2020_v51, %v5995_v57  ;;  %vm2653_vm12 = vcmp.gt.f32.partialorder %v2128_v19, 0.0 }
 0x16a   : > { %v2832_v0 = vpack.c.bf16 %v2780_v9, %v2776_v35  ;;  %v2717_v21 = vmul.f32 0.2, %v2128_v19  ;;  %v2022_v1 = vpop.f32.mrf.mxu0 }
 0x16b   : > { %v2135_v39 = vpop.f32.mrf.mxu1  ;;  %v2023_v59 = vadd.f32 %v2022_v1, %v6011_v33  ;;  %v2720_v56 = vmul.f32 0.2, %v2132_v43  ;;  %vm2656_vm13 = vcmp.gt.f32.partialorder %v2132_v43, 0.0  ;;  %v2134_v16 = vadd.f32 %v2133_v28, %v2021_v26 }
 0x16c   : > { %v2024_v17 = vpop.f32.mrf.mxu0  ;;  %v2781_v32 = vsel %vm2653_vm12, %v2128_v19, %v2717_v21  ;;  %v1809_v33 = vadd.f32 %v6043_v63, %v5867_v40 }
 0x16d   : > { %v2137_v55 = vpop.f32.mrf.mxu1  ;;  %v2136_v18 = vadd.f32 %v2135_v39, %v2023_v59  ;;  %v2025_v20 = vadd.f32 %v2024_v17, %v1912_v7  ;;  %v2833_v30 = vpack.c.bf16 %v2781_v32, %v2777_v12  ;;  %v2784_v45 = vsel %vm2656_vm13, %v2132_v43, %v2720_v56 }
 0x16e   : > { %v2028_v57 = vpop.f32.mrf.mxu0  ;;  %v2721_v8 = vmul.f32 0.2, %v2134_v16  ;;  %vm2657_vm15 = vcmp.gt.f32.partialorder %v2134_v16, 0.0  ;;  %v1922_v63 = vadd.f32 %v6045_v27, %v1809_v33 }
 0x16f   : > { %v2141_v44 = vpop.f32.mrf.mxu1  ;;  %vm2660_vm14 = vcmp.gt.f32.partialorder %v2136_v18, 0.0  ;;  %v2724_v3 = vmul.f32 0.2, %v2136_v18  ;;  %v2029_v24 = vadd.f32 %v2028_v57, %v6031_v5  ;;  %v2138_v36 = vadd.f32 %v2137_v55, %v2025_v20  ;;  %3304 = vmatprep.mubr.bf16.mxu0 %v2833_v30 }
 0x170   : > { %v2030_v50 = vpop.f32.mrf.mxu0  ;;  %3305 = vmatmul.mubr.bf16.gmra.mxu0 %v2832_v0  ;;  %v2785_v43 = vsel %vm2657_vm15, %v2134_v16, %v2721_v8 }
 0x171   : > { %v2143_v61 = vpop.f32.mrf.mxu1  ;;  %v2788_v15 = vsel %vm2660_vm14, %v2136_v18, %v2724_v3  ;;  %v2142_v52 = vadd.f32 %v2141_v44, %v2029_v24  ;;  %v2031_v47 = vadd.f32 %v2030_v50, %v6037_v38  ;;  %vm2661_vm0 = vcmp.gt.f32.partialorder %v2138_v36, 0.0 }
 0x172   : > { %v2836_v31 = vpack.c.bf16 %v2788_v15, %v2784_v45  ;;  %v2725_v25 = vmul.f32 0.2, %v2138_v36  ;;  %v2032_v29 = vpop.f32.mrf.mxu0 }
 0x173   : > { %v2145_v5 = vpop.f32.mrf.mxu1  ;;  %v2033_v60 = vadd.f32 %v2032_v29, %v6053_v4  ;;  %v2728_v35 = vmul.f32 0.2, %v2142_v52  ;;  %vm2664_vm1 = vcmp.gt.f32.partialorder %v2142_v52, 0.0  ;;  %v2144_v46 = vadd.f32 %v2143_v61, %v2031_v47 }
 0x174   : > { %v2034_v19 = vpop.f32.mrf.mxu0  ;;  %v2789_v28 = vsel %vm2661_vm0, %v2138_v36, %v2725_v25  ;;  %v1819_v4 = vadd.f32 %v6085_v2, %v5867_v40 }
 0x175   : > { %v2147_v51 = vpop.f32.mrf.mxu1  ;;  %v2146_v9 = vadd.f32 %v2145_v5, %v2033_v60  ;;  %v2035_v26 = vadd.f32 %v2034_v19, %v1922_v63  ;;  %v2837_v21 = vpack.c.bf16 %v2789_v28, %v2785_v43  ;;  %v2792_v27 = vsel %vm2664_vm1, %v2142_v52, %v2728_v35 }
 0x176   : > { %v2038_v38 = vpop.f32.mrf.mxu0  ;;  %v2729_v17 = vmul.f32 0.2, %v2144_v46  ;;  %vm2665_vm3 = vcmp.gt.f32.partialorder %v2144_v46, 0.0  ;;  %v1932_v2 = vadd.f32 %v6087_v42, %v1819_v4 }
 0x177   : > { %v2151_v0 = vpop.f32.mrf.mxu1  ;;  %vm2668_vm2 = vcmp.gt.f32.partialorder %v2146_v9, 0.0  ;;  %v2732_v1 = vmul.f32 0.2, %v2146_v9  ;;  %v2039_v39 = vadd.f32 %v2038_v38, %v6073_v10  ;;  %v2148_v59 = vadd.f32 %v2147_v51, %v2035_v26  ;;  %3314 = vmatprep.mubr.bf16.mxu0 %v2837_v21 }
 0x178   : > { %v2040_v7 = vpop.f32.mrf.mxu0  ;;  %3315 = vmatmul.mubr.bf16.gmra.mxu0 %v2836_v31  ;;  %v2793_v36 = vsel %vm2665_vm3, %v2144_v46, %v2729_v17 }
 0x179   : > { %v2153_v56 = vpop.f32.mrf.mxu1  ;;  %v2796_v55 = vsel %vm2668_vm2, %v2146_v9, %v2732_v1  ;;  %v2152_v32 = vadd.f32 %v2151_v0, %v2039_v39  ;;  %v2041_v16 = vadd.f32 %v2040_v7, %v6079_v58  ;;  %vm2669_vm4 = vcmp.gt.f32.partialorder %v2148_v59, 0.0 }
 0x17a   : > { %v2840_v18 = vpack.c.bf16 %v2796_v55, %v2792_v27  ;;  %v2733_v12 = vmul.f32 0.2, %v2148_v59  ;;  %v2042_v20 = vpop.f32.mrf.mxu0 }
 0x17b   : > { %v2155_v10 = vpop.f32.mrf.mxu1  ;;  %v2043_v57 = vadd.f32 %v2042_v20, %v6095_v22  ;;  %v2736_v44 = vmul.f32 0.2, %v2152_v32  ;;  %vm2672_vm5 = vcmp.gt.f32.partialorder %v2152_v32, 0.0  ;;  %v2154_v33 = vadd.f32 %v2153_v56, %v2041_v16 }
 0x17c   : > { %v2044_v30 = vpop.f32.mrf.mxu0  ;;  %v2797_v24 = vsel %vm2669_vm4, %v2148_v59, %v2733_v12  ;;  %v1829_v22 = vadd.f32 %v6127_v48, %v5867_v40 }
 0x17d   : > { %v2157_v3 = vpop.f32.mrf.mxu1  ;;  %v2156_v45 = vadd.f32 %v2155_v10, %v2043_v57  ;;  %v2045_v50 = vadd.f32 %v2044_v30, %v1932_v2  ;;  %v2841_v8 = vpack.c.bf16 %v2797_v24, %v2793_v36  ;;  %v2800_v42 = vsel %vm2672_vm5, %v2152_v32, %v2736_v44 }
 0x17e   : > { %v2048_v58 = vpop.f32.mrf.mxu0  ;;  %v2737_v29 = vmul.f32 0.2, %v2154_v33  ;;  %vm2673_vm7 = vcmp.gt.f32.partialorder %v2154_v33, 0.0  ;;  %v1942_v48 = vadd.f32 %v6129_v49, %v1829_v22  ;;  %v1839_v49 = vadd.f32 %v6164_v54, %v5867_v40  ;;  %v4847_v54 = vld [vmem:[%s6625_s2] sm:$0xf] }
 0x17f   : > { %v2161_v61 = vpop.f32.mrf.mxu1  ;;  %vm2676_vm6 = vcmp.gt.f32.partialorder %v2156_v45, 0.0  ;;  %v2740_v15 = vmul.f32 0.2, %v2156_v45  ;;  %v2049_v52 = vadd.f32 %v2048_v58, %v6115_v13  ;;  %v2158_v47 = vadd.f32 %v2157_v3, %v2045_v50  ;;  %3324 = vmatprep.mubr.bf16.mxu0 %v2841_v8 }
 0x180   : > { %v2050_v31 = vpop.f32.mrf.mxu0  ;;  %3325 = vmatmul.mubr.bf16.gmra.mxu0 %v2840_v18  ;;  %v2801_v21 = vsel %vm2673_vm7, %v2154_v33, %v2737_v29  ;;  %v717_v32 = vsub.s32 3, %v5837_v11  ;;  %v1952_v30 = vadd.f32 %v6166_v41, %v1839_v49 }
 0x181   : > { %v2163_v25 = vpop.f32.mrf.mxu1  ;;  %v2804_v5 = vsel %vm2676_vm6, %v2156_v45, %v2740_v15  ;;  %v2162_v60 = vadd.f32 %v2161_v61, %v2049_v52  ;;  %v2051_v63 = vadd.f32 %v2050_v31, %v6121_v23  ;;  %vm2677_vm8 = vcmp.gt.f32.partialorder %v2158_v47, 0.0 }
 0x182   : > { %v2844_v35 = vpack.c.bf16 %v2804_v5, %v2800_v42  ;;  %v2741_v19 = vmul.f32 0.2, %v2158_v47  ;;  %v2052_v51 = vpop.f32.mrf.mxu0  ;;  %v6254_v58 = vrot.slane %v4847_v54, %v717_v32 }
 0x183   : > { %v2165_v13 = vpop.f32.mrf.mxu1  ;;  %v2053_v28 = vadd.f32 %v2052_v51, %v6137_v14  ;;  %v2744_v46 = vmul.f32 0.2, %v2162_v60  ;;  %vm2680_vm9 = vcmp.gt.f32.partialorder %v2162_v60, 0.0  ;;  %v2164_v38 = vadd.f32 %v2163_v25, %v2051_v63 }
 0x184   : > { %v2054_v9 = vpop.f32.mrf.mxu0  ;;  %v2805_v26 = vsel %vm2677_vm8, %v2158_v47, %v2741_v19  ;;  %v713_v14 = vsub.s32 2, %v5837_v11 }
 0x185   : > { %v2167_v43 = vpop.f32.mrf.mxu1  ;;  %v2166_v0 = vadd.f32 %v2165_v13, %v2053_v28  ;;  %v2055_v1 = vadd.f32 %v2054_v9, %v1942_v48  ;;  %v2845_v4 = vpack.c.bf16 %v2805_v26, %v2801_v21  ;;  %v2808_v7 = vsel %vm2680_vm9, %v2162_v60, %v2744_v46 }
 0x186   : > { %v2058_v23 = vpop.f32.mrf.mxu0  ;;  %v2745_v16 = vmul.f32 0.2, %v2164_v38  ;;  %vm2681_vm11 = vcmp.gt.f32.partialorder %v2164_v38, 0.0  ;;  %v6250_v44 = vrot.slane %v4847_v54, %v713_v14 }
 0x187   : > { %v2171_v39 = vpop.f32.mrf.mxu1  ;;  %vm2684_vm10 = vcmp.gt.f32.partialorder %v2166_v0, 0.0  ;;  %v2748_v27 = vmul.f32 0.2, %v2166_v0  ;;  %v2059_v59 = vadd.f32 %v2058_v23, %v6155_v62  ;;  %v2168_v56 = vadd.f32 %v2167_v43, %v2055_v1  ;;  %3334 = vmatprep.mubr.bf16.mxu0 %v2845_v4 }
 0x188   : > { %v2060_v17 = vpop.f32.mrf.mxu0  ;;  %3335 = vmatmul.mubr.bf16.gmra.mxu0 %v2844_v35  ;;  %v2809_v50 = vsel %vm2681_vm11, %v2164_v38, %v2745_v16 }
 0x189   : > { %v2173_v55 = vpop.f32.mrf.mxu1  ;;  %v2812_v18 = vsel %vm2684_vm10, %v2166_v0, %v2748_v27  ;;  %v2172_v12 = vadd.f32 %v2171_v39, %v2059_v59  ;;  %v2061_v20 = vadd.f32 %v2060_v17, %v6158_v37  ;;  %vm2685_vm12 = vcmp.gt.f32.partialorder %v2168_v56, 0.0 }
 0x18a   : > { %v2848_v62 = vpack.c.bf16 %v2812_v18, %v2808_v7  ;;  %v2749_v10 = vmul.f32 0.2, %v2168_v56  ;;  %v2062_v57 = vpop.f32.mrf.mxu0 }
 0x18b   : > { %v2175_v2 = vpop.f32.mrf.mxu1  ;;  %v2063_v40 = vadd.f32 %v2062_v57, %v6171_v53  ;;  %v2752_v3 = vmul.f32 0.2, %v2172_v12  ;;  %v2174_v24 = vadd.f32 %v2173_v55, %v2061_v20  ;;  %vm2688_vm13 = vcmp.gt.f32.partialorder %v2172_v12, 0.0 }
 0x18c   : > { %v2064_v33 = vpop.f32.mrf.mxu0  ;;  %v2813_v45 = vsel %vm2685_vm12, %v2168_v56, %v2749_v10 }
 0x18d   : > { %v2177_v37 = vpop.f32.mrf.mxu1  ;;  %v2176_v36 = vadd.f32 %v2175_v2, %v2063_v40  ;;  %v2065_v53 = vadd.f32 %v2064_v33, %v1952_v30  ;;  %v2849_v15 = vpack.c.bf16 %v2813_v45, %v2809_v50  ;;  %v2816_v41 = vsel %vm2688_vm13, %v2172_v12, %v2752_v3 }
 0x18e   : > { %v2214_v61 = vpop.f32.mrf.mxu0  ;;  %v2753_v42 = vmul.f32 0.2, %v2174_v24  ;;  %vm2689_vm15 = vcmp.gt.f32.partialorder %v2174_v24, 0.0 }
 0x18f   : > { %v2327_v8 = vpop.f32.mrf.mxu1  ;;  %vm2692_vm14 = vcmp.gt.f32.partialorder %v2176_v36, 0.0  ;;  %v2756_v52 = vmul.f32 0.2, %v2176_v36  ;;  %v2215_v22 = vadd.f32 %v2214_v61, %v6250_v44  ;;  %v2178_v47 = vadd.f32 %v2177_v37, %v2065_v53  ;;  %3344 = vmatprep.mubr.bf16.mxu0 %v2849_v15 }
 0x190   : > { %v2216_v31 = vpop.f32.mrf.mxu0  ;;  %3345 = vmatmul.mubr.bf16.gmra.mxu0 %v2848_v62  ;;  %v2817_v9 = vsel %vm2689_vm15, %v2174_v24, %v2753_v42 }
 0x191   : > { %v2329_v25 = vpop.f32.mrf.mxu1  ;;  %v2820_v29 = vsel %vm2692_vm14, %v2176_v36, %v2756_v52  ;;  %v6257_v5 = vadd.f32 %v2327_v8, %v2215_v22  ;;  %v2217_v60 = vadd.f32 %v2216_v31, %v6254_v58  ;;  %vm2693_vm0 = vcmp.gt.f32.partialorder %v2178_v47, 0.0 }
 0x192   : > { %v2852_v63 = vpack.c.bf16 %v2820_v29, %v2816_v41  ;;  %v2757_v35 = vmul.f32 0.2, %v2178_v47  ;;  %v2218_v19 = vpop.f32.mrf.mxu0 }
 0x193   : > { %v2331_v51 = vpop.f32.mrf.mxu1  ;;  %v6260_v13 = vadd.f32 %v2329_v25, %v2217_v60  ;;  %v2219_v28 = vadd.f32 %v2218_v19, %v6250_v44 }
 0x194   : > { %v6263_v48 = vpop.f32.mrf.mxu0  ;;  %v2821_v43 = vsel %vm2693_vm0, %v2178_v47, %v2757_v35 }
 0x195   : > { %v6265_v46 = vpop.f32.mrf.mxu1  ;;  %v6267_v26 = vadd.f32 %v2331_v51, %v2219_v28  ;;  %v2853_v38 = vpack.c.bf16 %v2821_v43, %v2817_v9 }
 0x196   : > { %v2224_v0 = vpop.f32.mrf.mxu0 }
 0x197   : > { %v2337_v21 = vpop.f32.mrf.mxu1  ;;  %v2225_v1 = vadd.f32 %v2224_v0, %v6250_v44  ;;  %3354 = vmatprep.mubr.bf16.mxu0 %v2853_v38 }
 0x198   : > { %v2226_v23 = vpop.f32.mrf.mxu0  ;;  %3355 = vmatmul.mubr.bf16.gmra.mxu0 %v2852_v63 }
 0x199   : > { %v2339_v39 = vpop.f32.mrf.mxu1  ;;  %v6270_v4 = vadd.f32 %v2337_v21, %v2225_v1  ;;  %v2227_v27 = vadd.f32 %v2226_v23, %v6254_v58 }
 0x19a   : > { %v2228_v59 = vpop.f32.mrf.mxu0 }
 0x19b   : > { %v2341_v14 = vpop.f32.mrf.mxu1  ;;  %v6273_v49 = vadd.f32 %v2339_v39, %v2227_v27  ;;  %v2229_v7 = vadd.f32 %v2228_v59, %v6250_v44 }
 0x19c   : > { %v6276_v56 = vpop.f32.mrf.mxu0 }
 0x19d   : > { %v6278_v17 = vpop.f32.mrf.mxu1  ;;  %v6280_v55 = vadd.f32 %v2341_v14, %v2229_v7 }
 0x19e   : > { %v2234_v32 = vpop.f32.mrf.mxu0 }
 0x19f   : > { %v2347_v16 = vpop.f32.mrf.mxu1  ;;  %v2235_v18 = vadd.f32 %v2234_v32, %v6250_v44 }
 0x1a0   : > { %v2236_v12 = vpop.f32.mrf.mxu0 }
 0x1a1   : > { %v2349_v20 = vpop.f32.mrf.mxu1  ;;  %v6283_v62 = vadd.f32 %v2347_v16, %v2235_v18  ;;  %v2237_v10 = vadd.f32 %v2236_v12, %v6254_v58 }
 0x1a2   : > { %v2238_v57 = vpop.f32.mrf.mxu0 }
 0x1a3   : > { %v2351_v2 = vpop.f32.mrf.mxu1  ;;  %v6286_v40 = vadd.f32 %v2349_v20, %v2237_v10  ;;  %v2239_v54 = vadd.f32 %v2238_v57, %v6250_v44 }
 0x1a4   : > { %v6289_v30 = vpop.f32.mrf.mxu0 }
 0x1a5   : > { %v6291_v3 = vpop.f32.mrf.mxu1  ;;  %v6293_v24 = vadd.f32 %v2351_v2, %v2239_v54 }
 0x1a6   : > { %v2244_v33 = vpop.f32.mrf.mxu0 }
 0x1a7   : > { %v2357_v37 = vpop.f32.mrf.mxu1  ;;  %v2245_v45 = vadd.f32 %v2244_v33, %v6250_v44 }
 0x1a8   : > { %v2246_v36 = vpop.f32.mrf.mxu0 }
 0x1a9   : > { %v2359_v50 = vpop.f32.mrf.mxu1  ;;  %v6296_v53 = vadd.f32 %v2357_v37, %v2245_v45  ;;  %v2247_v61 = vadd.f32 %v2246_v36, %v6254_v58 }
 0x1aa   : > { %v2248_v8 = vpop.f32.mrf.mxu0 }
 0x1ab   : > { %v2361_v15 = vpop.f32.mrf.mxu1  ;;  %v6299_v52 = vadd.f32 %v2359_v50, %v2247_v61  ;;  %v2249_v22 = vadd.f32 %v2248_v8, %v6250_v44 }
 0x1ac   : > { %v6302_v41 = vpop.f32.mrf.mxu0 }
 0x1ad   : > { %v6304_v42 = vpop.f32.mrf.mxu1  ;;  %v6306_v47 = vadd.f32 %v2361_v15, %v2249_v22 }
 0x1ae   : > { %v2254_v31 = vpop.f32.mrf.mxu0 }
 0x1af   : > { %v2367_v25 = vpop.f32.mrf.mxu1  ;;  %v2255_v29 = vadd.f32 %v2254_v31, %v6250_v44 }
 0x1b0   : > { %v2256_v60 = vpop.f32.mrf.mxu0 }
 0x1b1   : > { %v2369_v63 = vpop.f32.mrf.mxu1  ;;  %v6309_v35 = vadd.f32 %v2367_v25, %v2255_v29  ;;  %v2257_v19 = vadd.f32 %v2256_v60, %v6254_v58 }
 0x1b2   : > { %v2258_v51 = vpop.f32.mrf.mxu0 }
 0x1b3   : > { %v2371_v28 = vpop.f32.mrf.mxu1  ;;  %v6312_v9 = vadd.f32 %v2369_v63, %v2257_v19  ;;  %v2259_v43 = vadd.f32 %v2258_v51, %v6250_v44 }
 0x1b4   : > { %v6315_v38 = vpop.f32.mrf.mxu0 }
 0x1b5   : > { %v6317_v0 = vpop.f32.mrf.mxu1  ;;  %v6319_v21 = vadd.f32 %v2371_v28, %v2259_v43 }
 0x1b6   : > { %v2264_v1 = vpop.f32.mrf.mxu0 }
 0x1b7   : > { %v2377_v23 = vpop.f32.mrf.mxu1  ;;  %v2265_v39 = vadd.f32 %v2264_v1, %v6250_v44 }
 0x1b8   : > { %v2266_v27 = vpop.f32.mrf.mxu0 }
 0x1b9   : > { %v2379_v59 = vpop.f32.mrf.mxu1  ;;  %v6322_v14 = vadd.f32 %v2377_v23, %v2265_v39  ;;  %v2267_v7 = vadd.f32 %v2266_v27, %v6254_v58 }
 0x1ba   : > { %v2268_v32 = vpop.f32.mrf.mxu0 }
 0x1bb   : > { %v2381_v16 = vpop.f32.mrf.mxu1  ;;  %v6325_v18 = vadd.f32 %v2379_v59, %v2267_v7  ;;  %v2269_v12 = vadd.f32 %v2268_v32, %v6250_v44 }
 0x1bc   : > { %v6328_v20 = vpop.f32.mrf.mxu0 }
 0x1bd   : > { %v6330_v10 = vpop.f32.mrf.mxu1  ;;  %v6332_v57 = vadd.f32 %v2381_v16, %v2269_v12 }
 0x1be   : > { %v2274_v2 = vpop.f32.mrf.mxu0 }
 0x1bf   : > { %v2387_v54 = vpop.f32.mrf.mxu1  ;;  %v2275_v33 = vadd.f32 %v2274_v2, %v6250_v44 }
 0x1c0   : > { %v2276_v37 = vpop.f32.mrf.mxu0 }
 0x1c1   : > { %v2389_v45 = vpop.f32.mrf.mxu1  ;;  %v6335_v36 = vadd.f32 %v2387_v54, %v2275_v33  ;;  %v2277_v50 = vadd.f32 %v2276_v37, %v6254_v58  ;;  %v2221_v33 = vadd.f32 %v6263_v48, %v6254_v58 }
 0x1c2   : > { %v2278_v61 = vpop.f32.mrf.mxu0 }
 0x1c3   : > { %v2391_v8 = vpop.f32.mrf.mxu1  ;;  %v6338_v15 = vadd.f32 %v2389_v45, %v2277_v50  ;;  %v2279_v22 = vadd.f32 %v2278_v61, %v6250_v44 }
 0x1c4   : > { %v6341_v31 = vpop.f32.mrf.mxu0 }
 0x1c5   : > { %v6343_v25 = vpop.f32.mrf.mxu1  ;;  %v6345_v29 = vadd.f32 %v2391_v8, %v2279_v22 }
 0x1c6   : > { %v2284_v60 = vpop.f32.mrf.mxu0 }
 0x1c7   : > { %v2397_v63 = vpop.f32.mrf.mxu1  ;;  %v2285_v19 = vadd.f32 %v2284_v60, %v6250_v44  ;;  %v2334_v60 = vadd.f32 %v6265_v46, %v2221_v33 }
 0x1c8   : > { %v2286_v51 = vpop.f32.mrf.mxu0 }
 0x1c9   : > { %v2399_v28 = vpop.f32.mrf.mxu1  ;;  %v6348_v43 = vadd.f32 %v2397_v63, %v2285_v19  ;;  %v2287_v1 = vadd.f32 %v2286_v51, %v6254_v58 }
 0x1ca   : > { %v2288_v23 = vpop.f32.mrf.mxu0 }
 0x1cb   : > { %v2401_v39 = vpop.f32.mrf.mxu1  ;;  %v6351_v27 = vadd.f32 %v2399_v28, %v2287_v1  ;;  %v2289_v59 = vadd.f32 %v2288_v23, %v6250_v44 }
 0x1cc   : > { %v6354_v7 = vpop.f32.mrf.mxu0 }
 0x1cd   : > { %v6356_v32 = vpop.f32.mrf.mxu1  ;;  %v6358_v16 = vadd.f32 %v2401_v39, %v2289_v59 }
 0x1ce   : > { %v2440_v12 = vpop.f32.mrf.mxu0 }
 0x1cf   : > { %v2553_v2 = vpop.f32.mrf.mxu1  ;;  %v2441_v54 = vadd.f32 %v2440_v12, %v6257_v5 }
 0x1d0   : > { %v2442_v37 = vpop.f32.mrf.mxu0 }
 0x1d1   : > { %v2555_v45 = vpop.f32.mrf.mxu1  ;;  %v2554_v50 = vadd.f32 %v2553_v2, %v2441_v54  ;;  %v2443_v61 = vadd.f32 %v2442_v37, %v6260_v13  ;;  %v2231_v13 = vadd.f32 %v6276_v56, %v6254_v58 }
 0x1d2   : > { %v2444_v8 = vpop.f32.mrf.mxu0 }
 0x1d3   : > { %v2557_v44 = vpop.f32.mrf.mxu1  ;;  %v2445_v22 = vadd.f32 %v2444_v8, %v6267_v26  ;;  %v2698_v63 = vmul.f32 0.2, %v2554_v50  ;;  %vm2634_vm1 = vcmp.gt.f32.partialorder %v2554_v50, 0.0  ;;  %v2556_v28 = vadd.f32 %v2555_v45, %v2443_v61 }
 0x1d4   : > { %v2446_v19 = vpop.f32.mrf.mxu0 }
 0x1d5   : > { %v2559_v51 = vpop.f32.mrf.mxu1  ;;  %v2558_v5 = vadd.f32 %v2557_v44, %v2445_v22  ;;  %v2447_v1 = vadd.f32 %v2446_v19, %v2334_v60  ;;  %v2762_v12 = vsel %vm2634_vm1, %v2554_v50, %v2698_v63  ;;  %v2699_v54 = vmul.f32 0.2, %v2556_v28 }
 0x1d6   : > { %v2450_v23 = vpop.f32.mrf.mxu0  ;;  %vm2635_vm3 = vcmp.gt.f32.partialorder %v2556_v28, 0.0  ;;  %v2344_v60 = vadd.f32 %v6278_v17, %v2231_v13 }
 0x1d7   : > { %v2563_v48 = vpop.f32.mrf.mxu1  ;;  %vm2638_vm2 = vcmp.gt.f32.partialorder %v2558_v5, 0.0  ;;  %v2702_v39 = vmul.f32 0.2, %v2558_v5  ;;  %v2451_v59 = vadd.f32 %v2450_v23, %v6270_v4  ;;  %v2560_v26 = vadd.f32 %v2559_v51, %v2447_v1 }
 0x1d8   : > { %v2452_v2 = vpop.f32.mrf.mxu0  ;;  %v2763_v1 = vsel %vm2635_vm3, %v2556_v28, %v2699_v54  ;;  %v4827_v28 = vld [vmem:[%s6628_s5 + $0x78] sm:$0xff]  }
 0x1d9   : > { %v2565_v46 = vpop.f32.mrf.mxu1  ;;  %v2766_v33 = vsel %vm2638_vm2, %v2558_v5, %v2702_v39  ;;  %v2564_v37 = vadd.f32 %v2563_v48, %v2451_v59  ;;  %v2453_v45 = vadd.f32 %v2452_v2, %v6273_v49  ;;  %vm2639_vm4 = vcmp.gt.f32.partialorder %v2560_v26, 0.0  ;;  %4308 = vmatprep.subr.bf16.mxu0 %v4827_v28 }
 0x1da   : > { %v2826_v61 = vpack.c.bf16 %v2766_v33, %v2762_v12  ;;  %v2703_v8 = vmul.f32 0.2, %v2560_v26  ;;  %v2454_v44 = vpop.f32.mrf.mxu0 }
 0x1db   : > { %v2567_v22 = vpop.f32.mrf.mxu1  ;;  %v2455_v4 = vadd.f32 %v2454_v44, %v6280_v55  ;;  %v2706_v56 = vmul.f32 0.2, %v2564_v37  ;;  %vm2642_vm5 = vcmp.gt.f32.partialorder %v2564_v37, 0.0  ;;  %v2566_v51 = vadd.f32 %v2565_v46, %v2453_v45  ;;  %v4828_v46 = vld [vmem:[%s6628_s5 + $0x38] sm:$0xff]  }
 0x1dc   : > { %v2456_v50 = vpop.f32.mrf.mxu0  ;;  %v2767_v19 = vsel %vm2639_vm4, %v2560_v26, %v2703_v8  ;;  %v2241_v55 = vadd.f32 %v6289_v30, %v6254_v58  ;;  %4309 = vmatpush3.bf16.msra.mxu0 %v4828_v46 }
 0x1dd   : > { %v2569_v63 = vpop.f32.mrf.mxu1  ;;  %v2568_v5 = vadd.f32 %v2567_v22, %v2455_v4  ;;  %v2457_v23 = vadd.f32 %v2456_v50, %v2344_v60  ;;  %v2827_v39 = vpack.c.bf16 %v2767_v19, %v2763_v1  ;;  %v2770_v17 = vsel %vm2642_vm5, %v2564_v37, %v2706_v56  ;;  %v4830_v60 = vld [vmem:[%s6628_s5 + $0x30] sm:$0xff]   ;;  %v4831_v19 = vld [vmem:[%s6628_s5 + $0x68] sm:$0xff]  }
 0x1de   : > { %v2460_v49 = vpop.f32.mrf.mxu0  ;;  %v2707_v54 = vmul.f32 0.2, %v2566_v51  ;;  %vm2643_vm7 = vcmp.gt.f32.partialorder %v2566_v51, 0.0  ;;  %v2354_v56 = vadd.f32 %v6291_v3, %v2241_v55  ;;  %v2251_v55 = vadd.f32 %v6302_v41, %v6254_v58 }
 0x1df   : > { %v2573_v48 = vpop.f32.mrf.mxu1  ;;  %vm2646_vm6 = vcmp.gt.f32.partialorder %v2568_v5, 0.0  ;;  %v2710_v59 = vmul.f32 0.2, %v2568_v5  ;;  %v2461_v12 = vadd.f32 %v2460_v49, %v6283_v62  ;;  %v2570_v13 = vadd.f32 %v2569_v63, %v2457_v23  ;;  %3397 = vmatprep.mubr.bf16.mxu1 %v2827_v39  ;;  %v4829_v62 = vld [vmem:[%s6628_s5 + $0x70] sm:$0xff]  }
 0x1e0   : > { %v2462_v2 = vpop.f32.mrf.mxu0  ;;  %3398 = vmatmul.mubr.bf16.vlgmr.msra.gmra.mxu1 %v2826_v61  ;;  %4310 = vmatprep.subr.bf16.mxu0 %v4829_v62 }
 0x1e1   : > { %v2575_v26 = vpop.f32.mrf.mxu1  ;;  %v2774_v33 = vsel %vm2646_vm6, %v2568_v5, %v2710_v59  ;;  %v2574_v30 = vadd.f32 %v2573_v48, %v2461_v12  ;;  %v2463_v37 = vadd.f32 %v2462_v2, %v6286_v40  ;;  %vm2647_vm8 = vcmp.gt.f32.partialorder %v2570_v13, 0.0  ;;  %4311 = vmatpush3.bf16.msra.mxu0 %v4830_v60  ;;  %v4832_v12 = vld [vmem:[%s6628_s5 + $0x28] sm:$0xff]  }
 0x1e2   : > { %v2830_v45 = vpack.c.bf16 %v2774_v33, %v2770_v17  ;;  %v2711_v8 = vmul.f32 0.2, %v2570_v13  ;;  %v2464_v44 = vpop.f32.mrf.mxu0  ;;  %4312 = vmatprep.subr.bf16.mxu0 %v4831_v19 }
 0x1e3   : > { %v2577_v22 = vpop.f32.mrf.mxu1  ;;  %v2465_v4 = vadd.f32 %v2464_v44, %v6293_v24  ;;  %v2714_v50 = vmul.f32 0.2, %v2574_v30  ;;  %vm2650_vm9 = vcmp.gt.f32.partialorder %v2574_v30, 0.0  ;;  %v2576_v5 = vadd.f32 %v2575_v26, %v2463_v37  ;;  %v4833_v26 = vld [vmem:[%s6628_s5 + $0x60] sm:$0xff]  }
 0x1e4   : > { %v2466_v61 = vpop.f32.mrf.mxu0  ;;  %v2775_v40 = vsel %vm2647_vm8, %v2570_v13, %v2711_v8  ;;  %v2771_v24 = vsel %vm2643_vm7, %v2566_v51, %v2707_v54  ;;  %v4834_v8 = vld [vmem:[%s6628_s5 + $0x20] sm:$0xff]   ;;  %v2364_v44 = vadd.f32 %v6304_v42, %v2251_v55 }
 0x1e5   : > { %v2579_v63 = vpop.f32.mrf.mxu1  ;;  %v2578_v1 = vadd.f32 %v2577_v22, %v2465_v4  ;;  %v2467_v23 = vadd.f32 %v2466_v61, %v2354_v56  ;;  %v2831_v39 = vpack.c.bf16 %v2775_v40, %v2771_v24  ;;  %v2778_v17 = vsel %vm2650_vm9, %v2574_v30, %v2714_v50  ;;  %4313 = vmatpush3.bf16.msra.mxu0 %v4832_v12  ;;  %v4836_v24 = vld [vmem:[%s6628_s5 + $0x18] sm:$0xff]  }
 0x1e6   : > { %v2470_v49 = vpop.f32.mrf.mxu0  ;;  %v2715_v28 = vmul.f32 0.2, %v2576_v5  ;;  %vm2651_vm11 = vcmp.gt.f32.partialorder %v2576_v5, 0.0  ;;  %4314 = vmatprep.subr.bf16.mxu0 %v4833_v26  ;;  %v4838_v26 = vld [vmem:[%s6628_s5 + $0x10] sm:$0xff]  }
 0x1e7   : > { %v2583_v48 = vpop.f32.mrf.mxu1  ;;  %vm2654_vm10 = vcmp.gt.f32.partialorder %v2578_v1, 0.0  ;;  %v2718_v3 = vmul.f32 0.2, %v2578_v1  ;;  %v2471_v59 = vadd.f32 %v2470_v49, %v6296_v53  ;;  %v2580_v13 = vadd.f32 %v2579_v63, %v2467_v23  ;;  %3407 = vmatprep.mubr.bf16.mxu1 %v2831_v39 }
 0x1e8   : > { %v2472_v51 = vpop.f32.mrf.mxu0  ;;  %3408 = vmatmul.mubr.bf16.gmra.mxu1 %v2830_v45  ;;  %v2261_v23 = vadd.f32 %v6315_v38, %v6254_v58 }
 0x1e9   : > { %v2585_v2 = vpop.f32.mrf.mxu1  ;;  %v2782_v53 = vsel %vm2654_vm10, %v2578_v1, %v2718_v3  ;;  %v2584_v46 = vadd.f32 %v2583_v48, %v2471_v59  ;;  %v2473_v62 = vadd.f32 %v2472_v51, %v6299_v52  ;;  %vm2655_vm12 = vcmp.gt.f32.partialorder %v2580_v13, 0.0  ;;  %v4835_v52 = vld [vmem:[%s6628_s5 + $0x58] sm:$0xff]   ;;  %4315 = vmatpush3.bf16.msra.mxu0 %v4834_v8  ;;  %v4837_v3 = vld [vmem:[%s6628_s5 + $0x50] sm:$0xff]  }
 0x1ea   : > { %v2834_v54 = vpack.c.bf16 %v2782_v53, %v2778_v17  ;;  %v2719_v41 = vmul.f32 0.2, %v2580_v13  ;;  %v2474_v33 = vpop.f32.mrf.mxu0  ;;  %4316 = vmatprep.subr.bf16.mxu0 %v4835_v52 }
 0x1eb   : > { %v2587_v30 = vpop.f32.mrf.mxu1  ;;  %v2475_v37 = vadd.f32 %v2474_v33, %v6306_v47  ;;  %v2722_v22 = vmul.f32 0.2, %v2584_v46  ;;  %vm2658_vm13 = vcmp.gt.f32.partialorder %v2584_v46, 0.0  ;;  %v2586_v56 = vadd.f32 %v2585_v2, %v2473_v62 }
 0x1ec   : > { %v2476_v4 = vpop.f32.mrf.mxu0  ;;  %v2783_v60 = vsel %vm2655_vm12, %v2580_v13, %v2719_v41  ;;  %v2779_v47 = vsel %vm2651_vm11, %v2576_v5, %v2715_v28  ;;  %v2374_v28 = vadd.f32 %v6317_v0, %v2261_v23 }
 0x1ed   : > { %v2589_v45 = vpop.f32.mrf.mxu1  ;;  %v2588_v50 = vadd.f32 %v2587_v30, %v2475_v37  ;;  %v2477_v61 = vadd.f32 %v2476_v4, %v2364_v44  ;;  %v2835_v19 = vpack.c.bf16 %v2783_v60, %v2779_v47  ;;  %v2786_v49 = vsel %vm2658_vm13, %v2584_v46, %v2722_v22  ;;  %4317 = vmatpush3.bf16.msra.mxu0 %v4836_v24 }
 0x1ee   : > { %v2480_v63 = vpop.f32.mrf.mxu0  ;;  %v2723_v59 = vmul.f32 0.2, %v2586_v56  ;;  %vm2659_vm15 = vcmp.gt.f32.partialorder %v2586_v56, 0.0  ;;  %4318 = vmatprep.subr.bf16.mxu0 %v4837_v3  ;;  %v2271_v4 = vadd.f32 %v6328_v20, %v6254_v58 }
 0x1ef   : > { %v2593_v40 = vpop.f32.mrf.mxu1  ;;  %vm2662_vm14 = vcmp.gt.f32.partialorder %v2588_v50, 0.0  ;;  %v2726_v42 = vmul.f32 0.2, %v2588_v50  ;;  %v2481_v1 = vadd.f32 %v2480_v63, %v6309_v35  ;;  %v2590_v48 = vadd.f32 %v2589_v45, %v2477_v61  ;;  %3417 = vmatprep.mubr.bf16.mxu1 %v2835_v19 }
 0x1f0   : > { %v2482_v5 = vpop.f32.mrf.mxu0  ;;  %3418 = vmatmul.mubr.bf16.gmra.mxu1 %v2834_v54 }
 0x1f1   : > { %v2595_v39 = vpop.f32.mrf.mxu1  ;;  %v2790_v35 = vsel %vm2662_vm14, %v2588_v50, %v2726_v42  ;;  %v2594_v12 = vadd.f32 %v2593_v40, %v2481_v1  ;;  %v2483_v55 = vadd.f32 %v2482_v5, %v6312_v9  ;;  %vm2663_vm0 = vcmp.gt.f32.partialorder %v2590_v48, 0.0  ;;  %v4839_v9 = vld [vmem:[%s6628_s5 + $0x48] sm:$0xff]   ;;  %4319 = vmatpush3.bf16.msra.mxu0 %v4838_v26 }
 0x1f2   : > { %v2838_v17 = vpack.c.bf16 %v2790_v35, %v2786_v49  ;;  %v2727_v38 = vmul.f32 0.2, %v2590_v48  ;;  %v2484_v13 = vpop.f32.mrf.mxu0  ;;  %4320 = vmatprep.subr.bf16.mxu0 %v4839_v9  ;;  %v2384_v1 = vadd.f32 %v6330_v10, %v2271_v4 }
 0x1f3   : > { %v2597_v51 = vpop.f32.mrf.mxu1  ;;  %v2485_v2 = vadd.f32 %v2484_v13, %v6319_v21  ;;  %v2730_v53 = vmul.f32 0.2, %v2594_v12  ;;  %vm2666_vm1 = vcmp.gt.f32.partialorder %v2594_v12, 0.0  ;;  %v2596_v41 = vadd.f32 %v2595_v39, %v2483_v55 }
 0x1f4   : > { %v2486_v46 = vpop.f32.mrf.mxu0  ;;  %v2791_v54 = vsel %vm2663_vm0, %v2590_v48, %v2727_v38  ;;  %v2787_v21 = vsel %vm2659_vm15, %v2586_v56, %v2723_v59 }
 0x1f5   : > { %v2599_v62 = vpop.f32.mrf.mxu1  ;;  %v2598_v33 = vadd.f32 %v2597_v51, %v2485_v2  ;;  %v2487_v30 = vadd.f32 %v2486_v46, %v2374_v28  ;;  %v2839_v44 = vpack.c.bf16 %v2791_v54, %v2787_v21  ;;  %v2794_v45 = vsel %vm2666_vm1, %v2594_v12, %v2730_v53 }
 0x1f6   : > { %v2490_v37 = vpop.f32.mrf.mxu0  ;;  %v2731_v47 = vmul.f32 0.2, %v2596_v41  ;;  %vm2667_vm3 = vcmp.gt.f32.partialorder %v2596_v41, 0.0 }
 0x1f7   : > { %v2603_v8 = vpop.f32.mrf.mxu1  ;;  %vm2670_vm2 = vcmp.gt.f32.partialorder %v2598_v33, 0.0  ;;  %v2734_v0 = vmul.f32 0.2, %v2598_v33  ;;  %v2491_v22 = vadd.f32 %v2490_v37, %v6322_v14  ;;  %v2600_v60 = vadd.f32 %v2599_v62, %v2487_v30  ;;  %3427 = vmatprep.mubr.bf16.mxu1 %v2839_v44 }
 0x1f8   : > { %v2492_v52 = vpop.f32.mrf.mxu0  ;;  %3428 = vmatmul.mubr.bf16.gmra.mxu1 %v2838_v17  ;;  %v2795_v3 = vsel %vm2667_vm3, %v2596_v41, %v2731_v47 }
 0x1f9   : > { %v2605_v50 = vpop.f32.mrf.mxu1  ;;  %v2798_v56 = vsel %vm2670_vm2, %v2598_v33, %v2734_v0  ;;  %v2604_v61 = vadd.f32 %v2603_v8, %v2491_v22  ;;  %v2493_v63 = vadd.f32 %v2492_v52, %v6325_v18  ;;  %vm2671_vm4 = vcmp.gt.f32.partialorder %v2600_v60, 0.0 }
 0x1fa   : > { %v2842_v40 = vpack.c.bf16 %v2798_v56, %v2794_v45  ;;  %v2735_v14 = vmul.f32 0.2, %v2600_v60  ;;  %v2494_v19 = vpop.f32.mrf.mxu0 }
 0x1fb   : > { %v2607_v42 = vpop.f32.mrf.mxu1  ;;  %v2495_v20 = vadd.f32 %v2494_v19, %v6332_v57  ;;  %v2738_v24 = vmul.f32 0.2, %v2604_v61  ;;  %vm2674_vm5 = vcmp.gt.f32.partialorder %v2604_v61, 0.0  ;;  %v2606_v5 = vadd.f32 %v2605_v50, %v2493_v63 }
 0x1fc   : > { %v2496_v23 = vpop.f32.mrf.mxu0  ;;  %v2799_v48 = vsel %vm2671_vm4, %v2600_v60, %v2735_v14  ;;  %v2281_v57 = vadd.f32 %v6341_v31, %v6254_v58 }
 0x1fd   : > { %v2609_v49 = vpop.f32.mrf.mxu1  ;;  %v2608_v39 = vadd.f32 %v2607_v42, %v2495_v20  ;;  %v2497_v59 = vadd.f32 %v2496_v23, %v2384_v1  ;;  %v2843_v12 = vpack.c.bf16 %v2799_v48, %v2795_v3  ;;  %v2802_v10 = vsel %vm2674_vm5, %v2604_v61, %v2738_v24 }
 0x1fe   : > { %v2500_v18 = vpop.f32.mrf.mxu0  ;;  %v2739_v2 = vmul.f32 0.2, %v2606_v5  ;;  %vm2675_vm7 = vcmp.gt.f32.partialorder %v2606_v5, 0.0  ;;  %v2394_v31 = vadd.f32 %v6343_v25, %v2281_v57 }
 0x1ff   : > { %v2613_v35 = vpop.f32.mrf.mxu1  ;;  %vm2678_vm6 = vcmp.gt.f32.partialorder %v2608_v39, 0.0  ;;  %v2742_v55 = vmul.f32 0.2, %v2608_v39  ;;  %v2501_v17 = vadd.f32 %v2500_v18, %v6335_v36  ;;  %v2610_v38 = vadd.f32 %v2609_v49, %v2497_v59  ;;  %3437 = vmatprep.mubr.bf16.mxu1 %v2843_v12 }
 0x200   : > { %v2502_v13 = vpop.f32.mrf.mxu0  ;;  %3438 = vmatmul.mubr.bf16.gmra.mxu1 %v2842_v40  ;;  %v2803_v44 = vsel %vm2675_vm7, %v2606_v5, %v2739_v2 }
 0x201   : > { %v2615_v51 = vpop.f32.mrf.mxu1  ;;  %v2806_v26 = vsel %vm2678_vm6, %v2608_v39, %v2742_v55  ;;  %v2614_v28 = vadd.f32 %v2613_v35, %v2501_v17  ;;  %v2503_v53 = vadd.f32 %v2502_v13, %v6338_v15  ;;  %vm2679_vm8 = vcmp.gt.f32.partialorder %v2610_v38, 0.0  ;;  %v4842_v13 = vld [vmem:[%s6628_s5] sm:$0xff]  }
 0x202   : > { %v2846_v46 = vpack.c.bf16 %v2806_v26, %v2802_v10  ;;  %v2743_v62 = vmul.f32 0.2, %v2610_v38  ;;  %v2504_v54 = vpop.f32.mrf.mxu0  ;;  %v4840_v10 = vld [vmem:[%s6628_s5 + $0x8] sm:$0xff]  }
 0x203   : > { %v2617_v36 = vpop.f32.mrf.mxu1  ;;  %v2505_v9 = vadd.f32 %v2504_v54, %v6345_v29  ;;  %v2746_v41 = vmul.f32 0.2, %v2614_v28  ;;  %vm2682_vm9 = vcmp.gt.f32.partialorder %v2614_v28, 0.0  ;;  %v2616_v37 = vadd.f32 %v2615_v51, %v2503_v53  ;;  %4321 = vmatpush3.bf16.msra.mxu0 %v4840_v10 }
 0x204   : > { %v2506_v33 = vpop.f32.mrf.mxu0  ;;  %v2807_v30 = vsel %vm2679_vm8, %v2610_v38, %v2743_v62  ;;  %v2291_v29 = vadd.f32 %v6354_v7, %v6254_v58  ;;  %v4841_v38 = vld [vmem:[%s6628_s5 + $0x40] sm:$0xff]  }
 0x205   : > { %v2619_v21 = vpop.f32.mrf.mxu1  ;;  %v2618_v8 = vadd.f32 %v2617_v36, %v2505_v9  ;;  %v2507_v0 = vadd.f32 %v2506_v33, %v2394_v31  ;;  %v2847_v4 = vpack.c.bf16 %v2807_v30, %v2803_v44  ;;  %v2810_v25 = vsel %vm2682_vm9, %v2614_v28, %v2746_v41  ;;  %4322 = vmatprep.subr.bf16.mxu0 %v4841_v38 }
 0x206   : > { %v2510_v15 = vpop.f32.mrf.mxu0  ;;  %v2747_v56 = vmul.f32 0.2, %v2616_v37  ;;  %vm2683_vm11 = vcmp.gt.f32.partialorder %v2616_v37, 0.0  ;;  %v2404_v58 = vadd.f32 %v6356_v32, %v2291_v29 }
 0x207   : > { %v2623_v22 = vpop.f32.mrf.mxu1  ;;  %vm2686_vm10 = vcmp.gt.f32.partialorder %v2618_v8, 0.0  ;;  %v2750_v45 = vmul.f32 0.2, %v2618_v8  ;;  %v2511_v60 = vadd.f32 %v2510_v15, %v6348_v43  ;;  %v2620_v52 = vadd.f32 %v2619_v21, %v2507_v0  ;;  %3447 = vmatprep.mubr.bf16.mxu1 %v2847_v4  ;;  %4323 = vmatpush3.bf16.msra.mxu0 %v4842_v13 }
 0x208   : > { %v2512_v50 = vpop.f32.mrf.mxu0  ;;  %3448 = vmatmul.mubr.bf16.gmra.mxu1 %v2846_v46  ;;  %v2811_v48 = vsel %vm2683_vm11, %v2616_v37, %v2747_v56 }
 0x209   : > { %v2625_v47 = vpop.f32.mrf.mxu1  ;;  %v2814_v61 = vsel %vm2686_vm10, %v2618_v8, %v2750_v45  ;;  %v2624_v63 = vadd.f32 %v2623_v22, %v2511_v60  ;;  %v2513_v40 = vadd.f32 %v2512_v50, %v6351_v27  ;;  %vm2687_vm12 = vcmp.gt.f32.partialorder %v2620_v52, 0.0  ;;  %v2920_v8 = vld [vmem:[%s6627_s4] sm:$0x3] }
 0x20a   : > { %v2850_v14 = vpack.c.bf16 %v2814_v61, %v2810_v25  ;;  %v2751_v19 = vmul.f32 0.2, %v2620_v52  ;;  %v2514_v42 = vpop.f32.mrf.mxu0  ;;  %v6478_v44 = vrot.slane %v2920_v8, %v709_v34  ;;  %v6481_v0 = vrot.slane %v2920_v8, %v5849_v6 }
 0x20b   : > { %v2515_v43 = vadd.f32 %v2514_v42, %v6358_v16  ;;  %v2627_v20 = vpop.f32.mrf.mxu1  ;;  %v2626_v7 = vadd.f32 %v2625_v47, %v2513_v40  ;;  %v2754_v23 = vmul.f32 0.2, %v2624_v63  ;;  %vm2690_vm13 = vcmp.gt.f32.partialorder %v2624_v63, 0.0 }
 0x20c   : > { %v2516_v1 = vpop.f32.mrf.mxu0  ;;  %v2815_v24 = vsel %vm2687_vm12, %v2620_v52, %v2751_v19 }
 0x20d   : > { %v2628_v49 = vadd.f32 %v2627_v20, %v2515_v43  ;;  %v2517_v5 = vadd.f32 %v2516_v1, %v2404_v58  ;;  %v2851_v39 = vpack.c.bf16 %v2815_v24, %v2811_v48  ;;  %v2629_v3 = vpop.f32.mrf.mxu1  ;;  %v2755_v59 = vmul.f32 0.2, %v2626_v7 }
 0x20e   : > { %v2818_v35 = vsel %vm2690_vm13, %v2624_v63, %v2754_v23  ;;  %vm2691_vm15 = vcmp.gt.f32.partialorder %v2626_v7, 0.0 }
 0x20f   : > { %vm2694_vm14 = vcmp.gt.f32.partialorder %v2628_v49, 0.0  ;;  %v2758_v27 = vmul.f32 0.2, %v2628_v49  ;;  %v2630_v18 = vadd.f32 %v2629_v3, %v2517_v5  ;;  %3457 = vmatprep.mubr.bf16.mxu1 %v2851_v39  ;;  %v2819_v55 = vsel %vm2691_vm15, %v2626_v7, %v2755_v59 }
 0x210   : > { %3458 = vmatmul.mubr.bf16.gmra.mxu1 %v2850_v14 }
 0x211   : > { %v2822_v16 = vsel %vm2694_vm14, %v2628_v49, %v2758_v27  ;;  %vm2695_vm0 = vcmp.gt.f32.partialorder %v2630_v18, 0.0  ;;  %v2759_v12 = vmul.f32 0.2, %v2630_v18 }
 0x212   : > { %v2854_v32 = vpack.c.bf16 %v2822_v16, %v2818_v35 }
 0x213   : > { %v2823_v17 = vsel %vm2695_vm0, %v2630_v18, %v2759_v12 }
 0x214   : > { %v2855_v57 = vpack.c.bf16 %v2823_v17, %v2819_v55 }
 0x216   : > { %3467 = vmatprep.mubr.bf16.mxu1 %v2855_v57 }
 0x218   : > { %3468 = vmatmul.mubr.bf16.gmra.mxu1 %v2854_v32 }
 0x220   : > { %v3286_v51 = vpop.f32.mrf.mxu0 }
 0x221   : > { %v3287_v45 = vadd.f32 %v3286_v51, %v6481_v0 }
 0x222   : > { %v3288_v2 = vpop.f32.mrf.mxu0 }
 0x223   : > { %v3289_v4 = vadd.f32 %v3288_v2, %v6478_v44 }
 0x224   : > { %v3290_v26 = vpop.f32.mrf.mxu0 }
 0x225   : > { %v3291_v25 = vadd.f32 %v3290_v26, %v6481_v0 }
 0x226   : > { %v3292_v28 = vpop.f32.mrf.mxu0 }
 0x227   : > { %v3293_v34 = vadd.f32 %v3292_v28, %v6478_v44 }
 0x228   : > { %v3296_v53 = vpop.f32.mrf.mxu0 }
 0x229   : > { %v3297_v58 = vadd.f32 %v3296_v53, %v6481_v0 }
 0x22a   : > { %v3298_v46 = vpop.f32.mrf.mxu0 }
 0x22b   : > { %v3299_v43 = vadd.f32 %v3298_v46, %v6478_v44 }
 0x22c   : > { %v3300_v62 = vpop.f32.mrf.mxu0 }
 0x22d   : > { %v3301_v23 = vadd.f32 %v3300_v62, %v6481_v0 }
 0x22e   : > { %v3302_v54 = vpop.f32.mrf.mxu0 }
 0x22f   : > { %v3303_v18 = vadd.f32 %v3302_v54, %v6478_v44 }
 0x230   : > { %v6459_v36 = vpop.f32.mrf.mxu0 }
 0x231   : > { %v3307_v2 = vadd.f32 %v6459_v36, %v6481_v0 }
 0x232   : > { %v3308_v9 = vpop.f32.mrf.mxu0 }
 0x233   : > { %v3309_v13 = vadd.f32 %v3308_v9, %v6478_v44 }
 0x234   : > { %v6461_v31 = vpop.f32.mrf.mxu0 }
 0x235   : > { %v3311_v46 = vadd.f32 %v6461_v31, %v6481_v0 }
 0x236   : > { %v6463_v41 = vpop.f32.mrf.mxu0 }
 0x238   : > { %v6465_v33 = vpop.f32.mrf.mxu0 }
 0x23a   : > { %v6467_v21 = vpop.f32.mrf.mxu0 }
 0x23c   : > { %v6469_v30 = vpop.f32.mrf.mxu0 }
 0x23e   : > { %v6471_v37 = vpop.f32.mrf.mxu0 }
 0x240   : > { %v6483_v15 = vpop.f32.mrf.mxu0 }
 0x242   : > { %v6487_v60 = vpop.f32.mrf.mxu0 }
 0x244   : > { %v6491_v56 = vpop.f32.mrf.mxu0 }
 0x246   : > { %v6495_v7 = vpop.f32.mrf.mxu0 }
 0x248   : > { %v6499_v32 = vpop.f32.mrf.mxu0 }
 0x24a   : > { %v6504_v26 = vpop.f32.mrf.mxu0 }
 0x24c   : > { %v6510_v36 = vpop.f32.mrf.mxu0 }
 0x2a0   : > { %v3399_v22 = vpop.f32.mrf.mxu1 }
 0x2a1   : > { %v3400_v50 = vadd.f32 %v3399_v22, %v3287_v45 }
 0x2a2   : > { %v3401_v29 = vpop.f32.mrf.mxu1 }
 0x2a3   : > { %v3402_v52 = vadd.f32 %v3401_v29, %v3289_v4  ;;  %v3510_v19 = vmul.f32 0.2, %v3400_v50  ;;  %vm3478_vm3 = vcmp.gt.f32.partialorder %v3400_v50, 0.0  ;;  %v3313_v29 = vadd.f32 %v6463_v41, %v6478_v44 }
 0x2a4   : > { %v3403_v11 = vpop.f32.mrf.mxu1 }
 0x2a5   : > { %v3404_v47 = vadd.f32 %v3403_v11, %v3291_v25  ;;  %v3511_v63 = vmul.f32 0.2, %v3402_v52  ;;  %vm3479_vm2 = vcmp.gt.f32.partialorder %v3402_v52, 0.0  ;;  %v3542_v39 = vsel %vm3478_vm3, %v3400_v50, %v3510_v19 }
 0x2a6   : > { %v3405_v61 = vpop.f32.mrf.mxu1 }
 0x2a7   : > { %vm3480_vm1 = vcmp.gt.f32.partialorder %v3404_v47, 0.0  ;;  %v3512_v40 = vmul.f32 0.2, %v3404_v47  ;;  %v3406_v14 = vadd.f32 %v3405_v61, %v3293_v34  ;;  %v3543_v48 = vsel %vm3479_vm2, %v3402_v52, %v3511_v63 }
 0x2a8   : > { %v3409_v42 = vpop.f32.mrf.mxu1  ;;  %v3319_v63 = vadd.f32 %v6467_v21, %v6478_v44 }
 0x2a9   : > { %vm3481_vm4 = vcmp.gt.f32.partialorder %v3406_v14, 0.0  ;;  %v3513_v20 = vmul.f32 0.2, %v3406_v14  ;;  %v3544_v1 = vsel %vm3480_vm1, %v3404_v47, %v3512_v40  ;;  %v3410_v27 = vadd.f32 %v3409_v42, %v3297_v58 }
 0x2aa   : > { %v3411_v24 = vpop.f32.mrf.mxu1  ;;  %v3574_v35 = vpack.c.bf16 %v3544_v1, %v3542_v39  ;;  %v3317_v40 = vadd.f32 %v6465_v33, %v6481_v0 }
 0x2ab   : > { %v3412_v49 = vadd.f32 %v3411_v24, %v3299_v43  ;;  %v3545_v5 = vsel %vm3481_vm4, %v3406_v14, %v3513_v20  ;;  %v3514_v10 = vmul.f32 0.2, %v3410_v27  ;;  %vm3482_vm7 = vcmp.gt.f32.partialorder %v3410_v27, 0.0  ;;  %v6516_v14 = vpop.f32.mrf.mxu0 }
 0x2ac   : > { %v3413_v3 = vpop.f32.mrf.mxu1  ;;  %v3575_v59 = vpack.c.bf16 %v3545_v5, %v3543_v48  ;;  %v3321_v43 = vadd.f32 %v6469_v30, %v6481_v0  ;;  %v3323_v48 = vadd.f32 %v6471_v37, %v6478_v44 }
 0x2ad   : > { %v3414_v16 = vadd.f32 %v3413_v3, %v3301_v23  ;;  %v3515_v55 = vmul.f32 0.2, %v3412_v49  ;;  %vm3483_vm6 = vcmp.gt.f32.partialorder %v3412_v49, 0.0  ;;  %v3546_v22 = vsel %vm3482_vm7, %v3410_v27, %v3514_v10  ;;  %v6522_v33 = vpop.f32.mrf.mxu0 }
 0x2ae   : > { %v3415_v12 = vpop.f32.mrf.mxu1  ;;  %3757 = vmatprep.mubr.bf16.mxu0 %v3575_v59  ;;  %v3331_v10 = vadd.f32 %v6491_v56, %v6481_v0 }
 0x2af   : > { %vm3484_vm5 = vcmp.gt.f32.partialorder %v3414_v16, 0.0  ;;  %v3516_v17 = vmul.f32 0.2, %v3414_v16  ;;  %v3416_v57 = vadd.f32 %v3415_v12, %v3303_v18  ;;  %3758 = vmatmul.mubr.bf16.vlgmr.msra.gmra.mxu0 %v3574_v35  ;;  %v3547_v54 = vsel %vm3483_vm6, %v3412_v49, %v3515_v55  ;;  %v3348_v55 = vpop.f32.mrf.mxu0 }
 0x2b0   : > { %v3419_v38 = vpop.f32.mrf.mxu1  ;;  %v3327_v12 = vadd.f32 %v6483_v15, %v6481_v0 }
 0x2b1   : > { %vm3485_vm8 = vcmp.gt.f32.partialorder %v3416_v57, 0.0  ;;  %v3517_v51 = vmul.f32 0.2, %v3416_v57  ;;  %v3548_v28 = vsel %vm3484_vm5, %v3414_v16, %v3516_v17  ;;  %v3420_v4 = vadd.f32 %v3419_v38, %v3307_v2 }
 0x2b2   : > { %v3421_v53 = vpop.f32.mrf.mxu1  ;;  %v3576_v25 = vpack.c.bf16 %v3548_v28, %v3546_v22  ;;  %v3329_v16 = vadd.f32 %v6487_v60, %v6478_v44  ;;  %v3333_v60 = vadd.f32 %v6495_v7, %v6478_v44  ;;  %v3337_v7 = vadd.f32 %v6499_v32, %v6481_v0 }
 0x2b3   : > { %v3422_v62 = vadd.f32 %v3421_v53, %v3309_v13  ;;  %v3549_v8 = vsel %vm3485_vm8, %v3416_v57, %v3517_v51  ;;  %v3518_v47 = vmul.f32 0.2, %v3420_v4  ;;  %vm3486_vm11 = vcmp.gt.f32.partialorder %v3420_v4, 0.0 }
 0x2b4   : > { %v3423_v45 = vpop.f32.mrf.mxu1  ;;  %v3577_v9 = vpack.c.bf16 %v3549_v8, %v3547_v54  ;;  %v3350_v8 = vpop.f32.mrf.mxu0 }
 0x2b5   : > { %v3424_v52 = vadd.f32 %v3423_v45, %v3311_v46  ;;  %v3519_v11 = vmul.f32 0.2, %v3422_v62  ;;  %vm3487_vm10 = vcmp.gt.f32.partialorder %v3422_v62, 0.0  ;;  %v3550_v24 = vsel %vm3486_vm11, %v3420_v4, %v3518_v47 }
 0x2b6   : > { %v3425_v50 = vpop.f32.mrf.mxu1  ;;  %3765 = vmatprep.mubr.bf16.mxu0 %v3577_v9 }
 0x2b7   : > { %vm3488_vm9 = vcmp.gt.f32.partialorder %v3424_v52, 0.0  ;;  %v3520_v34 = vmul.f32 0.2, %v3424_v52  ;;  %v3426_v31 = vadd.f32 %v3425_v50, %v3313_v29  ;;  %3766 = vmatmul.mubr.bf16.gmra.mxu0 %v3576_v25  ;;  %v3551_v58 = vsel %vm3487_vm10, %v3422_v62, %v3519_v11 }
 0x2b8   : > { %v3429_v61 = vpop.f32.mrf.mxu1  ;;  %v3339_v29 = vadd.f32 %v6504_v26, %v6478_v44  ;;  %v3343_v26 = vadd.f32 %v6516_v14, %v6478_v44  ;;  %v3347_v14 = vadd.f32 %v6522_v33, %v6481_v0 }
 0x2b9   : > { %vm3489_vm12 = vcmp.gt.f32.partialorder %v3426_v31, 0.0  ;;  %v3521_v41 = vmul.f32 0.2, %v3426_v31  ;;  %v3552_v19 = vsel %vm3488_vm9, %v3424_v52, %v3520_v34  ;;  %v3430_v23 = vadd.f32 %v3429_v61, %v3317_v40  ;;  %v3352_v52 = vpop.f32.mrf.mxu0 }
 0x2ba   : > { %v3431_v42 = vpop.f32.mrf.mxu1  ;;  %v3578_v5 = vpack.c.bf16 %v3552_v19, %v3550_v24  ;;  %v3341_v34 = vadd.f32 %v6510_v36, %v6481_v0 }
 0x2bb   : > { %v3432_v20 = vadd.f32 %v3431_v42, %v3319_v63  ;;  %v3553_v1 = vsel %vm3489_vm12, %v3426_v31, %v3521_v41  ;;  %v3522_v18 = vmul.f32 0.2, %v3430_v23  ;;  %vm3490_vm15 = vcmp.gt.f32.partialorder %v3430_v23, 0.0 }
 0x2bc   : > { %v3433_v49 = vpop.f32.mrf.mxu1  ;;  %v3579_v21 = vpack.c.bf16 %v3553_v1, %v3551_v58 }
 0x2bd   : > { %v3434_v39 = vadd.f32 %v3433_v49, %v3321_v43  ;;  %v3523_v3 = vmul.f32 0.2, %v3432_v20  ;;  %vm3491_vm14 = vcmp.gt.f32.partialorder %v3432_v20, 0.0  ;;  %v3554_v2 = vsel %vm3490_vm15, %v3430_v23, %v3522_v18 }
 0x2be   : > { %v3435_v27 = vpop.f32.mrf.mxu1  ;;  %3773 = vmatprep.mubr.bf16.mxu0 %v3579_v21  ;;  %v3349_v49 = vadd.f32 %v3348_v55, %v6478_v44 }
 0x2bf   : > { %vm3492_vm13 = vcmp.gt.f32.partialorder %v3434_v39, 0.0  ;;  %v3524_v59 = vmul.f32 0.2, %v3434_v39  ;;  %v3436_v30 = vadd.f32 %v3435_v27, %v3323_v48  ;;  %3774 = vmatmul.mubr.bf16.gmra.mxu0 %v3578_v5  ;;  %v3555_v13 = vsel %vm3491_vm14, %v3432_v20, %v3523_v3  ;;  %v3356_v20 = vpop.f32.mrf.mxu0 }
 0x2c0   : > { %v3439_v35 = vpop.f32.mrf.mxu1  ;;  %v3351_v27 = vadd.f32 %v3350_v8, %v6481_v0 }
 0x2c1   : > { %vm3493_vm0 = vcmp.gt.f32.partialorder %v3436_v30, 0.0  ;;  %v3525_v37 = vmul.f32 0.2, %v3436_v30  ;;  %v3556_v17 = vsel %vm3492_vm13, %v3434_v39, %v3524_v59  ;;  %v3440_v28 = vadd.f32 %v3439_v35, %v3327_v12  ;;  %v3358_v48 = vpop.f32.mrf.mxu0 }
 0x2c2   : > { %v3441_v57 = vpop.f32.mrf.mxu1  ;;  %v3580_v62 = vpack.c.bf16 %v3556_v17, %v3554_v2  ;;  %v3353_v12 = vadd.f32 %v3352_v52, %v6478_v44 }
 0x2c3   : > { %v3442_v38 = vadd.f32 %v3441_v57, %v3329_v16  ;;  %v3557_v51 = vsel %vm3493_vm0, %v3436_v30, %v3525_v37  ;;  %v3526_v56 = vmul.f32 0.2, %v3440_v28  ;;  %vm3494_vm3 = vcmp.gt.f32.partialorder %v3440_v28, 0.0  ;;  %v3360_v57 = vpop.f32.mrf.mxu0 }
 0x2c4   : > { %v3443_v53 = vpop.f32.mrf.mxu1  ;;  %v3581_v46 = vpack.c.bf16 %v3557_v51, %v3555_v13  ;;  %v3361_v8 = vadd.f32 %v3360_v57, %v6481_v0 }
 0x2c5   : > { %v3444_v54 = vadd.f32 %v3443_v53, %v3331_v10  ;;  %v3527_v22 = vmul.f32 0.2, %v3442_v38  ;;  %vm3495_vm2 = vcmp.gt.f32.partialorder %v3442_v38, 0.0  ;;  %v3558_v63 = vsel %vm3494_vm3, %v3440_v28, %v3526_v56 }
 0x2c6   : > { %v3445_v15 = vpop.f32.mrf.mxu1  ;;  %3781 = vmatprep.mubr.bf16.mxu0 %v3581_v46  ;;  %v3359_v28 = vadd.f32 %v3358_v48, %v6478_v44  ;;  %v3357_v46 = vadd.f32 %v3356_v20, %v6481_v0 }
 0x2c7   : > { %vm3496_vm1 = vcmp.gt.f32.partialorder %v3444_v54, 0.0  ;;  %v3528_v4 = vmul.f32 0.2, %v3444_v54  ;;  %v3446_v45 = vadd.f32 %v3445_v15, %v3333_v60  ;;  %3782 = vmatmul.mubr.bf16.gmra.mxu0 %v3580_v62  ;;  %v3559_v47 = vsel %vm3495_vm2, %v3442_v38, %v3527_v22  ;;  %v3362_v60 = vpop.f32.mrf.mxu0 }
 0x2c8   : > { %v3449_v9 = vpop.f32.mrf.mxu1 }
 0x2c9   : > { %vm3497_vm4 = vcmp.gt.f32.partialorder %v3446_v45, 0.0  ;;  %v3529_v25 = vmul.f32 0.2, %v3446_v45  ;;  %v3560_v50 = vsel %vm3496_vm1, %v3444_v54, %v3528_v4  ;;  %v3450_v41 = vadd.f32 %v3449_v9, %v3337_v7 }
 0x2ca   : > { %v3451_v11 = vpop.f32.mrf.mxu1  ;;  %v3582_v42 = vpack.c.bf16 %v3560_v50, %v3558_v63  ;;  %vm4858_vm1 = vmmov 0  }
 0x2cb   : > { %v3452_v31 = vadd.f32 %v3451_v11, %v3339_v29  ;;  %v3561_v61 = vsel %vm3497_vm4, %v3446_v45, %v3529_v25  ;;  %v3530_v36 = vmul.f32 0.2, %v3450_v41  ;;  %vm3498_vm7 = vcmp.gt.f32.partialorder %v3450_v41, 0.0 }
 0x2cc   : > { %v3453_v40 = vpop.f32.mrf.mxu1  ;;  %v3583_v19 = vpack.c.bf16 %v3561_v61, %v3559_v47  ;;  %v3363_v25 = vadd.f32 %v3362_v60, %v6478_v44 }
 0x2cd   : > { %v3454_v43 = vadd.f32 %v3453_v40, %v3341_v34  ;;  %v3531_v58 = vmul.f32 0.2, %v3452_v31  ;;  %vm3499_vm6 = vcmp.gt.f32.partialorder %v3452_v31, 0.0  ;;  %v3562_v18 = vsel %vm3498_vm7, %v3450_v41, %v3530_v36 }
 0x2ce   : > { %v3455_v32 = vpop.f32.mrf.mxu1  ;;  %3789 = vmatprep.mubr.bf16.mxu0 %v3583_v19 }
 0x2cf   : > { %vm3500_vm5 = vcmp.gt.f32.partialorder %v3454_v43, 0.0  ;;  %v3532_v1 = vmul.f32 0.2, %v3454_v43  ;;  %v3456_v24 = vadd.f32 %v3455_v32, %v3343_v26  ;;  %3790 = vmatmul.mubr.bf16.gmra.mxu0 %v3582_v42  ;;  %v3563_v59 = vsel %vm3499_vm6, %v3452_v31, %v3531_v58  ;;  %v3871_v58 = vld [vmem:[#allocation2] sm:$0x1] }
 0x2d0   : > { %v3459_v23 = vpop.f32.mrf.mxu1  ;;  %v4857_v26 = vmov 0.0   ;;  %3874 = vperm.xlu0 %4436, %v3871_v58  }
 0x2d1   : > { %vm3501_vm8 = vcmp.gt.f32.partialorder %v3456_v24, 0.0  ;;  %v3533_v21 = vmul.f32 0.2, %v3456_v24  ;;  %v3564_v5 = vsel %vm3500_vm5, %v3454_v43, %v3532_v1  ;;  %v3460_v35 = vadd.f32 %v3459_v23, %v3347_v14  ;;  %4389 = vmatprep.subr.mxu1 %v4857_v26  ;;  %4421 = vmatprep.mubr.msk.f32.mxu1 %vm4858_vm1, %v4857_v26 }
 0x2d2   : > { %v3461_v39 = vpop.f32.mrf.mxu1  ;;  %v3584_v55 = vpack.c.bf16 %v3564_v5, %v3562_v18 }
 0x2d3   : > { %v3462_v3 = vadd.f32 %v3461_v39, %v3349_v49  ;;  %v3565_v30 = vsel %vm3501_vm8, %v3456_v24, %v3533_v21  ;;  %v3534_v51 = vmul.f32 0.2, %v3460_v35  ;;  %vm3502_vm11 = vcmp.gt.f32.partialorder %v3460_v35, 0.0 }
 0x2d4   : > { %v3463_v16 = vpop.f32.mrf.mxu1  ;;  %v3585_v37 = vpack.c.bf16 %v3565_v30, %v3563_v59 }
 0x2d5   : > { %v3464_v17 = vadd.f32 %v3463_v16, %v3351_v27  ;;  %v3535_v33 = vmul.f32 0.2, %v3462_v3  ;;  %vm3503_vm10 = vcmp.gt.f32.partialorder %v3462_v3, 0.0  ;;  %v3566_v45 = vsel %vm3502_vm11, %v3460_v35, %v3534_v51 }
 0x2d6   : > { %v3465_v10 = vpop.f32.mrf.mxu1  ;;  %3797 = vmatprep.mubr.bf16.mxu0 %v3585_v37 }
 0x2d7   : > { %vm3504_vm9 = vcmp.gt.f32.partialorder %v3464_v17, 0.0  ;;  %v3536_v38 = vmul.f32 0.2, %v3464_v17  ;;  %v3466_v13 = vadd.f32 %v3465_v10, %v3353_v12  ;;  %3798 = vmatmul.mubr.bf16.gmra.mxu0 %v3584_v55  ;;  %v3567_v22 = vsel %vm3503_vm10, %v3462_v3, %v3535_v33 }
 0x2d8   : > { %v3469_v2 = vpop.f32.mrf.mxu1 }
 0x2d9   : > { %vm3505_vm12 = vcmp.gt.f32.partialorder %v3466_v13, 0.0  ;;  %v3537_v53 = vmul.f32 0.2, %v3466_v13  ;;  %v3568_v62 = vsel %vm3504_vm9, %v3464_v17, %v3536_v38  ;;  %v3470_v56 = vadd.f32 %v3469_v2, %v3357_v46 }
 0x2da   : > { %v3471_v54 = vpop.f32.mrf.mxu1  ;;  %v3586_v7 = vpack.c.bf16 %v3568_v62, %v3566_v45  ;;  %v6570_v45 = vld [vmem:[%s6629_s6] ss:$0 sm:$0xff] }
 0x2db   : > { %v3472_v15 = vadd.f32 %v3471_v54, %v3359_v28  ;;  %v3569_v4 = vsel %vm3505_vm12, %v3466_v13, %v3537_v53  ;;  %v3538_v47 = vmul.f32 0.2, %v3470_v56  ;;  %vm3506_vm15 = vcmp.gt.f32.partialorder %v3470_v56, 0.0 }
 0x2dc   : > { %v3473_v9 = vpop.f32.mrf.mxu1  ;;  %v3587_v29 = vpack.c.bf16 %v3569_v4, %v3567_v22 }
 0x2dd   : > { %v3474_v52 = vadd.f32 %v3473_v9, %v3361_v8  ;;  %v3539_v11 = vmul.f32 0.2, %v3472_v15  ;;  %vm3507_vm14 = vcmp.gt.f32.partialorder %v3472_v15, 0.0  ;;  %v3570_v40 = vsel %vm3506_vm15, %v3470_v56, %v3538_v47 }
 0x2de   : > { %v3475_v50 = vpop.f32.mrf.mxu1  ;;  %3805 = vmatprep.mubr.bf16.mxu0 %v3587_v29 }
 0x2df   : > { %vm3508_vm13 = vcmp.gt.f32.partialorder %v3474_v52, 0.0  ;;  %v3540_v34 = vmul.f32 0.2, %v3474_v52  ;;  %v3476_v31 = vadd.f32 %v3475_v50, %v3363_v25  ;;  %3806 = vmatmul.mubr.bf16.gmra.mxu0 %v3586_v7  ;;  %v3571_v63 = vsel %vm3507_vm14, %v3472_v15, %v3539_v11 }
 0x2e1   : > { %vm3509_vm0 = vcmp.gt.f32.partialorder %v3476_v31, 0.0  ;;  %v3541_v0 = vmul.f32 0.2, %v3476_v31  ;;  %v3572_v61 = vsel %vm3508_vm13, %v3474_v52, %v3540_v34 }
 0x2e2   : > { %v3588_v44 = vpack.c.bf16 %v3572_v61, %v3570_v40 }
 0x2e3   : > { %v3573_v41 = vsel %vm3509_vm0, %v3476_v31, %v3541_v0 }
 0x2e4   : > { %v3589_v19 = vpack.c.bf16 %v3573_v41, %v3571_v63 }
 0x2e6   : > { %3813 = vmatprep.mubr.bf16.mxu0 %v3589_v19 }
 0x2e7   : > { %3814 = vmatmul.mubr.bf16.gmra.mxu0 %v3588_v44 }
 0x36f   : > { %v4324_v42 = vpop.f32.mrf.mxu0 }
 0x371   : > { %v4325_v43 = vpop.f32.mrf.mxu0 }
 0x372   : > { %v6550_v20 = vadd.f32 %v4325_v43, %v4324_v42 }
 0x373   : > { %v4327_v32 = vpop.f32.mrf.mxu0 }
 0x375   : > { %v4328_v1 = vpop.f32.mrf.mxu0 }
 0x376   : > { %v6553_v24 = vadd.f32 %v4328_v1, %v4327_v32 }
 0x377   : > { %v4330_v36 = vpop.f32.mrf.mxu0 }
 0x379   : > { %v4331_v23 = vpop.f32.mrf.mxu0 }
 0x37a   : > { %v6555_v49 = vadd.f32 %v4331_v23, %v4330_v36 }
 0x37b   : > { %v4333_v21 = vpop.f32.mrf.mxu0 }
 0x37d   : > { %v4334_v14 = vpop.f32.mrf.mxu0 }
 0x37e   : > { %v6557_v48 = vadd.f32 %v4334_v14, %v4333_v21 }
 0x37f   : > { %v4336_v5 = vpop.f32.mrf.mxu0 }
 0x381   : > { %v4337_v39 = vpop.f32.mrf.mxu0 }
 0x382   : > { %v6559_v27 = vadd.f32 %v4337_v39, %v4336_v5 }
 0x383   : > { %v4339_v3 = vpop.f32.mrf.mxu0 }
 0x385   : > { %v4340_v59 = vpop.f32.mrf.mxu0 }
 0x386   : > { %v6561_v30 = vadd.f32 %v4340_v59, %v4339_v3 }
 0x387   : > { %v4342_v18 = vpop.f32.mrf.mxu0 }
 0x389   : > { %v4343_v35 = vpop.f32.mrf.mxu0 }
 0x38a   : > { %v6563_v16 = vadd.f32 %v4343_v35, %v4342_v18 }
 0x38b   : > { %v4345_v37 = vpop.f32.mrf.mxu0 }
 0x38c   : > { %v3784_v59 = vadd.f32 %v6563_v16, %v6570_v45 }
 0x38d   : > { %v4346_v12 = vpop.f32.mrf.mxu0 }
 0x38e   : > { %v6565_v55 = vadd.f32 %v4346_v12, %v4345_v37  ;;  %v3779_v37 = vadd.f32 %v6561_v30, %v6570_v45  ;;  %v3844_v12 = vmul.f32 0.2, %v3784_v59  ;;  %vm3828_vm11 = vcmp.gt.f32.partialorder %v3784_v59, 0.0 }
 0x38f   : > { %v4348_v17 = vpop.f32.mrf.mxu0 }
 0x390   : > { %v3787_v5 = vadd.f32 %v6565_v55, %v6570_v45  ;;  %v3860_v16 = vsel %vm3828_vm11, %v3784_v59, %v3844_v12  ;;  %vm3827_vm12 = vcmp.gt.f32.partialorder %v3779_v37, 0.0 }
 0x391   : > { %v4349_v57 = vpop.f32.mrf.mxu0 }
 0x392   : > { %v4350_v32 = vadd.f32 %v4349_v57, %v4348_v17  ;;  %v3845_v18 = vmul.f32 0.2, %v3787_v5  ;;  %vm3829_vm10 = vcmp.gt.f32.partialorder %v3787_v5, 0.0  ;;  %v3776_v17 = vadd.f32 %v6559_v27, %v6570_v45 }
 0x393   : > { %v4351_v10 = vpop.f32.mrf.mxu0  ;;  %v3843_v57 = vmul.f32 0.2, %v3779_v37 }
 0x394   : > { %v3792_v23 = vadd.f32 %v4350_v32, %v6570_v45  ;;  %v3861_v55 = vsel %vm3829_vm10, %v3787_v5, %v3845_v18  ;;  %vm3826_vm13 = vcmp.gt.f32.partialorder %v3776_v17, 0.0 }
 0x395   : > { %v4352_v33 = vpop.f32.mrf.mxu0  ;;  %v3859_v30 = vsel %vm3827_vm12, %v3779_v37, %v3843_v57 }
 0x396   : > { %v4353_v19 = vadd.f32 %v4352_v33, %v4351_v10  ;;  %v3846_v39 = vmul.f32 0.2, %v3792_v23  ;;  %vm3830_vm9 = vcmp.gt.f32.partialorder %v3792_v23, 0.0  ;;  %v3771_v10 = vadd.f32 %v6557_v48, %v6570_v45 }
 0x397   : > { %v4354_v38 = vpop.f32.mrf.mxu0  ;;  %v3842_v33 = vmul.f32 0.2, %v3776_v17 }
 0x398   : > { %v3795_v58 = vadd.f32 %v4353_v19, %v6570_v45  ;;  %v3862_v35 = vsel %vm3830_vm9, %v3792_v23, %v3846_v39  ;;  %vm3825_vm14 = vcmp.gt.f32.partialorder %v3771_v10, 0.0 }
 0x399   : > { %v4355_v13 = vpop.f32.mrf.mxu0  ;;  %v3858_v27 = vsel %vm3826_vm13, %v3776_v17, %v3842_v33 }
 0x39a   : > { %v4356_v61 = vadd.f32 %v4355_v13, %v4354_v38  ;;  %v3847_v21 = vmul.f32 0.2, %v3795_v58  ;;  %vm3831_vm8 = vcmp.gt.f32.partialorder %v3795_v58, 0.0  ;;  %v3768_v38 = vadd.f32 %v6555_v49, %v6570_v45 }
 0x39b   : > { %v4357_v51 = vpop.f32.mrf.mxu0  ;;  %v3841_v13 = vmul.f32 0.2, %v3771_v10 }
 0x39c   : > { %v3800_v44 = vadd.f32 %v4356_v61, %v6570_v45  ;;  %v3863_v3 = vsel %vm3831_vm8, %v3795_v58, %v3847_v21  ;;  %vm3824_vm15 = vcmp.gt.f32.partialorder %v3768_v38, 0.0 }
 0x39d   : > { %v4358_v2 = vpop.f32.mrf.mxu0  ;;  %v3857_v48 = vsel %vm3825_vm14, %v3771_v10, %v3841_v13 }
 0x39e   : > { %v4359_v34 = vadd.f32 %v4358_v2, %v4357_v51  ;;  %v3848_v1 = vmul.f32 0.2, %v3800_v44  ;;  %vm3832_vm7 = vcmp.gt.f32.partialorder %v3800_v44, 0.0  ;;  %v3763_v51 = vadd.f32 %v6553_v24, %v6570_v45 }
 0x39f   : > { %v4360_v28 = vpop.f32.mrf.mxu0  ;;  %v3840_v2 = vmul.f32 0.2, %v3768_v38 }
 0x3a0   : > { %v3803_v63 = vadd.f32 %v4359_v34, %v6570_v45  ;;  %v3864_v14 = vsel %vm3832_vm7, %v3800_v44, %v3848_v1  ;;  %vm3823_vm0 = vcmp.gt.f32.partialorder %v3763_v51, 0.0 }
 0x3a1   : > { %v4361_v53 = vpop.f32.mrf.mxu0  ;;  %v3856_v49 = vsel %vm3824_vm15, %v3768_v38, %v3840_v2 }
 0x3a2   : > { %v4362_v7 = vadd.f32 %v4361_v53, %v4360_v28  ;;  %v3849_v42 = vmul.f32 0.2, %v3803_v63  ;;  %vm3833_vm6 = vcmp.gt.f32.partialorder %v3803_v63, 0.0  ;;  %v3760_v28 = vadd.f32 %v6550_v20, %v6570_v45  ;;  %v3870_v20 = vld [vmem:[%s6630_s7] sm:$0x1] }
 0x3a3   : > { %v4363_v46 = vpop.f32.mrf.mxu0  ;;  %v3839_v53 = vmul.f32 0.2, %v3763_v51 }
 0x3a4   : > { %v3808_v31 = vadd.f32 %v4362_v7, %v6570_v45  ;;  %v3865_v36 = vsel %vm3833_vm6, %v3803_v63, %v3849_v42  ;;  %vm3822_vm1 = vcmp.gt.f32.partialorder %v3760_v28, 0.0 }
 0x3a5   : > { %v4364_v60 = vpop.f32.mrf.mxu0 }
 0x3a6   : > { %v4365_v56 = vadd.f32 %v4364_v60, %v4363_v46  ;;  %v3850_v41 = vmul.f32 0.2, %v3808_v31  ;;  %vm3834_vm5 = vcmp.gt.f32.partialorder %v3808_v31, 0.0  ;;  %v3838_v46 = vmul.f32 0.2, %v3760_v28 }
 0x3a7   : > { %v4366_v62 = vpop.f32.mrf.mxu0  ;;  %v3855_v60 = vsel %vm3823_vm0, %v3763_v51, %v3839_v53 }
 0x3a8   : > { %v3811_v52 = vadd.f32 %v4365_v56, %v6570_v45  ;;  %v3866_v43 = vsel %vm3834_vm5, %v3808_v31, %v3850_v41  ;;  %v3854_v24 = vsel %vm3822_vm1, %v3760_v28, %v3838_v46 }
 0x3a9   : > { %v4367_v54 = vpop.f32.mrf.mxu0 }
 0x3aa   : > { %v4368_v15 = vadd.f32 %v4367_v54, %v4366_v62  ;;  %v3851_v47 = vmul.f32 0.2, %v3811_v52  ;;  %vm3835_vm4 = vcmp.gt.f32.partialorder %v3811_v52, 0.0  ;;  %v3875_v62 = vpop.permute.xlu0 %3874 }
 0x3ab   : > { %v4369_v8 = vpop.f32.mrf.mxu0  ;;  %v3880_v54 = vrot.slane %v3875_v62, %v5849_v6 }
 0x3ac   : > { %v3816_v9 = vadd.f32 %v4368_v15, %v6570_v45  ;;  %v3867_v40 = vsel %vm3835_vm4, %v3811_v52, %v3851_v47 }
 0x3ad   : > { %v4370_v22 = vpop.f32.mrf.mxu0 }
 0x3ae   : > { %v4371_v4 = vadd.f32 %v4370_v22, %v4369_v8  ;;  %v3852_v50 = vmul.f32 0.2, %v3816_v9  ;;  %vm3836_vm3 = vcmp.gt.f32.partialorder %v3816_v9, 0.0 }
 0x3b0   : > { %v3819_v29 = vadd.f32 %v4371_v4, %v6570_v45  ;;  %v3868_v0 = vsel %vm3836_vm3, %v3816_v9, %v3852_v50 }
 0x3b2   : > { %v3853_v25 = vmul.f32 0.2, %v3819_v29  ;;  %vm3837_vm2 = vcmp.gt.f32.partialorder %v3819_v29, 0.0 }
 0x3b4   : > { %v3869_v11 = vsel %vm3837_vm2, %v3819_v29, %v3853_v25 }
 0x3b5   : > { %4390 = vmatpush3.xpose.msra.mxu1 %v3869_v11 }
 0x3b6   : > { %4391 = vmatprep.subr.mxu1 %v4857_v26 }
 0x3b9   : > { %4392 = vmatpush3.xpose.msra.mxu1 %v3868_v0 }
 0x3ba   : > { %4393 = vmatprep.subr.mxu1 %v4857_v26 }
 0x3bd   : > { %4394 = vmatpush3.xpose.msra.mxu1 %v3867_v40 }
 0x3be   : > { %4395 = vmatprep.subr.mxu1 %v4857_v26 }
 0x3c1   : > { %4396 = vmatpush3.xpose.msra.mxu1 %v3866_v43 }
 0x3c2   : > { %4397 = vmatprep.subr.mxu1 %v4857_v26 }
 0x3c5   : > { %4398 = vmatpush3.xpose.msra.mxu1 %v3865_v36 }
 0x3c6   : > { %4399 = vmatprep.subr.mxu1 %v4857_v26 }
 0x3c9   : > { %4400 = vmatpush3.xpose.msra.mxu1 %v3864_v14 }
 0x3ca   : > { %4401 = vmatprep.subr.mxu1 %v4857_v26 }
 0x3cd   : > { %4402 = vmatpush3.xpose.msra.mxu1 %v3863_v3 }
 0x3ce   : > { %4403 = vmatprep.subr.mxu1 %v4857_v26 }
 0x3d1   : > { %4404 = vmatpush3.xpose.msra.mxu1 %v3862_v35 }
 0x3d2   : > { %4405 = vmatprep.subr.mxu1 %v4857_v26 }
 0x3d5   : > { %4406 = vmatpush3.xpose.msra.mxu1 %v3861_v55 }
 0x3d6   : > { %4407 = vmatprep.subr.mxu1 %v4857_v26 }
 0x3d9   : > { %4408 = vmatpush3.xpose.msra.mxu1 %v3860_v16 }
 0x3da   : > { %4409 = vmatprep.subr.mxu1 %v4857_v26 }
 0x3dd   : > { %4410 = vmatpush3.xpose.msra.mxu1 %v3859_v30 }
 0x3de   : > { %4411 = vmatprep.subr.mxu1 %v4857_v26 }
 0x3e1   : > { %4412 = vmatpush3.xpose.msra.mxu1 %v3858_v27 }
 0x3e2   : > { %4413 = vmatprep.subr.mxu1 %v4857_v26 }
 0x3e5   : > { %4414 = vmatpush3.xpose.msra.mxu1 %v3857_v48 }
 0x3e6   : > { %4415 = vmatprep.subr.mxu1 %v4857_v26 }
 0x3e9   : > { %4416 = vmatpush3.xpose.msra.mxu1 %v3856_v49 }
 0x3ea   : > { %4417 = vmatprep.subr.mxu1 %v4857_v26 }
 0x3ed   : > { %4418 = vmatpush3.xpose.msra.mxu1 %v3855_v60 }
 0x3ee   : > { %4419 = vmatprep.subr.mxu1 %v4857_v26 }
 0x3f1   : > { %4420 = vmatpush3.xpose.msra.mxu1 %v3854_v24 }
 0x3f4   : > { %4422 = vmatmul.mubr.f32.vlgmr.msra.gmra.mxu1 %v3870_v20 }
 0x4b4   : > { %v3947_v8 = vpop.f32.mrf.mxu1 }
 0x4b5   : > { %v3948_v15 = vadd.f32 %v3947_v8, %v3880_v54 }
 0x4b6   : > { %v4423_v22 = vpop.f32.mrf.mxu1 }
 0x4b7   : > { %v4305_v4 = vmul.f32 -1.442695, %v3948_v15 }
 0x4b9   : > { %4843 = vpow2.f32 %v4305_v4 }
 0x4c6   : > { %v4844_v45 = vpop.eup %4843 }
 0x4c7   : > { %v3954_v56 = vadd.f32 1.0, %v4844_v45 }
 0x4c9   : > { %4845 = vrcp.f32 %v3954_v56 }
 0x4d6   : > { %v4846_v26 = vpop.eup %4845 }
 0x4d7   : > { %3957 = vst [vmem:[%s335_s14] sm:$0x1] %v4846_v26 }
 0x4d8 PF: > { %s21_s11 = sadd.s32 1, %s4854_s11  }
 0x4d9   : > { %p18_p5 = scmp.ge.s32.totalorder %s21_s11, 4  }
 0x4db   :  { %20 = sbr.rel (!%p18_p5) target bundleno = 3 (0x3), region = 86 }

</bundles_post_ra>
